<compile_context>
chip_gen: v5e
topology: v5e:2x2
jax: 0.10.0
libtpu: 0.0.40
codegen_flags: <defaults>
</compile_context>

<pallas_src>
import functools

import jax
import jax.numpy as jnp
from jax.experimental import pallas as pl
from jax.experimental.pallas import tpu as pltpu


def _round_up(x, m):
    return (x + m - 1) // m * m


# ----------------------------- Pallas kernels ------------------------------ #

def _make_conv_stats_kernel(ks, pad, Wp, hs, tm, cinp, coutp):
    """Fused conv (ks*ks shifted matmuls over a flat row tile) + BN partial stats."""

    def kernel(xm_ref, lo_ref, hi_ref, w_ref, mk_ref, y_ref, st_ref):
        # xm_ref : (tm, cinp)           main flat row tile of padded NHWC input (bf16)
        # lo_ref : (1, hs, cinp)        rows just before the tile               (bf16)
        # hi_ref : (1, hs, cinp)        rows just after the tile                (bf16)
        # w_ref  : (ks*ks, cinp, coutp) conv weights                            (bf16)
        # mk_ref : (tm, 1)              1.0 on valid output rows, 0.0 elsewhere (f32)
        # y_ref  : (tm, coutp)          conv output tile                        (f32)
        # st_ref : (1, 8, coutp)        row 0 = masked sum, row 1 = masked sumsq(f32)
        xwin = jnp.concatenate([lo_ref[0], xm_ref[...], hi_ref[0]], axis=0)

        acc = None
        for dy in range(ks):
            for dx in range(ks):
                off = hs + (dy - pad) * Wp + (dx - pad)   # static, 0 <= off <= 2*hs
                lhs = xwin[off:off + tm, :]
                term = jnp.dot(lhs, w_ref[dy * ks + dx],
                               preferred_element_type=jnp.float32)
                acc = term if acc is None else acc + term

        y_ref[...] = acc

        # Masked BN partial statistics (cheap VPU/XLU work under the MXU).
        m = mk_ref[...]                                   # (tm, 1)
        am = acc * m
        s = jnp.sum(am, axis=0, keepdims=True)            # (1, coutp)
        ssq = jnp.sum(am * acc, axis=0, keepdims=True)    # mask in {0,1}
        st_ref[0] = jnp.concatenate(
            [s, ssq, jnp.zeros((6, coutp), jnp.float32)], axis=0)

    return kernel


def _bn_apply_kernel(y_ref, scale_ref, shift_ref, o_ref):
    # Element-wise affine normalization: y * scale + shift (per channel), in place.
    o_ref[...] = y_ref[...] * scale_ref[...] + shift_ref[...]


# ------------------------------ host wrapper ------------------------------- #

def conv_bn_relu_forward(x_nchw, weight, bias, gamma, beta, *,
                         ks=3, stride=1, padding=1, dilation=1,
                         eps=1e-5, target_rows=512, out_layout="NCHW"):
    """Forward pass of ConvBNReLU (conv + train-mode batch norm, no activation)."""
    # Conv bias is exactly cancelled by train-mode BN's batch-mean subtraction
    # (mean shifts by the same constant, variance unchanged) -> dead work.
    del bias
    assert stride == 1 and dilation == 1, "kernel specialized to stride=1, dilation=1"
    assert ks >= 2 and 2 * padding == ks - 1, "kernel specialized to 'same' convolution"

    N, Cin, H, W = x_nchw.shape
    Cout = weight.shape[0]
    p = padding
    Hp, Wp = H + 2 * p, W + 2 * p

    cinp = _round_up(Cin, 8)        # sublane-aligned contraction dim
    coutp = _round_up(Cout, 128)    # lane-dense output stores / full MXU columns

    Nf = N * Hp * Wp                # flat rows of padded input (incl. garbage border rows)
    M = N * H * W                   # number of valid output pixels (for BN stats)

    hs = _round_up(p * (Wp + 1), 32)              # halo rows (max flat-row shift), bf16-aligned
    n_tiles = max(1, -(-Nf // target_rows))
    tm = max(hs, _round_up(-(-Nf // n_tiles), 32))
    Mpad = n_tiles * tm
    assert hs <= tm and tm % 32 == 0 and hs % 32 == 0

    # ---- input prep: NCHW -> padded NHWC -> flat (Mpad, cinp) bf16 + halos ----
    x = jnp.transpose(x_nchw, (0, 2, 3, 1)).astype(jnp.float32)          # NHWC
    x = jnp.pad(x, ((0, 0), (p, p), (p, p), (0, cinp - Cin)))            # spatial + channel pad
    xflat = x.reshape(Nf, cinp).astype(jnp.bfloat16)
    xflat_m = jnp.pad(xflat, ((0, Mpad - Nf), (0, 0)))                   # (Mpad, cinp)

    zero_bf16 = jnp.zeros((hs, cinp), jnp.bfloat16)
    halo_lo = jnp.concatenate([zero_bf16, xflat_m], axis=0)[:Mpad]
    halo_lo = halo_lo.reshape(n_tiles, tm, cinp)[:, :hs]                 # rows before each tile
    halo_hi = jnp.concatenate(
        [xflat_m, jnp.zeros((tm, cinp), jnp.bfloat16)], axis=0)[tm:tm + Mpad]
    halo_hi = halo_hi.reshape(n_tiles, tm, cinp)[:, :hs]                 # rows after each tile

    # Validity mask over flat rows (1.0 on real output pixels, 0.0 on border/pad rows).
    mask = jnp.pad(jnp.ones((N, H, W), jnp.float32), ((0, 0), (p, p), (p, p)))
    mask = jnp.pad(mask.reshape(Nf, 1), ((0, Mpad - Nf), (0, 0)))        # (Mpad, 1)

    # ---- weights: (Cout, Cin, kh, kw) -> (kh*kw, cinp, coutp), bf16 ----
    wk = jnp.transpose(weight, (2, 3, 1, 0)).astype(jnp.float32)
    wk = jnp.pad(wk, ((0, 0), (0, 0), (0, cinp - Cin), (0, coutp - Cout)))
    wk = wk.reshape(ks * ks, cinp, coutp).astype(jnp.bfloat16)

    cparams = pltpu.CompilerParams(dimension_semantics=("parallel",),
                                   vmem_limit_bytes=48 * 1024 * 1024)

    # ---- fused conv (9 shifted matmuls) + BN partial statistics ----
    y, stats = pl.pallas_call(
        _make_conv_stats_kernel(ks, p, Wp, hs, tm, cinp, coutp),
        out_shape=(jax.ShapeDtypeStruct((Mpad, coutp), jnp.float32),
                   jax.ShapeDtypeStruct((n_tiles, 8, coutp), jnp.float32)),
        grid_spec=pltpu.PrefetchScalarGridSpec(
            num_scalar_prefetch=0,
            grid=(n_tiles,),
            in_specs=[
                pl.BlockSpec((tm, cinp), lambda i: (i, 0)),
                pl.BlockSpec((1, hs, cinp), lambda i: (i, 0, 0)),
                pl.BlockSpec((1, hs, cinp), lambda i: (i, 0, 0)),
                pl.BlockSpec((ks * ks, cinp, coutp), lambda i: (0, 0, 0)),
                pl.BlockSpec((tm, 1), lambda i: (i, 0)),
            ],
            out_specs=[
                pl.BlockSpec((tm, coutp), lambda i: (i, 0)),
                pl.BlockSpec((1, 8, coutp), lambda i: (i, 0, 0)),
            ]),
        compiler_params=cparams,
    )(xflat_m, halo_lo, halo_hi, wk, mask)

    # ---- finish BN statistics on host (tiny (n_tiles, coutp) reduction) ----
    s = jnp.sum(stats[:, 0, :], axis=0)
    ssq = jnp.sum(stats[:, 1, :], axis=0)
    mean = s / M
    # E[y^2] - mean^2 (biased variance, train-mode BN).  Fine precision-wise here
    # since the conv has no effective bias and inputs are roughly centered.
    var = ssq / M - mean * mean
    gamma_p = jnp.pad(gamma.astype(jnp.float32), (0, coutp - Cout))
    beta_p = jnp.pad(beta.astype(jnp.float32), (0, coutp - Cout))
    scale_v = gamma_p * jax.lax.rsqrt(var + eps)     # padded channels: gamma=0 -> 0
    shift_v = beta_p - mean * scale_v
    scale = scale_v.reshape(1, coutp)
    shift = shift_v.reshape(1, coutp)

    # ---- BN apply: element-wise, large tiles, in place on y ----
    tm2 = tm
    while tm2 * 2 <= 4096 and Mpad % (tm2 * 2) == 0:
        tm2 *= 2
    y_norm = pl.pallas_call(
        _bn_apply_kernel,
        out_shape=jax.ShapeDtypeStruct((Mpad, coutp), jnp.float32),
        grid_spec=pltpu.PrefetchScalarGridSpec(
            num_scalar_prefetch=0,
            grid=(Mpad // tm2,),
            in_specs=[
                pl.BlockSpec((tm2, coutp), lambda i: (i, 0)),
                pl.BlockSpec((1, coutp), lambda i: (0, 0)),
                pl.BlockSpec((1, coutp), lambda i: (0, 0)),
            ],
            out_specs=pl.BlockSpec((tm2, coutp), lambda i: (i, 0))),
        compiler_params=cparams,
        input_output_aliases={0: 0},                 # write normalization in place
    )(y, scale, shift)

    # ---- strip border/pad rows + padded channels; optional NCHW transpose ----
    out_nhwc = y_norm[:Nf].reshape(N, Hp, Wp, coutp)[:, p:p + H, p:p + W, :Cout]
    if out_layout == "NHWC":
        return out_nhwc                              # avoids the final layout pass
    return jnp.transpose(out_nhwc, (0, 3, 1, 2))     # NCHW, module parity


# ------------------------------ parameter init ----------------------------- #

def init_params(key, in_chan, out_chan, ks=3):
    # kaiming_normal_(weight, a=1): gain = sqrt(2/(1+1^2)) = 1, std = 1/sqrt(fan_in)
    fan_in = in_chan * ks * ks
    std = 1.0 / jnp.sqrt(jnp.float32(fan_in))
    kw, _ = jax.random.split(key)
    weight = jax.random.normal(kw, (out_chan, in_chan, ks, ks), jnp.float32) * std
    bias = jnp.zeros((out_chan,), jnp.float32)     # constant_(bias, 0)
    gamma = jnp.ones((out_chan,), jnp.float32)     # BatchNorm2d default affine
    beta = jnp.zeros((out_chan,), jnp.float32)
    return weight, bias, gamma, beta


if __name__ == "__main__":
    key = jax.random.PRNGKey(0)
    kx, kp = jax.random.split(key)

    N, Cin, H, W = 2, 4, 16, 16
    Cout = 8

    x = jax.random.normal(kx, (N, Cin, H, W), jnp.float32)
    weight, bias, gamma, beta = init_params(kp, Cin, Cout, ks=3)

    fwd = jax.jit(functools.partial(conv_bn_relu_forward, ks=3, stride=1,
                                    padding=1, dilation=1))
    out = fwd(x, weight, bias, gamma, beta)
    jax.block_until_ready(out)
    assert out.shape == (N, Cout, H, W)

    # Light numerical sanity check vs a pure-JAX f32 reference (loose tolerance
    # to allow for bf16 matmul operands).
    def reference(x, weight, bias, gamma, beta, eps=1e-5):
        y = jax.lax.conv_general_dilated(
            x, weight, window_strides=(1, 1), padding=((1, 1), (1, 1)),
            dimension_numbers=("NCHW", "OIHW", "NCHW"))
        y = y + bias[None, :, None, None]
        mean = jnp.mean(y, axis=(0, 2, 3), keepdims=True)
        var = jnp.var(y, axis=(0, 2, 3), keepdims=True)   # biased, train-mode BN
        return (gamma[None, :, None, None] * (y - mean)
                * jax.lax.rsqrt(var + eps) + beta[None, :, None, None])

    ref = reference(x, weight, bias, gamma, beta)
    max_err = float(jnp.max(jnp.abs(out - ref)))
    assert max_err < 0.1, f"numerical mismatch vs reference: {max_err}"

    print("KERNEL_OK")
</pallas_src>

<mosaic_0001>
module attributes {stable_mosaic.version = 11 : i64} {
  func.func @_bn_apply_kernel(%arg0: i32, %arg1: memref<704x128xf32, #tpu.memory_space<vmem>>, %arg2: memref<1x128xf32, #tpu.memory_space<vmem>>, %arg3: memref<1x128xf32, #tpu.memory_space<vmem>>, %arg4: memref<704x128xf32, #tpu.memory_space<vmem>>) attributes {dimension_semantics = [#tpu.dimension_semantics<parallel>], iteration_bounds = array<i64: 1>, scalar_prefetch = 0 : i64, scratch_operands = 0 : i64, tpu.core_type = #tpu.core_type<tc>, window_params = [{transform_indices = @transform_0, window_bounds = array<i64: 704, 128>}, {pipeline_mode = #tpu.pipeline_mode<synchronous>, transform_indices = @transform_1, window_bounds = array<i64: 1, 128>}, {pipeline_mode = #tpu.pipeline_mode<synchronous>, transform_indices = @transform_2, window_bounds = array<i64: 1, 128>}, {transform_indices = @transform_3, window_bounds = array<i64: 704, 128>}]} {
    %c0 = arith.constant 0 : index
    %c0_0 = arith.constant 0 : index
    %0 = vector.load %arg1[%c0, %c0_0] : memref<704x128xf32, #tpu.memory_space<vmem>>, vector<704x128xf32>
    %c0_1 = arith.constant 0 : index
    %c0_2 = arith.constant 0 : index
    %1 = vector.load %arg2[%c0_1, %c0_2] : memref<1x128xf32, #tpu.memory_space<vmem>>, vector<1x128xf32>
    %2 = vector.broadcast %1 : vector<1x128xf32> to vector<704x128xf32>
    %3 = arith.mulf %0, %2 : vector<704x128xf32>
    %c0_3 = arith.constant 0 : index
    %c0_4 = arith.constant 0 : index
    %4 = vector.load %arg3[%c0_3, %c0_4] : memref<1x128xf32, #tpu.memory_space<vmem>>, vector<1x128xf32>
    %5 = vector.broadcast %4 : vector<1x128xf32> to vector<704x128xf32>
    %6 = arith.addf %3, %5 : vector<704x128xf32>
    %c0_5 = arith.constant 0 : index
    %c0_6 = arith.constant 0 : index
    %7 = vector.load %arg4[%c0_5, %c0_6] : memref<704x128xf32, #tpu.memory_space<vmem>>, vector<704x128xf32>
    tpu.vector_store %arg4[%c0_5, %c0_6], %6 {strides = array<i32>} : memref<704x128xf32, #tpu.memory_space<vmem>>, vector<704x128xf32>,
    return
  }
  func.func @transform_0(%arg0: i32) -> (i32, i32) {
    %c0_i32 = arith.constant 0 : i32
    %c0_i32_0 = arith.constant 0 : i32
    return %arg0, %c0_i32 : i32, i32
  }
  func.func @transform_1(%arg0: i32) -> (i32, i32) {
    %c0_i32 = arith.constant 0 : i32
    %c0_i32_0 = arith.constant 0 : i32
    %c0_i32_1 = arith.constant 0 : i32
    return %c0_i32, %c0_i32_0 : i32, i32
  }
  func.func @transform_2(%arg0: i32) -> (i32, i32) {
    %c0_i32 = arith.constant 0 : i32
    %c0_i32_0 = arith.constant 0 : i32
    %c0_i32_1 = arith.constant 0 : i32
    return %c0_i32, %c0_i32_0 : i32, i32
  }
  func.func @transform_3(%arg0: i32) -> (i32, i32) {
    %c0_i32 = arith.constant 0 : i32
    %c0_i32_0 = arith.constant 0 : i32
    return %arg0, %c0_i32 : i32, i32
  }
}

module attributes {stable_mosaic.version = 11 : i64} {
  func.func @kernel(%arg0: i32, %arg1: memref<352x8xbf16, #tpu.memory_space<vmem>>, %arg2: memref<1x32x8xbf16, #tpu.memory_space<vmem>>, %arg3: memref<1x32x8xbf16, #tpu.memory_space<vmem>>, %arg4: memref<9x8x128xbf16, #tpu.memory_space<vmem>>, %arg5: memref<352x1xf32, #tpu.memory_space<vmem>>, %arg6: memref<352x128xf32, #tpu.memory_space<vmem>>, %arg7: memref<1x8x128xf32, #tpu.memory_space<vmem>>) attributes {dimension_semantics = [#tpu.dimension_semantics<parallel>], iteration_bounds = array<i64: 2>, scalar_prefetch = 0 : i64, scratch_operands = 0 : i64, tpu.core_type = #tpu.core_type<tc>, window_params = [{transform_indices = @transform_0, window_bounds = array<i64: 352, 8>}, {transform_indices = @transform_1, window_bounds = array<i64: 1, 32, 8>}, {transform_indices = @transform_2, window_bounds = array<i64: 1, 32, 8>}, {pipeline_mode = #tpu.pipeline_mode<synchronous>, transform_indices = @transform_3, window_bounds = array<i64: 9, 8, 128>}, {transform_indices = @transform_4, window_bounds = array<i64: 352, 1>}, {transform_indices = @transform_5, window_bounds = array<i64: 352, 128>}, {transform_indices = @transform_6, window_bounds = array<i64: 1, 8, 128>}]} {
    %c0 = arith.constant 0 : index
    %c0_0 = arith.constant 0 : index
    %c0_1 = arith.constant 0 : index
    %0 = vector.load %arg2[%c0, %c0_0, %c0_1] : memref<1x32x8xbf16, #tpu.memory_space<vmem>>, vector<1x32x8xbf16>
    %1 = vector.shape_cast %0 : vector<1x32x8xbf16> to vector<32x8xbf16>
    %c0_2 = arith.constant 0 : index
    %c0_3 = arith.constant 0 : index
    %2 = vector.load %arg1[%c0_2, %c0_3] : memref<352x8xbf16, #tpu.memory_space<vmem>>, vector<352x8xbf16>
    %c0_4 = arith.constant 0 : index
    %c0_5 = arith.constant 0 : index
    %c0_6 = arith.constant 0 : index
    %3 = vector.load %arg3[%c0_4, %c0_5, %c0_6] : memref<1x32x8xbf16, #tpu.memory_space<vmem>>, vector<1x32x8xbf16>
    %4 = vector.shape_cast %3 : vector<1x32x8xbf16> to vector<32x8xbf16>
    %5 = tpu.concatenate %1, %2, %4 in 0 : vector<32x8xbf16>, vector<352x8xbf16>, vector<32x8xbf16> -> vector<416x8xbf16>
    %6 = vector.extract_strided_slice %5 {offsets = [13, 0], sizes = [352, 8], strides = [1, 1]} : vector<416x8xbf16> to vector<352x8xbf16>
    %c0_7 = arith.constant 0 : index
    %c0_8 = arith.constant 0 : index
    %c0_9 = arith.constant 0 : index
    %7 = vector.load %arg4[%c0_7, %c0_8, %c0_9] : memref<9x8x128xbf16, #tpu.memory_space<vmem>>, vector<1x8x128xbf16>
    %8 = vector.shape_cast %7 : vector<1x8x128xbf16> to vector<8x128xbf16>
    %cst = arith.constant dense<0.000000e+00> : vector<352x128xf32>
    %9 = tpu.matmul %6, %8, %cst {dimension_numbers = #tpu.dot_dimension_numbers<[1], [0], [0], [1], [0, 0, 1, 1], [], []>} : vector<352x8xbf16>, vector<8x128xbf16>, vector<352x128xf32> -> vector<352x128xf32>
    %10 = vector.extract_strided_slice %5 {offsets = [14, 0], sizes = [352, 8], strides = [1, 1]} : vector<416x8xbf16> to vector<352x8xbf16>
    %c1 = arith.constant 1 : index
    %c0_10 = arith.constant 0 : index
    %c0_11 = arith.constant 0 : index
    %11 = vector.load %arg4[%c1, %c0_10, %c0_11] : memref<9x8x128xbf16, #tpu.memory_space<vmem>>, vector<1x8x128xbf16>
    %12 = vector.shape_cast %11 : vector<1x8x128xbf16> to vector<8x128xbf16>
    %cst_12 = arith.constant dense<0.000000e+00> : vector<352x128xf32>
    %13 = tpu.matmul %10, %12, %cst_12 {dimension_numbers = #tpu.dot_dimension_numbers<[1], [0], [0], [1], [0, 0, 1, 1], [], []>} : vector<352x8xbf16>, vector<8x128xbf16>, vector<352x128xf32> -> vector<352x128xf32>
    %14 = arith.addf %9, %13 : vector<352x128xf32>
    %15 = vector.extract_strided_slice %5 {offsets = [15, 0], sizes = [352, 8], strides = [1, 1]} : vector<416x8xbf16> to vector<352x8xbf16>
    %c2 = arith.constant 2 : index
    %c0_13 = arith.constant 0 : index
    %c0_14 = arith.constant 0 : index
    %16 = vector.load %arg4[%c2, %c0_13, %c0_14] : memref<9x8x128xbf16, #tpu.memory_space<vmem>>, vector<1x8x128xbf16>
    %17 = vector.shape_cast %16 : vector<1x8x128xbf16> to vector<8x128xbf16>
    %cst_15 = arith.constant dense<0.000000e+00> : vector<352x128xf32>
    %18 = tpu.matmul %15, %17, %cst_15 {dimension_numbers = #tpu.dot_dimension_numbers<[1], [0], [0], [1], [0, 0, 1, 1], [], []>} : vector<352x8xbf16>, vector<8x128xbf16>, vector<352x128xf32> -> vector<352x128xf32>
    %19 = arith.addf %14, %18 : vector<352x128xf32>
    %20 = vector.extract_strided_slice %5 {offsets = [31, 0], sizes = [352, 8], strides = [1, 1]} : vector<416x8xbf16> to vector<352x8xbf16>
    %c3 = arith.constant 3 : index
    %c0_16 = arith.constant 0 : index
    %c0_17 = arith.constant 0 : index
    %21 = vector.load %arg4[%c3, %c0_16, %c0_17] : memref<9x8x128xbf16, #tpu.memory_space<vmem>>, vector<1x8x128xbf16>
    %22 = vector.shape_cast %21 : vector<1x8x128xbf16> to vector<8x128xbf16>
    %cst_18 = arith.constant dense<0.000000e+00> : vector<352x128xf32>
    %23 = tpu.matmul %20, %22, %cst_18 {dimension_numbers = #tpu.dot_dimension_numbers<[1], [0], [0], [1], [0, 0, 1, 1], [], []>} : vector<352x8xbf16>, vector<8x128xbf16>, vector<352x128xf32> -> vector<352x128xf32>
    %24 = arith.addf %19, %23 : vector<352x128xf32>
    %25 = vector.extract_strided_slice %5 {offsets = [32, 0], sizes = [352, 8], strides = [1, 1]} : vector<416x8xbf16> to vector<352x8xbf16>
    %c4 = arith.constant 4 : index
    %c0_19 = arith.constant 0 : index
    %c0_20 = arith.constant 0 : index
    %26 = vector.load %arg4[%c4, %c0_19, %c0_20] : memref<9x8x128xbf16, #tpu.memory_space<vmem>>, vector<1x8x128xbf16>
    %27 = vector.shape_cast %26 : vector<1x8x128xbf16> to vector<8x128xbf16>
    %cst_21 = arith.constant dense<0.000000e+00> : vector<352x128xf32>
    %28 = tpu.matmul %25, %27, %cst_21 {dimension_numbers = #tpu.dot_dimension_numbers<[1], [0], [0], [1], [0, 0, 1, 1], [], []>} : vector<352x8xbf16>, vector<8x128xbf16>, vector<352x128xf32> -> vector<352x128xf32>
    %29 = arith.addf %24, %28 : vector<352x128xf32>
    %30 = vector.extract_strided_slice %5 {offsets = [33, 0], sizes = [352, 8], strides = [1, 1]} : vector<416x8xbf16> to vector<352x8xbf16>
    %c5 = arith.constant 5 : index
    %c0_22 = arith.constant 0 : index
    %c0_23 = arith.constant 0 : index
    %31 = vector.load %arg4[%c5, %c0_22, %c0_23] : memref<9x8x128xbf16, #tpu.memory_space<vmem>>, vector<1x8x128xbf16>
    %32 = vector.shape_cast %31 : vector<1x8x128xbf16> to vector<8x128xbf16>
    %cst_24 = arith.constant dense<0.000000e+00> : vector<352x128xf32>
    %33 = tpu.matmul %30, %32, %cst_24 {dimension_numbers = #tpu.dot_dimension_numbers<[1], [0], [0], [1], [0, 0, 1, 1], [], []>} : vector<352x8xbf16>, vector<8x128xbf16>, vector<352x128xf32> -> vector<352x128xf32>
    %34 = arith.addf %29, %33 : vector<352x128xf32>
    %35 = vector.extract_strided_slice %5 {offsets = [49, 0], sizes = [352, 8], strides = [1, 1]} : vector<416x8xbf16> to vector<352x8xbf16>
    %c6 = arith.constant 6 : index
    %c0_25 = arith.constant 0 : index
    %c0_26 = arith.constant 0 : index
    %36 = vector.load %arg4[%c6, %c0_25, %c0_26] : memref<9x8x128xbf16, #tpu.memory_space<vmem>>, vector<1x8x128xbf16>
    %37 = vector.shape_cast %36 : vector<1x8x128xbf16> to vector<8x128xbf16>
    %cst_27 = arith.constant dense<0.000000e+00> : vector<352x128xf32>
    %38 = tpu.matmul %35, %37, %cst_27 {dimension_numbers = #tpu.dot_dimension_numbers<[1], [0], [0], [1], [0, 0, 1, 1], [], []>} : vector<352x8xbf16>, vector<8x128xbf16>, vector<352x128xf32> -> vector<352x128xf32>
    %39 = arith.addf %34, %38 : vector<352x128xf32>
    %40 = vector.extract_strided_slice %5 {offsets = [50, 0], sizes = [352, 8], strides = [1, 1]} : vector<416x8xbf16> to vector<352x8xbf16>
    %c7 = arith.constant 7 : index
    %c0_28 = arith.constant 0 : index
    %c0_29 = arith.constant 0 : index
    %41 = vector.load %arg4[%c7, %c0_28, %c0_29] : memref<9x8x128xbf16, #tpu.memory_space<vmem>>, vector<1x8x128xbf16>
    %42 = vector.shape_cast %41 : vector<1x8x128xbf16> to vector<8x128xbf16>
    %cst_30 = arith.constant dense<0.000000e+00> : vector<352x128xf32>
    %43 = tpu.matmul %40, %42, %cst_30 {dimension_numbers = #tpu.dot_dimension_numbers<[1], [0], [0], [1], [0, 0, 1, 1], [], []>} : vector<352x8xbf16>, vector<8x128xbf16>, vector<352x128xf32> -> vector<352x128xf32>
    %44 = arith.addf %39, %43 : vector<352x128xf32>
    %45 = vector.extract_strided_slice %5 {offsets = [51, 0], sizes = [352, 8], strides = [1, 1]} : vector<416x8xbf16> to vector<352x8xbf16>
    %c8 = arith.constant 8 : index
    %c0_31 = arith.constant 0 : index
    %c0_32 = arith.constant 0 : index
    %46 = vector.load %arg4[%c8, %c0_31, %c0_32] : memref<9x8x128xbf16, #tpu.memory_space<vmem>>, vector<1x8x128xbf16>
    %47 = vector.shape_cast %46 : vector<1x8x128xbf16> to vector<8x128xbf16>
    %cst_33 = arith.constant dense<0.000000e+00> : vector<352x128xf32>
    %48 = tpu.matmul %45, %47, %cst_33 {dimension_numbers = #tpu.dot_dimension_numbers<[1], [0], [0], [1], [0, 0, 1, 1], [], []>} : vector<352x8xbf16>, vector<8x128xbf16>, vector<352x128xf32> -> vector<352x128xf32>
    %49 = arith.addf %44, %48 : vector<352x128xf32>
    %c0_34 = arith.constant 0 : index
    %c0_35 = arith.constant 0 : index
    %50 = vector.load %arg6[%c0_34, %c0_35] : memref<352x128xf32, #tpu.memory_space<vmem>>, vector<352x128xf32>
    tpu.vector_store %arg6[%c0_34, %c0_35], %49 {strides = array<i32>} : memref<352x128xf32, #tpu.memory_space<vmem>>, vector<352x128xf32>,
    %c0_36 = arith.constant 0 : index
    %c0_37 = arith.constant 0 : index
    %51 = vector.load %arg5[%c0_36, %c0_37] : memref<352x1xf32, #tpu.memory_space<vmem>>, vector<352x1xf32>
    %52 = vector.broadcast %51 : vector<352x1xf32> to vector<352x128xf32>
    %53 = arith.mulf %49, %52 : vector<352x128xf32>
    %cst_38 = arith.constant dense<0.000000e+00> : vector<128xf32>
    %54 = vector.multi_reduction <add>, %53, %cst_38 [0] : vector<352x128xf32> to vector<128xf32>
    %55 = vector.shape_cast %54 : vector<128xf32> to vector<1x128xf32>
    %56 = arith.mulf %53, %49 : vector<352x128xf32>
    %cst_39 = arith.constant dense<0.000000e+00> : vector<128xf32>
    %57 = vector.multi_reduction <add>, %56, %cst_39 [0] : vector<352x128xf32> to vector<128xf32>
    %58 = vector.shape_cast %57 : vector<128xf32> to vector<1x128xf32>
    %cst_40 = arith.constant 0.000000e+00 : f32
    %59 = vector.broadcast %cst_40 : f32 to vector<6x128xf32>
    %60 = tpu.concatenate %55, %58, %59 in 0 : vector<1x128xf32>, vector<1x128xf32>, vector<6x128xf32> -> vector<8x128xf32>
    %c0_41 = arith.constant 0 : index
    %c0_42 = arith.constant 0 : index
    %c0_43 = arith.constant 0 : index
    %61 = vector.load %arg7[%c0_41, %c0_42, %c0_43] : memref<1x8x128xf32, #tpu.memory_space<vmem>>, vector<1x8x128xf32>
    %62 = vector.shape_cast %61 : vector<1x8x128xf32> to vector<8x128xf32>
    %63 = vector.shape_cast %60 : vector<8x128xf32> to vector<1x8x128xf32>
    tpu.vector_store %arg7[%c0_41, %c0_42, %c0_43], %63 {strides = array<i32>} : memref<1x8x128xf32, #tpu.memory_space<vmem>>, vector<1x8x128xf32>,
    return
  }
  func.func @transform_0(%arg0: i32) -> (i32, i32) {
    %c0_i32 = arith.constant 0 : i32
    %c0_i32_0 = arith.constant 0 : i32
    return %arg0, %c0_i32 : i32, i32
  }
  func.func @transform_1(%arg0: i32) -> (i32, i32, i32) {
    %c0_i32 = arith.constant 0 : i32
    %c0_i32_0 = arith.constant 0 : i32
    %c0_i32_1 = arith.constant 0 : i32
    return %arg0, %c0_i32, %c0_i32_0 : i32, i32, i32
  }
  func.func @transform_2(%arg0: i32) -> (i32, i32, i32) {
    %c0_i32 = arith.constant 0 : i32
    %c0_i32_0 = arith.constant 0 : i32
    %c0_i32_1 = arith.constant 0 : i32
    return %arg0, %c0_i32, %c0_i32_0 : i32, i32, i32
  }
  func.func @transform_3(%arg0: i32) -> (i32, i32, i32) {
    %c0_i32 = arith.constant 0 : i32
    %c0_i32_0 = arith.constant 0 : i32
    %c0_i32_1 = arith.constant 0 : i32
    %c0_i32_2 = arith.constant 0 : i32
    return %c0_i32, %c0_i32_0, %c0_i32_1 : i32, i32, i32
  }
  func.func @transform_4(%arg0: i32) -> (i32, i32) {
    %c0_i32 = arith.constant 0 : i32
    %c0_i32_0 = arith.constant 0 : i32
    return %arg0, %c0_i32 : i32, i32
  }
  func.func @transform_5(%arg0: i32) -> (i32, i32) {
    %c0_i32 = arith.constant 0 : i32
    %c0_i32_0 = arith.constant 0 : i32
    return %arg0, %c0_i32 : i32, i32
  }
  func.func @transform_6(%arg0: i32) -> (i32, i32, i32) {
    %c0_i32 = arith.constant 0 : i32
    %c0_i32_0 = arith.constant 0 : i32
    %c0_i32_1 = arith.constant 0 : i32
    return %arg0, %c0_i32, %c0_i32_0 : i32, i32, i32
  }
}

</mosaic_0001>

<bundles_post_ra>
// kernel: conv_bn_relu_forward.3
= control target key start
LH: loop header
LB: loop body
LE: loop exit
PB: predicated region body
PF: predicated region fallthrough
CT: control target
= control target key end

     0   :  { %s1174_s0 = inlined_call_operand.vmem [shape: f32[704,128], index: 0, kind: input, shape index: {}, may-alias: {0,3}]   ;;  %s1175_s1 = inlined_call_operand.vmem [shape: f32[1,128], index: 1, kind: input, shape index: {}]   ;;  %s1176_s2 = inlined_call_operand.vmem [shape: f32[1,128], index: 2, kind: input, shape index: {}]   ;;  %s1177_s3 = inlined_call_operand.vmem [shape: f32[704,128], index: 3, kind: output, shape index: {}, may-alias: {0,3}]  }
   0x1   :  { %v14_v0 = vld [vmem:[%s1174_s0] sm:$0xff]  ;;  %v15_v3 = vld [vmem:[%s1174_s0 + $0x8] sm:$0xff]  ;;  %v16_v6 = vld [vmem:[%s1174_s0 + $0x10] sm:$0xff] }
   0x2   :  { %v406_v1 = vld [vmem:[%s1175_s1] ss:$0 sm:$0xff]  ;;  %v17_v7 = vld [vmem:[%s1174_s0 + $0x18] sm:$0xff]  ;;  %v19_v12 = vld [vmem:[%s1174_s0 + $0x28] sm:$0xff] }
   0x3   :  { %v411_v2 = vld [vmem:[%s1176_s2] ss:$0 sm:$0xff]  ;;  %v106_v4 = vmul.f32 %v406_v1, %v14_v0  ;;  %v107_v5 = vmul.f32 %v406_v1, %v15_v3  ;;  %v108_v9 = vmul.f32 %v406_v1, %v16_v6  ;;  %v109_v10 = vmul.f32 %v406_v1, %v17_v7  ;;  %v20_v13 = vld [vmem:[%s1174_s0 + $0x30] sm:$0xff]  ;;  %v21_v14 = vld [vmem:[%s1174_s0 + $0x38] sm:$0xff] }
   0x4   :  { %v18_v8 = vld [vmem:[%s1174_s0 + $0x20] sm:$0xff]  ;;  %v111_v17 = vmul.f32 %v406_v1, %v19_v12  ;;  %v112_v18 = vmul.f32 %v406_v1, %v20_v13  ;;  %v23_v20 = vld [vmem:[%s1174_s0 + $0x48] sm:$0xff]  ;;  %v113_v23 = vmul.f32 %v406_v1, %v21_v14  ;;  %v24_v24 = vld [vmem:[%s1174_s0 + $0x50] sm:$0xff] }
   0x5   :  { %v110_v11 = vmul.f32 %v406_v1, %v18_v8  ;;  %v198_v15 = vadd.f32 %v411_v2, %v106_v4  ;;  %v199_v16 = vadd.f32 %v411_v2, %v107_v5  ;;  %v22_v19 = vld [vmem:[%s1174_s0 + $0x40] sm:$0xff]  ;;  %v200_v21 = vadd.f32 %v411_v2, %v108_v9 }
   0x6   :  { %v201_v22 = vadd.f32 %v411_v2, %v109_v10  ;;  %v114_v26 = vmul.f32 %v406_v1, %v22_v19  ;;  %v203_v28 = vadd.f32 %v411_v2, %v111_v17  ;;  %v115_v29 = vmul.f32 %v406_v1, %v23_v20 }
   0x7   :  { %286 = vst [vmem:[%s1177_s3] sm:$0xff] %v198_v15  ;;  %v202_v25 = vadd.f32 %v411_v2, %v110_v11  ;;  %v204_v31 = vadd.f32 %v411_v2, %v112_v18  ;;  %v116_v32 = vmul.f32 %v406_v1, %v24_v24  ;;  %v205_v34 = vadd.f32 %v411_v2, %v113_v23 }
   0x8   :  { %v206_v37 = vadd.f32 %v411_v2, %v114_v26  ;;  %v207_v40 = vadd.f32 %v411_v2, %v115_v29 }
   0x9   :  { %v208_v43 = vadd.f32 %v411_v2, %v116_v32 }
   0xe   :  { %v25_v27 = vld [vmem:[%s1174_s0 + $0x58] sm:$0xff] }
   0xf   :  { %287 = vst [vmem:[%s1177_s3 + $0x8] sm:$0xff] %v199_v16  ;;  %v117_v35 = vmul.f32 %v406_v1, %v25_v27 }
  0x11   :  { %v209_v46 = vadd.f32 %v411_v2, %v117_v35 }
  0x16   :  { %v26_v30 = vld [vmem:[%s1174_s0 + $0x60] sm:$0xff] }
  0x17   :  { %288 = vst [vmem:[%s1177_s3 + $0x10] sm:$0xff] %v200_v21  ;;  %v118_v38 = vmul.f32 %v406_v1, %v26_v30 }
  0x19   :  { %v210_v49 = vadd.f32 %v411_v2, %v118_v38 }
  0x1e   :  { %v27_v33 = vld [vmem:[%s1174_s0 + $0x68] sm:$0xff] }
  0x1f   :  { %289 = vst [vmem:[%s1177_s3 + $0x18] sm:$0xff] %v201_v22  ;;  %v119_v41 = vmul.f32 %v406_v1, %v27_v33 }
  0x21   :  { %v211_v52 = vadd.f32 %v411_v2, %v119_v41 }
  0x26   :  { %v28_v36 = vld [vmem:[%s1174_s0 + $0x70] sm:$0xff] }
  0x27   :  { %290 = vst [vmem:[%s1177_s3 + $0x20] sm:$0xff] %v202_v25  ;;  %v120_v44 = vmul.f32 %v406_v1, %v28_v36 }
  0x29   :  { %v212_v55 = vadd.f32 %v411_v2, %v120_v44 }
  0x2e   :  { %v29_v39 = vld [vmem:[%s1174_s0 + $0x78] sm:$0xff] }
  0x2f   :  { %291 = vst [vmem:[%s1177_s3 + $0x28] sm:$0xff] %v203_v28  ;;  %v121_v47 = vmul.f32 %v406_v1, %v29_v39 }
  0x31   :  { %v213_v58 = vadd.f32 %v411_v2, %v121_v47 }
  0x36   :  { %v30_v42 = vld [vmem:[%s1174_s0 + $0x80] sm:$0xff] }
  0x37   :  { %292 = vst [vmem:[%s1177_s3 + $0x30] sm:$0xff] %v204_v31  ;;  %v122_v50 = vmul.f32 %v406_v1, %v30_v42 }
  0x39   :  { %v214_v61 = vadd.f32 %v411_v2, %v122_v50 }
  0x3e   :  { %v31_v45 = vld [vmem:[%s1174_s0 + $0x88] sm:$0xff] }
  0x3f   :  { %293 = vst [vmem:[%s1177_s3 + $0x38] sm:$0xff] %v205_v34  ;;  %v123_v53 = vmul.f32 %v406_v1, %v31_v45 }
  0x41   :  { %v215_v0 = vadd.f32 %v411_v2, %v123_v53 }
  0x46   :  { %v32_v48 = vld [vmem:[%s1174_s0 + $0x90] sm:$0xff] }
  0x47   :  { %294 = vst [vmem:[%s1177_s3 + $0x40] sm:$0xff] %v206_v37  ;;  %v124_v56 = vmul.f32 %v406_v1, %v32_v48 }
  0x49   :  { %v216_v5 = vadd.f32 %v411_v2, %v124_v56 }
  0x4e   :  { %v33_v51 = vld [vmem:[%s1174_s0 + $0x98] sm:$0xff] }
  0x4f   :  { %295 = vst [vmem:[%s1177_s3 + $0x48] sm:$0xff] %v207_v40  ;;  %v125_v59 = vmul.f32 %v406_v1, %v33_v51 }
  0x51   :  { %v217_v8 = vadd.f32 %v411_v2, %v125_v59 }
  0x56   :  { %v34_v54 = vld [vmem:[%s1174_s0 + $0xa0] sm:$0xff] }
  0x57   :  { %296 = vst [vmem:[%s1177_s3 + $0x50] sm:$0xff] %v208_v43  ;;  %v126_v62 = vmul.f32 %v406_v1, %v34_v54 }
  0x59   :  { %v218_v11 = vadd.f32 %v411_v2, %v126_v62 }
  0x5e   :  { %v35_v57 = vld [vmem:[%s1174_s0 + $0xa8] sm:$0xff] }
  0x5f   :  { %297 = vst [vmem:[%s1177_s3 + $0x58] sm:$0xff] %v209_v46  ;;  %v127_v3 = vmul.f32 %v406_v1, %v35_v57 }
  0x61   :  { %v219_v14 = vadd.f32 %v411_v2, %v127_v3 }
  0x66   :  { %v36_v60 = vld [vmem:[%s1174_s0 + $0xb0] sm:$0xff] }
  0x67   :  { %298 = vst [vmem:[%s1177_s3 + $0x60] sm:$0xff] %v210_v49  ;;  %v128_v6 = vmul.f32 %v406_v1, %v36_v60 }
  0x69   :  { %v220_v17 = vadd.f32 %v411_v2, %v128_v6 }
  0x6e   :  { %v37_v63 = vld [vmem:[%s1174_s0 + $0xb8] sm:$0xff] }
  0x6f   :  { %299 = vst [vmem:[%s1177_s3 + $0x68] sm:$0xff] %v211_v52  ;;  %v129_v9 = vmul.f32 %v406_v1, %v37_v63 }
  0x71   :  { %v221_v20 = vadd.f32 %v411_v2, %v129_v9 }
  0x76   :  { %v38_v4 = vld [vmem:[%s1174_s0 + $0xc0] sm:$0xff] }
  0x77   :  { %300 = vst [vmem:[%s1177_s3 + $0x70] sm:$0xff] %v212_v55  ;;  %v130_v12 = vmul.f32 %v406_v1, %v38_v4 }
  0x79   :  { %v222_v23 = vadd.f32 %v411_v2, %v130_v12 }
  0x7e   :  { %v39_v7 = vld [vmem:[%s1174_s0 + $0xc8] sm:$0xff] }
  0x7f   :  { %301 = vst [vmem:[%s1177_s3 + $0x78] sm:$0xff] %v213_v58  ;;  %v131_v15 = vmul.f32 %v406_v1, %v39_v7 }
  0x81   :  { %v223_v26 = vadd.f32 %v411_v2, %v131_v15 }
  0x86   :  { %v40_v10 = vld [vmem:[%s1174_s0 + $0xd0] sm:$0xff] }
  0x87   :  { %302 = vst [vmem:[%s1177_s3 + $0x80] sm:$0xff] %v214_v61  ;;  %v132_v18 = vmul.f32 %v406_v1, %v40_v10 }
  0x89   :  { %v224_v30 = vadd.f32 %v411_v2, %v132_v18 }
  0x8e   :  { %v41_v13 = vld [vmem:[%s1174_s0 + $0xd8] sm:$0xff] }
  0x8f   :  { %303 = vst [vmem:[%s1177_s3 + $0x88] sm:$0xff] %v215_v0  ;;  %v133_v21 = vmul.f32 %v406_v1, %v41_v13 }
  0x91   :  { %v225_v32 = vadd.f32 %v411_v2, %v133_v21 }
  0x96   :  { %v42_v16 = vld [vmem:[%s1174_s0 + $0xe0] sm:$0xff] }
  0x97   :  { %304 = vst [vmem:[%s1177_s3 + $0x90] sm:$0xff] %v216_v5  ;;  %v134_v24 = vmul.f32 %v406_v1, %v42_v16 }
  0x99   :  { %v226_v35 = vadd.f32 %v411_v2, %v134_v24 }
  0x9e   :  { %v43_v19 = vld [vmem:[%s1174_s0 + $0xe8] sm:$0xff] }
  0x9f   :  { %305 = vst [vmem:[%s1177_s3 + $0x98] sm:$0xff] %v217_v8  ;;  %v135_v27 = vmul.f32 %v406_v1, %v43_v19 }
  0xa1   :  { %v227_v40 = vadd.f32 %v411_v2, %v135_v27 }
  0xa6   :  { %v44_v22 = vld [vmem:[%s1174_s0 + $0xf0] sm:$0xff] }
  0xa7   :  { %306 = vst [vmem:[%s1177_s3 + $0xa0] sm:$0xff] %v218_v11  ;;  %v136_v31 = vmul.f32 %v406_v1, %v44_v22 }
  0xa9   :  { %v228_v42 = vadd.f32 %v411_v2, %v136_v31 }
  0xae   :  { %v45_v25 = vld [vmem:[%s1174_s0 + $0xf8] sm:$0xff] }
  0xaf   :  { %307 = vst [vmem:[%s1177_s3 + $0xa8] sm:$0xff] %v219_v14  ;;  %v137_v33 = vmul.f32 %v406_v1, %v45_v25 }
  0xb1   :  { %v229_v47 = vadd.f32 %v411_v2, %v137_v33 }
  0xb6   :  { %v46_v28 = vld [vmem:[%s1174_s0 + $0x100] sm:$0xff]  ;;  %v47_v29 = vld [vmem:[%s1174_s0 + $0x108] sm:$0xff] }
  0xb7   :  { %308 = vst [vmem:[%s1177_s3 + $0xb0] sm:$0xff] %v220_v17  ;;  %v138_v36 = vmul.f32 %v406_v1, %v46_v28  ;;  %v139_v37 = vmul.f32 %v406_v1, %v47_v29 }
  0xb8   :  { %309 = vst [vmem:[%s1177_s3 + $0xb8] sm:$0xff] %v221_v20 }
  0xb9   :  { %v230_v52 = vadd.f32 %v411_v2, %v138_v36  ;;  %v231_v53 = vadd.f32 %v411_v2, %v139_v37 }
  0xbf   :  { %v48_v34 = vld [vmem:[%s1174_s0 + $0x110] sm:$0xff] }
  0xc0   :  { %310 = vst [vmem:[%s1177_s3 + $0xc0] sm:$0xff] %v222_v23  ;;  %v140_v43 = vmul.f32 %v406_v1, %v48_v34 }
  0xc2   :  { %v232_v0 = vadd.f32 %v411_v2, %v140_v43 }
  0xc7   :  { %v49_v38 = vld [vmem:[%s1174_s0 + $0x118] sm:$0xff]  ;;  %v50_v39 = vld [vmem:[%s1174_s0 + $0x120] sm:$0xff] }
  0xc8   :  { %311 = vst [vmem:[%s1177_s3 + $0xc8] sm:$0xff] %v223_v26  ;;  %v141_v48 = vmul.f32 %v406_v1, %v49_v38  ;;  %v142_v49 = vmul.f32 %v406_v1, %v50_v39 }
  0xca   :  { %v233_v8 = vadd.f32 %v411_v2, %v141_v48  ;;  %v234_v14 = vadd.f32 %v411_v2, %v142_v49 }
  0xcf   :  { %v77_v41 = vld [vmem:[%s1174_s0 + $0x1f8] sm:$0xff] }
  0xd0   :  { %312 = vst [vmem:[%s1177_s3 + $0xd0] sm:$0xff] %v224_v30  ;;  %v169_v50 = vmul.f32 %v406_v1, %v77_v41 }
  0xd2   :  { %v712_v61 = vadd.f32 %v411_v2, %v169_v50 }
  0xd7   :  { %v51_v44 = vld [vmem:[%s1174_s0 + $0x128] sm:$0xff]  ;;  %v52_v45 = vld [vmem:[%s1174_s0 + $0x130] sm:$0xff]  ;;  %v78_v46 = vld [vmem:[%s1174_s0 + $0x200] sm:$0xff] }
  0xd8   :  { %313 = vst [vmem:[%s1177_s3 + $0xd8] sm:$0xff] %v225_v32  ;;  %v170_v55 = vmul.f32 %v406_v1, %v78_v46  ;;  %v143_v58 = vmul.f32 %v406_v1, %v51_v44  ;;  %v144_v59 = vmul.f32 %v406_v1, %v52_v45 }
  0xda   :  { %v726_v4 = vadd.f32 %v411_v2, %v170_v55  ;;  %v235_v20 = vadd.f32 %v411_v2, %v143_v58  ;;  %v236_v26 = vadd.f32 %v411_v2, %v144_v59 }
  0xdf   :  { %v79_v51 = vld [vmem:[%s1174_s0 + $0x208] sm:$0xff] }
  0xe0   :  { %314 = vst [vmem:[%s1177_s3 + $0xe0] sm:$0xff] %v226_v35  ;;  %v171_v56 = vmul.f32 %v406_v1, %v79_v51 }
  0xe2   :  { %v729_v5 = vadd.f32 %v411_v2, %v171_v56 }
  0xe7   :  { %v53_v54 = vld [vmem:[%s1174_s0 + $0x138] sm:$0xff]  ;;  %v80_v57 = vld [vmem:[%s1174_s0 + $0x210] sm:$0xff] }
  0xe8   :  { %315 = vst [vmem:[%s1177_s3 + $0xe8] sm:$0xff] %v227_v40  ;;  %v172_v62 = vmul.f32 %v406_v1, %v80_v57  ;;  %v145_v9 = vmul.f32 %v406_v1, %v53_v54 }
  0xea   :  { %v744_v11 = vadd.f32 %v411_v2, %v172_v62  ;;  %v237_v32 = vadd.f32 %v411_v2, %v145_v9 }
  0xef   :  { %v54_v60 = vld [vmem:[%s1174_s0 + $0x140] sm:$0xff]  ;;  %v81_v63 = vld [vmem:[%s1174_s0 + $0x218] sm:$0xff] }
  0xf0   :  { %316 = vst [vmem:[%s1177_s3 + $0xf0] sm:$0xff] %v228_v42  ;;  %v173_v6 = vmul.f32 %v406_v1, %v81_v63  ;;  %v146_v15 = vmul.f32 %v406_v1, %v54_v60 }
  0xf2   :  { %v759_v17 = vadd.f32 %v411_v2, %v173_v6  ;;  %v238_v38 = vadd.f32 %v411_v2, %v146_v15 }
  0xf7   :  { %v55_v3 = vld [vmem:[%s1174_s0 + $0x148] sm:$0xff]  ;;  %v82_v7 = vld [vmem:[%s1174_s0 + $0x220] sm:$0xff] }
  0xf8   :  { %317 = vst [vmem:[%s1177_s3 + $0xf8] sm:$0xff] %v229_v47  ;;  %v174_v12 = vmul.f32 %v406_v1, %v82_v7  ;;  %v147_v21 = vmul.f32 %v406_v1, %v55_v3 }
  0xfa   :  { %v774_v23 = vadd.f32 %v411_v2, %v174_v12  ;;  %v239_v44 = vadd.f32 %v411_v2, %v147_v21 }
  0xff   :  { %v56_v10 = vld [vmem:[%s1174_s0 + $0x150] sm:$0xff]  ;;  %v83_v13 = vld [vmem:[%s1174_s0 + $0x228] sm:$0xff] }
 0x100   :  { %318 = vst [vmem:[%s1177_s3 + $0x100] sm:$0xff] %v230_v52  ;;  %v175_v18 = vmul.f32 %v406_v1, %v83_v13  ;;  %v148_v27 = vmul.f32 %v406_v1, %v56_v10 }
 0x102   :  { %v789_v29 = vadd.f32 %v411_v2, %v175_v18  ;;  %v240_v50 = vadd.f32 %v411_v2, %v148_v27 }
 0x107   :  { %v57_v16 = vld [vmem:[%s1174_s0 + $0x158] sm:$0xff]  ;;  %v84_v19 = vld [vmem:[%s1174_s0 + $0x230] sm:$0xff] }
 0x108   :  { %319 = vst [vmem:[%s1177_s3 + $0x108] sm:$0xff] %v231_v53  ;;  %v176_v24 = vmul.f32 %v406_v1, %v84_v19  ;;  %v149_v33 = vmul.f32 %v406_v1, %v57_v16 }
 0x10a   :  { %v804_v35 = vadd.f32 %v411_v2, %v176_v24  ;;  %v241_v56 = vadd.f32 %v411_v2, %v149_v33 }
 0x10f   :  { %v58_v22 = vld [vmem:[%s1174_s0 + $0x160] sm:$0xff]  ;;  %v85_v25 = vld [vmem:[%s1174_s0 + $0x238] sm:$0xff] }
 0x110   :  { %320 = vst [vmem:[%s1177_s3 + $0x110] sm:$0xff] %v232_v0  ;;  %v177_v30 = vmul.f32 %v406_v1, %v85_v25  ;;  %v150_v39 = vmul.f32 %v406_v1, %v58_v22 }
 0x112   :  { %v819_v41 = vadd.f32 %v411_v2, %v177_v30  ;;  %v242_v63 = vadd.f32 %v411_v2, %v150_v39 }
 0x117   :  { %v59_v28 = vld [vmem:[%s1174_s0 + $0x168] sm:$0xff]  ;;  %v86_v31 = vld [vmem:[%s1174_s0 + $0x240] sm:$0xff] }
 0x118   :  { %321 = vst [vmem:[%s1177_s3 + $0x118] sm:$0xff] %v233_v8  ;;  %v178_v36 = vmul.f32 %v406_v1, %v86_v31  ;;  %v151_v45 = vmul.f32 %v406_v1, %v59_v28 }
 0x11a   :  { %v834_v47 = vadd.f32 %v411_v2, %v178_v36  ;;  %v243_v9 = vadd.f32 %v411_v2, %v151_v45 }
 0x11f   :  { %v60_v34 = vld [vmem:[%s1174_s0 + $0x170] sm:$0xff]  ;;  %v87_v37 = vld [vmem:[%s1174_s0 + $0x248] sm:$0xff] }
 0x120   :  { %322 = vst [vmem:[%s1177_s3 + $0x120] sm:$0xff] %v234_v14  ;;  %v179_v42 = vmul.f32 %v406_v1, %v87_v37  ;;  %v152_v51 = vmul.f32 %v406_v1, %v60_v34 }
 0x122   :  { %v849_v53 = vadd.f32 %v411_v2, %v179_v42  ;;  %v244_v16 = vadd.f32 %v411_v2, %v152_v51 }
 0x127   :  { %v61_v40 = vld [vmem:[%s1174_s0 + $0x178] sm:$0xff]  ;;  %v88_v43 = vld [vmem:[%s1174_s0 + $0x250] sm:$0xff] }
 0x128   :  { %323 = vst [vmem:[%s1177_s3 + $0x128] sm:$0xff] %v235_v20  ;;  %v180_v48 = vmul.f32 %v406_v1, %v88_v43  ;;  %v153_v57 = vmul.f32 %v406_v1, %v61_v40 }
 0x12a   :  { %v864_v59 = vadd.f32 %v411_v2, %v180_v48  ;;  %v245_v24 = vadd.f32 %v411_v2, %v153_v57 }
 0x12f   :  { %v62_v46 = vld [vmem:[%s1174_s0 + $0x180] sm:$0xff]  ;;  %v89_v49 = vld [vmem:[%s1174_s0 + $0x258] sm:$0xff] }
 0x130   :  { %324 = vst [vmem:[%s1177_s3 + $0x130] sm:$0xff] %v236_v26  ;;  %v181_v54 = vmul.f32 %v406_v1, %v89_v49  ;;  %v154_v0 = vmul.f32 %v406_v1, %v62_v46 }
 0x132   :  { %v879_v6 = vadd.f32 %v411_v2, %v181_v54  ;;  %v246_v31 = vadd.f32 %v411_v2, %v154_v0 }
 0x137   :  { %v63_v52 = vld [vmem:[%s1174_s0 + $0x188] sm:$0xff]  ;;  %v90_v55 = vld [vmem:[%s1174_s0 + $0x260] sm:$0xff] }
 0x138   :  { %325 = vst [vmem:[%s1177_s3 + $0x138] sm:$0xff] %v237_v32  ;;  %v182_v60 = vmul.f32 %v406_v1, %v90_v55  ;;  %v155_v10 = vmul.f32 %v406_v1, %v63_v52 }
 0x13a   :  { %v894_v13 = vadd.f32 %v411_v2, %v182_v60 }
 0x13f   :  { %v64_v58 = vld [vmem:[%s1174_s0 + $0x190] sm:$0xff]  ;;  %v91_v62 = vld [vmem:[%s1174_s0 + $0x268] sm:$0xff] }
 0x140   :  { %326 = vst [vmem:[%s1177_s3 + $0x140] sm:$0xff] %v238_v38  ;;  %v183_v7 = vmul.f32 %v406_v1, %v91_v62  ;;  %v156_v18 = vmul.f32 %v406_v1, %v64_v58  ;;  %v247_v38 = vadd.f32 %v411_v2, %v155_v10 }
 0x142   :  { %v909_v20 = vadd.f32 %v411_v2, %v183_v7  ;;  %v248_v45 = vadd.f32 %v411_v2, %v156_v18 }
 0x147   :  { %v65_v3 = vld [vmem:[%s1174_s0 + $0x198] sm:$0xff]  ;;  %v92_v8 = vld [vmem:[%s1174_s0 + $0x270] sm:$0xff] }
 0x148   :  { %327 = vst [vmem:[%s1177_s3 + $0x148] sm:$0xff] %v239_v44  ;;  %v184_v14 = vmul.f32 %v406_v1, %v92_v8  ;;  %v157_v25 = vmul.f32 %v406_v1, %v65_v3 }
 0x14a   :  { %v924_v27 = vadd.f32 %v411_v2, %v184_v14  ;;  %v249_v52 = vadd.f32 %v411_v2, %v157_v25 }
 0x14f   :  { %v66_v12 = vld [vmem:[%s1174_s0 + $0x1a0] sm:$0xff]  ;;  %v93_v15 = vld [vmem:[%s1174_s0 + $0x278] sm:$0xff] }
 0x150   :  { %328 = vst [vmem:[%s1177_s3 + $0x150] sm:$0xff] %v240_v50  ;;  %v185_v21 = vmul.f32 %v406_v1, %v93_v15  ;;  %v158_v32 = vmul.f32 %v406_v1, %v66_v12 }
 0x152   :  { %v939_v34 = vadd.f32 %v411_v2, %v185_v21  ;;  %v250_v60 = vadd.f32 %v411_v2, %v158_v32 }
 0x157   :  { %v67_v19 = vld [vmem:[%s1174_s0 + $0x1a8] sm:$0xff]  ;;  %v94_v22 = vld [vmem:[%s1174_s0 + $0x280] sm:$0xff] }
 0x158   :  { %329 = vst [vmem:[%s1177_s3 + $0x158] sm:$0xff] %v241_v56  ;;  %v186_v28 = vmul.f32 %v406_v1, %v94_v22  ;;  %v159_v39 = vmul.f32 %v406_v1, %v67_v19 }
 0x15a   :  { %v954_v42 = vadd.f32 %v411_v2, %v186_v28  ;;  %v251_v8 = vadd.f32 %v411_v2, %v159_v39 }
 0x15f   :  { %v68_v26 = vld [vmem:[%s1174_s0 + $0x1b0] sm:$0xff]  ;;  %v95_v30 = vld [vmem:[%s1174_s0 + $0x288] sm:$0xff] }
 0x160   :  { %330 = vst [vmem:[%s1177_s3 + $0x160] sm:$0xff] %v242_v63  ;;  %v187_v36 = vmul.f32 %v406_v1, %v95_v30  ;;  %v160_v46 = vmul.f32 %v406_v1, %v68_v26 }
 0x162   :  { %v969_v49 = vadd.f32 %v411_v2, %v187_v36 }
 0x167   :  { %v69_v33 = vld [vmem:[%s1174_s0 + $0x1b8] sm:$0xff]  ;;  %v96_v37 = vld [vmem:[%s1174_s0 + $0x290] sm:$0xff] }
 0x168   :  { %331 = vst [vmem:[%s1177_s3 + $0x168] sm:$0xff] %v243_v9  ;;  %v188_v43 = vmul.f32 %v406_v1, %v96_v37  ;;  %v161_v54 = vmul.f32 %v406_v1, %v69_v33 }
 0x16a   :  { %v984_v56 = vadd.f32 %v411_v2, %v188_v43 }
 0x16f   :  { %v70_v40 = vld [vmem:[%s1174_s0 + $0x1c0] sm:$0xff]  ;;  %v97_v44 = vld [vmem:[%s1174_s0 + $0x298] sm:$0xff] }
 0x170   :  { %332 = vst [vmem:[%s1177_s3 + $0x170] sm:$0xff] %v244_v16  ;;  %v189_v50 = vmul.f32 %v406_v1, %v97_v44  ;;  %v162_v62 = vmul.f32 %v406_v1, %v70_v40  ;;  %v252_v16 = vadd.f32 %v411_v2, %v160_v46 }
 0x172   :  { %v281_v0 = vadd.f32 %v411_v2, %v189_v50  ;;  %v254_v30 = vadd.f32 %v411_v2, %v162_v62 }
 0x177   :  { %v71_v48 = vld [vmem:[%s1174_s0 + $0x1c8] sm:$0xff]  ;;  %v98_v51 = vld [vmem:[%s1174_s0 + $0x2a0] sm:$0xff] }
 0x178   :  { %333 = vst [vmem:[%s1177_s3 + $0x178] sm:$0xff] %v245_v24  ;;  %v190_v57 = vmul.f32 %v406_v1, %v98_v51  ;;  %v163_v9 = vmul.f32 %v406_v1, %v71_v48  ;;  %v253_v24 = vadd.f32 %v411_v2, %v161_v54 }
 0x17a   :  { %v282_v12 = vadd.f32 %v411_v2, %v190_v57  ;;  %v255_v33 = vadd.f32 %v411_v2, %v163_v9 }
 0x17f   :  { %v72_v55 = vld [vmem:[%s1174_s0 + $0x1d0] sm:$0xff]  ;;  %v99_v58 = vld [vmem:[%s1174_s0 + $0x2a8] sm:$0xff] }
 0x180   :  { %334 = vst [vmem:[%s1177_s3 + $0x180] sm:$0xff] %v246_v31  ;;  %v191_v3 = vmul.f32 %v406_v1, %v99_v58  ;;  %v164_v18 = vmul.f32 %v406_v1, %v72_v55 }
 0x182   :  { %v283_v21 = vadd.f32 %v411_v2, %v191_v3  ;;  %v256_v37 = vadd.f32 %v411_v2, %v164_v18 }
 0x187   :  { %v73_v63 = vld [vmem:[%s1174_s0 + $0x1d8] sm:$0xff]  ;;  %v100_v7 = vld [vmem:[%s1174_s0 + $0x2b0] sm:$0xff] }
 0x188   :  { %335 = vst [vmem:[%s1177_s3 + $0x188] sm:$0xff] %v247_v38  ;;  %v192_v14 = vmul.f32 %v406_v1, %v100_v7  ;;  %v165_v25 = vmul.f32 %v406_v1, %v73_v63 }
 0x18a   :  { %v284_v28 = vadd.f32 %v411_v2, %v192_v14  ;;  %v257_v39 = vadd.f32 %v411_v2, %v165_v25 }
 0x18f   :  { %v74_v10 = vld [vmem:[%s1174_s0 + $0x1e0] sm:$0xff]  ;;  %v101_v15 = vld [vmem:[%s1174_s0 + $0x2b8] sm:$0xff] }
 0x190   :  { %336 = vst [vmem:[%s1177_s3 + $0x190] sm:$0xff] %v248_v45  ;;  %v193_v22 = vmul.f32 %v406_v1, %v101_v15  ;;  %v166_v31 = vmul.f32 %v406_v1, %v74_v10 }
 0x192   :  { %v285_v32 = vadd.f32 %v411_v2, %v193_v22  ;;  %v258_v40 = vadd.f32 %v411_v2, %v166_v31 }
 0x197   :  { %v75_v19 = vld [vmem:[%s1174_s0 + $0x1e8] sm:$0xff] }
 0x198   :  { %337 = vst [vmem:[%s1177_s3 + $0x198] sm:$0xff] %v249_v52  ;;  %v167_v36 = vmul.f32 %v406_v1, %v75_v19 }
 0x19a   :  { %v259_v43 = vadd.f32 %v411_v2, %v167_v36 }
 0x19f   :  { %v76_v26 = vld [vmem:[%s1174_s0 + $0x1f0] sm:$0xff] }
 0x1a0   :  { %338 = vst [vmem:[%s1177_s3 + $0x1a0] sm:$0xff] %v250_v60  ;;  %v168_v38 = vmul.f32 %v406_v1, %v76_v26 }
 0x1a1   :  { %339 = vst [vmem:[%s1177_s3 + $0x1a8] sm:$0xff] %v251_v8 }
 0x1a2   :  { %340 = vst [vmem:[%s1177_s3 + $0x1b0] sm:$0xff] %v252_v16  ;;  %v260_v1 = vadd.f32 %v411_v2, %v168_v38 }
 0x1a3   :  { %341 = vst [vmem:[%s1177_s3 + $0x1b8] sm:$0xff] %v253_v24 }
 0x1a4   :  { %342 = vst [vmem:[%s1177_s3 + $0x1c0] sm:$0xff] %v254_v30 }
 0x1a5   :  { %343 = vst [vmem:[%s1177_s3 + $0x1c8] sm:$0xff] %v255_v33 }
 0x1a6   :  { %344 = vst [vmem:[%s1177_s3 + $0x1d0] sm:$0xff] %v256_v37 }
 0x1a7   :  { %345 = vst [vmem:[%s1177_s3 + $0x1d8] sm:$0xff] %v257_v39 }
 0x1a8   :  { %346 = vst [vmem:[%s1177_s3 + $0x1e0] sm:$0xff] %v258_v40 }
 0x1a9   :  { %347 = vst [vmem:[%s1177_s3 + $0x1e8] sm:$0xff] %v259_v43 }
 0x1aa   :  { %348 = vst [vmem:[%s1177_s3 + $0x1f0] sm:$0xff] %v260_v1 }
 0x1ab   :  { %349 = vst [vmem:[%s1177_s3 + $0x1f8] sm:$0xff] %v712_v61 }
 0x1ac   :  { %350 = vst [vmem:[%s1177_s3 + $0x200] sm:$0xff] %v726_v4 }
 0x1ad   :  { %351 = vst [vmem:[%s1177_s3 + $0x208] sm:$0xff] %v729_v5 }
 0x1ae   :  { %352 = vst [vmem:[%s1177_s3 + $0x210] sm:$0xff] %v744_v11 }
 0x1af   :  { %353 = vst [vmem:[%s1177_s3 + $0x218] sm:$0xff] %v759_v17 }
 0x1b0   :  { %354 = vst [vmem:[%s1177_s3 + $0x220] sm:$0xff] %v774_v23 }
 0x1b1   :  { %355 = vst [vmem:[%s1177_s3 + $0x228] sm:$0xff] %v789_v29 }
 0x1b2   :  { %356 = vst [vmem:[%s1177_s3 + $0x230] sm:$0xff] %v804_v35 }
 0x1b3   :  { %357 = vst [vmem:[%s1177_s3 + $0x238] sm:$0xff] %v819_v41 }
 0x1b4   :  { %358 = vst [vmem:[%s1177_s3 + $0x240] sm:$0xff] %v834_v47 }
 0x1b5   :  { %359 = vst [vmem:[%s1177_s3 + $0x248] sm:$0xff] %v849_v53 }
 0x1b6   :  { %360 = vst [vmem:[%s1177_s3 + $0x250] sm:$0xff] %v864_v59 }
 0x1b7   :  { %361 = vst [vmem:[%s1177_s3 + $0x258] sm:$0xff] %v879_v6 }
 0x1b8   :  { %362 = vst [vmem:[%s1177_s3 + $0x260] sm:$0xff] %v894_v13 }
 0x1b9   :  { %363 = vst [vmem:[%s1177_s3 + $0x268] sm:$0xff] %v909_v20 }
 0x1ba   :  { %364 = vst [vmem:[%s1177_s3 + $0x270] sm:$0xff] %v924_v27 }
 0x1bb   :  { %365 = vst [vmem:[%s1177_s3 + $0x278] sm:$0xff] %v939_v34 }
 0x1bc   :  { %366 = vst [vmem:[%s1177_s3 + $0x280] sm:$0xff] %v954_v42 }
 0x1bd   :  { %367 = vst [vmem:[%s1177_s3 + $0x288] sm:$0xff] %v969_v49 }
 0x1be   :  { %368 = vst [vmem:[%s1177_s3 + $0x290] sm:$0xff] %v984_v56 }
 0x1bf   :  { %369 = vst [vmem:[%s1177_s3 + $0x298] sm:$0xff] %v281_v0 }
 0x1c0   :  { %370 = vst [vmem:[%s1177_s3 + $0x2a0] sm:$0xff] %v282_v12 }
 0x1c1   :  { %371 = vst [vmem:[%s1177_s3 + $0x2a8] sm:$0xff] %v283_v21 }
 0x1c2   :  { %372 = vst [vmem:[%s1177_s3 + $0x2b0] sm:$0xff] %v284_v28 }
 0x1c3   :  { %373 = vst [vmem:[%s1177_s3 + $0x2b8] sm:$0xff] %v285_v32 }

// kernel: conv_bn_relu_forward.2
= control target key start
LH: loop header
LB: loop body
LE: loop exit
PB: predicated region body
PF: predicated region fallthrough
CT: control target
= control target key end

     0   :  { %s3990_s21 = smov 0   ;;  %s5494_s0 = inlined_call_operand.vmem [shape: bf16[704,8], index: 0, kind: input, shape index: {}]   ;;  %s5495_s1 = inlined_call_operand.vmem [shape: bf16[2,32,8], index: 1, kind: input, shape index: {}]   ;;  %s5496_s2 = inlined_call_operand.vmem [shape: bf16[2,32,8], index: 2, kind: input, shape index: {}]   ;;  %s5497_s3 = inlined_call_operand.vmem [shape: bf16[9,8,128], index: 3, kind: input, shape index: {}]   ;;  %s5498_s4 = inlined_call_operand.vmem [shape: f32[704,1], index: 4, kind: input, shape index: {}]   ;;  %s5499_s5 = inlined_call_operand.vmem [shape: f32[704,128], index: 5, kind: output, shape index: {0}]   ;;  %s5500_s6 = inlined_call_operand.vmem [shape: f32[2,8,128], index: 6, kind: output, shape index: {1}]  }
   0x1 LB: > { %s3552_s22 = sadd.s32 4294967295, %s3952_s21   ;;  %p3556_p0 = scmp.ge.s32.totalorder %s3952_s21, 1  ;;  %s3952_s21 = sphi %s3990_s21, %s17_s21  }
   0x2   : > { %p247_p1 = scmp.lt.s32.totalorder %s3952_s21, 3 }
   0x4   : > { %p248_p2 = pnand %p3556_p0, %p247_p1 }
   0x6   : > { %251 = sbr.rel (%p248_p2) target bundleno = 974 (0x3ce), region = 40 }
   0xb   : > { %v3669_v0 = vld [vmem:[%s5497_s3 + $0x4] sm:$0xf]  ;;  %vm627_vm0 = vcmask 1043456   ;;  %s296_s25 = smul.u32 44, %s3552_s22  ;;  %v3714_v2 = vld [vmem:[%s5497_s3 + $0x8] sm:$0xf] }
   0xc   : > { %v629_v1 = vsel %vm627_vm0, %v3669_v0, 0  ;;  %p302_p3 = scmp.lt.s32.totalorder %s3552_s22, 1  ;;  %v511_v3 = vld [vmem:[%s5497_s3] sm:$0xf]  ;;  %v1282_v4 = vsel %vm627_vm0, %v3714_v2, 0  ;;  %vm514_vm1 = vcmask 1040384  }
   0xd   : > { %3905 = vmatpush.bf16.msra.mxu1 %v629_v1  ;;  %3906 = vmatpush.bf16.msra.mxu2 %v629_v1  ;;  %p297_p4 = scmp.lt.s32.totalorder %s296_s25, 87  ;;  %v1024_v5 = vsel %vm627_vm0, %v511_v3, 0  ;;  %v3760_v6 = vld [vmem:[%s5497_s3 + $0x10] sm:$0xf]  ;;  %vm560_vm2 = vcmask 64512   ;;  %vm2324_vm5 = vcmask 1046528  }
   0xe   : > { %638 = vmatpush.bf16.msra.mxu0 %v629_v1  ;;  %s5696_s22 = smov (!%p302_p3, %s3552_s22), 1  ;;  %v1673_v7 = vsel %vm627_vm0, %v3760_v6, 0  ;;  %3907 = vmatpush.bf16.msra.mxu3 %v629_v1  ;;  %v3737_v28 = vld [vmem:[%s5497_s3 + $0xc] sm:$0xf]  ;;  %vm750_vm3 = vsmask.f32 1280 }
   0xf   : > { %s5698_s25 = smov (!%p297_p4, %s296_s25), 87  ;;  %s3877_s8 = sshll.u32 %s5696_s22, 4  ;;  %v1461_v29 = vsel %vm627_vm0, %v3737_v28, 0  ;;  %vm1147_vm4 = vsmask.f32 256  ;;  %vm3426_vm8 = vcmask 1041408  }
  0x10   : > { %s3557_s9 = sshll.u32 %s5698_s25, 2  ;;  %s306_s12 = scalar_lea.vmem %s5495_s1, %s3877_s8  ;;  %vm2604_vm6 = vsmask.f32 6400  ;;  %vm1840_vm7 = vsmask.f32 7424 }
  0x11   : > { %1291 = vmatpush.bf16.msrb.mxu2 %v1282_v4  ;;  %1033 = vmatpush.bf16.msrb.mxu1 %v1024_v5  ;;  %s4028_s15 = scalar_lea.vmem %s5494_s0, %s3557_s9  ;;  %v4030_v8 = vld [vmem:[%s306_s12] sm:$0xff]  ;;  %v4032_v9 = vld [vmem:[%s306_s12 + $0x8] sm:$0xff]  ;;  %s3562_s29 = sshll.u32 %s5698_s25, 3 }
  0x12   : > { %1682 = vmatpush.bf16.msrb.mxu0 %v1673_v7  ;;  %v4035_v10 = vld [vmem:[%s4028_s15 + $0x20] sm:$0xff]  ;;  %v4038_v11 = vld [vmem:[%s4028_s15 + $0x28] sm:$0xff]  ;;  %v4041_v12 = vld [vmem:[%s4028_s15 + $0x50] sm:$0xff]  ;;  %v515_v14 = vrot.slane %v4030_v8, 7  ;;  %v516_v15 = vrot.slane %v4032_v9, 7  ;;  %1470 = vmatpush.bf16.msrb.mxu3 %v1461_v29  ;;  %v760_v2 = vshrl.u32 %v4032_v9, 16  ;;  %s4839_s9 = scalar_lea.vmem %s5498_s4, %s3562_s29  ;;  %s5087_s12 = scalar_lea.vmem %s5499_s5, %s3562_s29 }
  0x13   : > { %v4044_v13 = vld [vmem:[%s4028_s15 + $0x58] sm:$0xff]  ;;  %v526_v16 = vrot.slane %v4035_v10, 7  ;;  %v528_v17 = vrot.slane %v4038_v11, 7  ;;  %v538_v18 = vrot.slane %v4041_v12, 7  ;;  %v4052_v19 = vld [vmem:[%s4028_s15 + $0x80] sm:$0xff]  ;;  %v4055_v20 = vld [vmem:[%s4028_s15 + $0x88] sm:$0xff]  ;;  %s5365_s14 = scalar_lea.vmem %s5496_s2, %s3877_s8 }
  0x14   : > { %v540_v21 = vrot.slane %v4044_v13, 7  ;;  %v517_v22 = vsel %vm514_vm1, %v515_v14, %v516_v15  ;;  %v550_v24 = vrot.slane %v4052_v19, 7  ;;  %v552_v25 = vrot.slane %v4055_v20, 7  ;;  %v4079_v30 = vld [vmem:[%s4028_s15] sm:$0xff]  ;;  %v4082_v31 = vld [vmem:[%s4028_s15 + $0x30] sm:$0xff]  ;;  %v4103_v42 = vld [vmem:[%s4028_s15 + $0x8] sm:$0xff] }
  0x15   : > { %v529_v23 = vsel %vm514_vm1, %v526_v16, %v528_v17  ;;  %3670 = vmatmul.msk.bf16.vlgmr.msra.gmra.mxu0 %vm560_vm2, %v517_v22  ;;  %v4085_v32 = vld [vmem:[%s4028_s15 + $0x60] sm:$0xff]  ;;  %v4088_v33 = vld [vmem:[%s4028_s15 + $0x90] sm:$0xff]  ;;  %v518_v34 = vrot.slane %v4079_v30, 7  ;;  %v530_v35 = vrot.slane %v4082_v31, 7  ;;  %v4106_v43 = vld [vmem:[%s4028_s15 + $0x38] sm:$0xff]  ;;  %v520_v46 = vrot.slane %v4103_v42, 7 }
  0x16   : > { %3676 = vmatmul.msk.bf16.vlgmr.msra.gmra.mxu1 %vm560_vm2, %v529_v23  ;;  %v541_v26 = vsel %vm514_vm1, %v538_v18, %v540_v21  ;;  %v553_v27 = vsel %vm514_vm1, %v550_v24, %v552_v25  ;;  %v542_v36 = vrot.slane %v4085_v32, 7  ;;  %v554_v37 = vrot.slane %v4088_v33, 7  ;;  %v4109_v44 = vld [vmem:[%s4028_s15 + $0x68] sm:$0xff]  ;;  %v4112_v45 = vld [vmem:[%s4028_s15 + $0x98] sm:$0xff]  ;;  %v4127_v54 = vld [vmem:[%s4028_s15 + $0x10] sm:$0xff]  ;;  %s3564_s8 = sshll.u32 %s5696_s22, 3 }
  0x17   : > { %3682 = vmatmul.msk.bf16.vlgmr.msra.gmra.mxu2 %vm560_vm2, %v541_v26  ;;  %3688 = vmatmul.msk.bf16.vlgmr.msra.gmra.mxu3 %vm560_vm2, %v553_v27  ;;  %v519_v38 = vsel %vm514_vm1, %v516_v15, %v518_v34  ;;  %v531_v39 = vsel %vm514_vm1, %v528_v17, %v530_v35  ;;  %v532_v47 = vrot.slane %v4106_v43, 7  ;;  %v544_v48 = vrot.slane %v4109_v44, 7  ;;  %v4130_v55 = vld [vmem:[%s4028_s15 + $0x40] sm:$0xff]  ;;  %v4133_v56 = vld [vmem:[%s4028_s15 + $0x70] sm:$0xff]  ;;  %v4158_v14 = vld [vmem:[%s4028_s15 + $0x18] sm:$0xff]  ;;  %s327_s17 = scalar_lea.vmem %s5500_s6, %s3564_s8 }
  0x18   : > { %v543_v40 = vsel %vm514_vm1, %v540_v21, %v542_v36  ;;  %v555_v41 = vsel %vm514_vm1, %v552_v25, %v554_v37  ;;  %v556_v49 = vrot.slane %v4112_v45, 7  ;;  %v521_v50 = vsel %vm514_vm1, %v518_v34, %v520_v46  ;;  %v4136_v57 = vld [vmem:[%s4028_s15 + $0xa0] sm:$0xff]  ;;  %v4161_v21 = vld [vmem:[%s4028_s15 + $0x48] sm:$0xff]  ;;  %v4164_v23 = vld [vmem:[%s4028_s15 + $0x78] sm:$0xff] }
  0x19   : > { %v533_v51 = vsel %vm514_vm1, %v530_v35, %v532_v47  ;;  %v545_v52 = vsel %vm514_vm1, %v542_v36, %v544_v48  ;;  %v522_v58 = vrot.slane %v4127_v54, 7  ;;  %v534_v59 = vrot.slane %v4130_v55, 7 }
  0x1a   : > { %v557_v53 = vsel %vm514_vm1, %v554_v37, %v556_v49  ;;  %v546_v60 = vrot.slane %v4133_v56, 7  ;;  %v558_v61 = vrot.slane %v4136_v57, 7  ;;  %v752_v3 = vshrl.u32 %v4030_v8, 16 }
  0x1b   : > { %v523_v62 = vsel %vm514_vm1, %v520_v46, %v522_v58  ;;  %v535_v63 = vsel %vm514_vm1, %v532_v47, %v534_v59  ;;  %v755_v4 = vshll.u32 %v4030_v8, 16  ;;  %v4154_v5 = vshrl.u32 %v4079_v30, 16 }
  0x1c   : > { %v547_v0 = vsel %vm514_vm1, %v544_v48, %v546_v60  ;;  %v559_v1 = vsel %vm514_vm1, %v556_v49, %v558_v61  ;;  %v762_v6 = vrot.slane %v760_v2, 6  ;;  %v763_v7 = vshll.u32 %v4032_v9, 16  ;;  %v3806_v48 = vld [vmem:[%s5497_s3 + $0x18] sm:$0xf]  ;;  %v3829_v49 = vld [vmem:[%s5497_s3 + $0x1c] sm:$0xf] }
  0x1d   : > { %5545 = vst [vmem:[#allocation2_spill] sm:$0xff] %v4154_v5  ;;  %v754_v15 = vrot.slane %v752_v3, 6  ;;  %v757_v17 = vrot.slane %v755_v4, 7  ;;  %v4167_v26 = vshll.u32 %v4079_v30, 16  ;;  %v1152_v8 = vrot.slane %v4154_v5, 7 }
  0x1e   : > { %v765_v22 = vrot.slane %v763_v7, 7  ;;  %v524_v28 = vrot.slane %v4158_v14, 7  ;;  %v536_v9 = vrot.slane %v4161_v21, 7  ;;  %v548_v34 = vrot.slane %v4164_v23, 7 }
  0x1f   : > { %v758_v25 = vor.u32 %v757_v17, %v754_v15  ;;  %5546 = vst [vmem:[#allocation3_spill] sm:$0xff] %v4167_v26  ;;  %v1149_v35 = vrot.slane %v760_v2, 7  ;;  %v1153_v36 = vor.u32 %v1152_v8, %v4167_v26  ;;  %v4204_v61 = vshll.u32 %v4103_v42, 16 }
  0x20   : > { %v766_v27 = vor.u32 %v765_v22, %v762_v6  ;;  %v525_v37 = vsel %vm514_vm1, %v522_v58, %v524_v28  ;;  %v3852_v58 = vld [vmem:[%s5497_s3 + $0x20] sm:$0xf]  ;;  %v551_v2 = vsel %vm514_vm1, %v548_v34, %v550_v24  ;;  %v4226_v4 = vshll.u32 %v4127_v54, 16 }
  0x21   : > { %v1154_v46 = vsel %vm1147_vm4, %v1149_v35, %v1153_v36  ;;  %5548 = vst [vmem:[#allocation5_spill] sm:$0xff] %v4204_v61  ;;  %v771_v15 = vrot.slane %v4154_v5, 6  ;;  %v774_v17 = vrot.slane %v4167_v26, 7  ;;  %v4242_v22 = vshll.u32 %v4158_v14, 16 }
  0x22   : > { %v767_v29 = vsel %vm750_vm3, %v758_v25, %v766_v27  ;;  %5550 = vst [vmem:[#allocation7_spill] sm:$0xff] %v4226_v4 }
  0x23   : > { %5552 = vst [vmem:[#allocation9_spill] sm:$0xff] %v4242_v22  ;;  %v775_v25 = vor.u32 %v774_v17, %v771_v15  ;;  %v4318_v15 = vshrl.u32 %v4082_v31, 16 }
  0x25   : > { %3671 = vmatmul.msk.bf16.gmra.mxu0 %vm560_vm2, %v519_v38  ;;  %v537_v38 = vsel %vm514_vm1, %v534_v59, %v536_v9  ;;  %v4200_v59 = vshrl.u32 %v4103_v42, 16  ;;  %5562 = vst [vmem:[#allocation19_spill] sm:$0xff] %v4318_v15 }
  0x26   : > { %3677 = vmatmul.msk.bf16.gmra.mxu1 %vm560_vm2, %v531_v39  ;;  %v549_v39 = vsel %vm514_vm1, %v546_v60, %v548_v34  ;;  %v2765_v60 = vsel %vm627_vm0, %v3852_v58, 0 }
  0x27   : > { %3683 = vmatmul.msk.bf16.gmra.mxu2 %vm560_vm2, %v543_v40  ;;  %3689 = vmatmul.msk.bf16.gmra.mxu3 %vm560_vm2, %v555_v41  ;;  %v1148_v40 = vrot.slane %v752_v3, 7  ;;  %v1150_v41 = vor.u32 %v1149_v35, %v763_v7  ;;  %5547 = vst [vmem:[#allocation4_spill] sm:$0xff] %v4200_v59  ;;  %v4237_v7 = vshrl.u32 %v4158_v14, 16  ;;  %v780_v34 = vrot.slane %v4200_v59, 6 }
  0x28   : > { %2774 = vmatpush.bf16.msra.mxu0 %v2765_v60  ;;  %v783_v35 = vrot.slane %v4204_v61, 7 }
  0x29   : > { %v1151_v47 = vsel %vm1147_vm4, %v1148_v40, %v1150_v41  ;;  %5551 = vst [vmem:[#allocation8_spill] sm:$0xff] %v4237_v7 }
  0x2a   : > { %v784_v36 = vor.u32 %v783_v35, %v780_v34 }
  0x2c   : > { %v785_v40 = vsel %vm750_vm3, %v775_v25, %v784_v36 }
  0x35   : > { %3672 = vmatmul.msk.bf16.gmra.mxu0 %vm560_vm2, %v521_v50  ;;  %v3783_v50 = vld [vmem:[%s5497_s3 + $0x14] sm:$0xf] }
  0x36   : > { %3678 = vmatmul.msk.bf16.gmra.mxu1 %vm560_vm2, %v533_v51  ;;  %v2157_v51 = vsel %vm627_vm0, %v3806_v48, 0  ;;  %v4282_v48 = vshrl.u32 %v4038_v11, 16 }
  0x37   : > { %3684 = vmatmul.msk.bf16.gmra.mxu2 %vm560_vm2, %v545_v52  ;;  %3690 = vmatmul.msk.bf16.gmra.mxu3 %vm560_vm2, %v557_v53  ;;  %v2437_v52 = vsel %vm627_vm0, %v3829_v49, 0  ;;  %v1978_v53 = vsel %vm627_vm0, %v3783_v50, 0  ;;  %v792_v50 = vrot.slane %v4226_v4, 7 }
  0x38   : > { %2166 = vmatpush.bf16.msra.mxu2 %v2157_v51  ;;  %2446 = vmatpush.bf16.msra.mxu3 %v2437_v52  ;;  %5556 = vst [vmem:[#allocation13_spill] sm:$0xff] %v4282_v48  ;;  %v4291_v52 = vshll.u32 %v4038_v11, 16 }
  0x39   : > { %1987 = vmatpush.bf16.msra.mxu1 %v1978_v53  ;;  %v1167_v53 = vrot.slane %v4282_v48, 7 }
  0x3a   : > { %5558 = vst [vmem:[#allocation15_spill] sm:$0xff] %v4291_v52 }
  0x3b   : > { %v1168_v60 = vor.u32 %v1167_v53, %v4291_v52 }
  0x45   : > { %3673 = vmatmul.msk.bf16.gmra.mxu0 %vm560_vm2, %v523_v62  ;;  %v1155_v62 = vrot.slane %v4200_v59, 7 }
  0x46   : > { %3679 = vmatmul.msk.bf16.gmra.mxu1 %vm560_vm2, %v535_v63 }
  0x47   : > { %3685 = vmatmul.msk.bf16.gmra.mxu2 %vm560_vm2, %v547_v0  ;;  %3691 = vmatmul.msk.bf16.gmra.mxu3 %vm560_vm2, %v559_v1  ;;  %v1156_v63 = vor.u32 %v1155_v62, %v4204_v61  ;;  %v527_v0 = vsel %vm514_vm1, %v524_v28, %v526_v16  ;;  %v539_v1 = vsel %vm514_vm1, %v536_v9, %v538_v18  ;;  %v4223_v16 = vshrl.u32 %v4127_v54, 16 }
  0x48   : > { %v776_v28 = vsel %vm750_vm3, %v766_v27, %v775_v25  ;;  %v4259_v27 = vshll.u32 %v4035_v10, 16 }
  0x49   : > { %v1157_v3 = vsel %vm1147_vm4, %v1152_v8, %v1156_v63  ;;  %5549 = vst [vmem:[#allocation6_spill] sm:$0xff] %v4223_v16  ;;  %v1158_v18 = vrot.slane %v4223_v16, 7 }
  0x4a   : > { %5554 = vst [vmem:[#allocation11_spill] sm:$0xff] %v4259_v27 }
  0x4b   : > { %v1159_v24 = vor.u32 %v1158_v18, %v4226_v4 }
  0x4d   : > { %v1160_v6 = vsel %vm1147_vm4, %v1155_v62, %v1159_v24 }
  0x55   : > { %3674 = vmatmul.msk.bf16.gmra.mxu0 %vm560_vm2, %v525_v37 }
  0x56   : > { %3680 = vmatmul.msk.bf16.gmra.mxu1 %vm560_vm2, %v537_v38 }
  0x57   : > { %3686 = vmatmul.msk.bf16.gmra.mxu2 %vm560_vm2, %v549_v39  ;;  %3738 = vmatmul.msk.bf16.vlgmr.msrb.gmra.mxu3 %vm560_vm2, %v1154_v46 }
  0x65   : > { %3675 = vmatmul.msk.bf16.gmra.mxu0 %vm560_vm2, %v527_v0 }
  0x66   : > { %3681 = vmatmul.msk.bf16.gmra.mxu1 %vm560_vm2, %v539_v1 }
  0x67   : > { %3687 = vmatmul.msk.bf16.gmra.mxu2 %vm560_vm2, %v551_v2  ;;  %3739 = vmatmul.msk.bf16.gmra.mxu3 %vm560_vm2, %v1157_v3 }
  0x75   : > { %3761 = vmatmul.msk.bf16.vlgmr.msrb.gmra.mxu0 %vm560_vm2, %v4079_v30  ;;  %v1161_v30 = vrot.slane %v4237_v7, 7 }
  0x76   : > { %3692 = vmatmul.msk.bf16.vlgmr.msrb.gmra.mxu1 %vm560_vm2, %v767_v29  ;;  %v4254_v29 = vshrl.u32 %v4035_v10, 16 }
  0x77   : > { %3715 = vmatmul.msk.bf16.vlgmr.msrb.gmra.mxu2 %vm560_vm2, %v1151_v47  ;;  %3740 = vmatmul.msk.bf16.gmra.mxu3 %vm560_vm2, %v1160_v6  ;;  %v1162_v8 = vor.u32 %v1161_v30, %v4242_v22 }
  0x78   : > { %5553 = vst [vmem:[#allocation10_spill] sm:$0xff] %v4254_v29 }
  0x79   : > { %v1163_v9 = vsel %vm1147_vm4, %v1158_v18, %v1162_v8  ;;  %v1170_v8 = vrot.slane %v4318_v15, 7 }
  0x85   : > { %3762 = vmatmul.msk.bf16.gmra.mxu0 %vm560_vm2, %v4103_v42  ;;  %v1164_v42 = vrot.slane %v4254_v29, 7 }
  0x86   : > { %3693 = vmatmul.msk.bf16.gmra.mxu1 %vm560_vm2, %v776_v28 }
  0x87   : > { %3716 = vmatmul.msk.bf16.gmra.mxu2 %vm560_vm2, %v1154_v46  ;;  %3741 = vmatmul.msk.bf16.gmra.mxu3 %vm560_vm2, %v1163_v9  ;;  %v1165_v37 = vor.u32 %v1164_v42, %v4259_v27 }
  0x89   : > { %v4271_v41 = vsel %vm1147_vm4, %v1161_v30, %v1165_v37  ;;  %v801_v30 = vrot.slane %v4242_v22, 7 }
  0x92   : > { %v4263_v38 = vpop.f32.mrf.mxu0 }
  0x93   : > { %v4265_v39 = vpop.f32.mrf.mxu1 }
  0x95   : > { %3763 = vmatmul.msk.bf16.gmra.mxu0 %vm560_vm2, %v4127_v54  ;;  %v789_v54 = vrot.slane %v4223_v16, 6 }
  0x96   : > { %3694 = vmatmul.msk.bf16.gmra.mxu1 %vm560_vm2, %v785_v40 }
  0x97   : > { %3717 = vmatmul.msk.bf16.gmra.mxu2 %vm560_vm2, %v1157_v3  ;;  %3742 = vmatmul.msk.bf16.gmra.mxu3 %vm560_vm2, %v4271_v41  ;;  %v793_v58 = vor.u32 %v792_v50, %v789_v54  ;;  %v4307_v3 = vsel %vm1147_vm4, %v1164_v42, %v1168_v60 }
  0x99   : > { %v794_v1 = vsel %vm750_vm3, %v784_v36, %v793_v58 }
  0x9a   : > { %v4277_v46 = vpop.f32.mrf.mxu2  ;;  %v4279_v47 = vpop.f32.mrf.mxu0 }
  0x9b   : > { %5555 = vst [vmem:[#allocation12_spill] sm:$0xff] %v4277_v46  ;;  %v4284_v49 = vpop.f32.mrf.mxu1  ;;  %v4288_v51 = vpop.f32.mrf.mxu3 }
  0x9c   : > { %5557 = vst [vmem:[#allocation14_spill] sm:$0xff] %v4288_v51 }
  0xa2   : > { %v4295_v62 = vpop.f32.mrf.mxu2  ;;  %v4297_v63 = vpop.f32.mrf.mxu0 }
  0xa3   : > { %5559 = vst [vmem:[#allocation16_spill] sm:$0xff] %v4295_v62  ;;  %v4299_v0 = vpop.f32.mrf.mxu1  ;;  %v4302_v2 = vpop.f32.mrf.mxu3 }
  0xa4   : > { %5560 = vst [vmem:[#allocation17_spill] sm:$0xff] %v4302_v2 }
  0xa5   : > { %3764 = vmatmul.msk.bf16.gmra.mxu0 %vm560_vm2, %v4158_v14  ;;  %v798_v14 = vrot.slane %v4237_v7, 6 }
  0xa6   : > { %3695 = vmatmul.msk.bf16.gmra.mxu1 %vm560_vm2, %v794_v1 }
  0xa7   : > { %3718 = vmatmul.msk.bf16.gmra.mxu2 %vm560_vm2, %v1160_v6  ;;  %3743 = vmatmul.msk.bf16.gmra.mxu3 %vm560_vm2, %v4307_v3  ;;  %v4327_v6 = vshll.u32 %v4082_v31, 16  ;;  %v802_v28 = vor.u32 %v801_v30, %v798_v14 }
  0xa9   : > { %5564 = vst [vmem:[#allocation21_spill] sm:$0xff] %v4327_v6  ;;  %v1171_v34 = vor.u32 %v1170_v8, %v4327_v6  ;;  %v803_v37 = vsel %vm750_vm3, %v793_v58, %v802_v28  ;;  %v4354_v58 = vshrl.u32 %v4106_v43, 16 }
  0xaa   : > { %v4313_v18 = vpop.f32.mrf.mxu2  ;;  %v4315_v24 = vpop.f32.mrf.mxu0 }
  0xab   : > { %5561 = vst [vmem:[#allocation18_spill] sm:$0xff] %v4313_v18  ;;  %v4320_v17 = vpop.f32.mrf.mxu1  ;;  %v4324_v25 = vpop.f32.mrf.mxu3  ;;  %v4343_v54 = vsel %vm1147_vm4, %v1167_v53, %v1171_v34  ;;  %v810_v53 = vrot.slane %v4259_v27, 7  ;;  %v1173_v30 = vrot.slane %v4354_v58, 7 }
  0xac   : > { %5563 = vst [vmem:[#allocation20_spill] sm:$0xff] %v4324_v25 }
  0xad   : > { %5568 = vst [vmem:[#allocation25_spill] sm:$0xff] %v4354_v58 }
  0xb2   : > { %v4331_v35 = vpop.f32.mrf.mxu2  ;;  %v4333_v42 = vpop.f32.mrf.mxu0 }
  0xb3   : > { %5565 = vst [vmem:[#allocation22_spill] sm:$0xff] %v4331_v35  ;;  %v4335_v36 = vpop.f32.mrf.mxu1  ;;  %v4338_v40 = vpop.f32.mrf.mxu3 }
  0xb4   : > { %5566 = vst [vmem:[#allocation23_spill] sm:$0xff] %v4338_v40 }
  0xb5   : > { %3765 = vmatmul.msk.bf16.gmra.mxu0 %vm560_vm2, %v4035_v10  ;;  %v807_v10 = vrot.slane %v4254_v29, 6 }
  0xb6   : > { %3696 = vmatmul.msk.bf16.gmra.mxu1 %vm560_vm2, %v803_v37 }
  0xb7   : > { %3719 = vmatmul.msk.bf16.gmra.mxu2 %vm560_vm2, %v1163_v9  ;;  %3744 = vmatmul.msk.bf16.gmra.mxu3 %vm560_vm2, %v4343_v54  ;;  %v4363_v9 = vshll.u32 %v4106_v43, 16  ;;  %v811_v34 = vor.u32 %v810_v53, %v807_v10 }
  0xb9   : > { %5570 = vst [vmem:[#allocation27_spill] sm:$0xff] %v4363_v9  ;;  %v1174_v37 = vor.u32 %v1173_v30, %v4363_v9  ;;  %v812_v51 = vsel %vm750_vm3, %v802_v28, %v811_v34  ;;  %v4391_v28 = vshrl.u32 %v4130_v55, 16 }
  0xba   : > { %v4349_v50 = vpop.f32.mrf.mxu2  ;;  %v4351_v60 = vpop.f32.mrf.mxu0 }
  0xbb   : > { %5567 = vst [vmem:[#allocation24_spill] sm:$0xff] %v4349_v50  ;;  %v4356_v1 = vpop.f32.mrf.mxu1  ;;  %v4360_v14 = vpop.f32.mrf.mxu3 }
  0xbc   : > { %5569 = vst [vmem:[#allocation26_spill] sm:$0xff] %v4360_v14  ;;  %v4379_v14 = vsel %vm1147_vm4, %v1170_v8, %v1174_v37  ;;  %v819_v8 = vrot.slane %v4291_v52, 7  ;;  %v1176_v37 = vrot.slane %v4391_v28, 7 }
  0xbd   : > { %5574 = vst [vmem:[#allocation31_spill] sm:$0xff] %v4391_v28 }
  0xc2   : > { %v4367_v40 = vpop.f32.mrf.mxu2  ;;  %v4369_v25 = vpop.f32.mrf.mxu0 }
  0xc3   : > { %5571 = vst [vmem:[#allocation28_spill] sm:$0xff] %v4367_v40  ;;  %v4371_v2 = vpop.f32.mrf.mxu1  ;;  %v4374_v29 = vpop.f32.mrf.mxu3 }
  0xc4   : > { %5572 = vst [vmem:[#allocation29_spill] sm:$0xff] %v4374_v29 }
  0xc5   : > { %3766 = vmatmul.msk.bf16.gmra.mxu0 %vm560_vm2, %v4038_v11  ;;  %v816_v11 = vrot.slane %v4282_v48, 6 }
  0xc6   : > { %3697 = vmatmul.msk.bf16.gmra.mxu1 %vm560_vm2, %v812_v51 }
  0xc7   : > { %3720 = vmatmul.msk.bf16.gmra.mxu2 %vm560_vm2, %v4271_v41  ;;  %3745 = vmatmul.msk.bf16.gmra.mxu3 %vm560_vm2, %v4379_v14  ;;  %v4400_v41 = vshll.u32 %v4130_v55, 16  ;;  %v820_v27 = vor.u32 %v819_v8, %v816_v11 }
  0xc9   : > { %5577 = vst [vmem:[#allocation34_spill] sm:$0xff] %v4400_v41  ;;  %v821_v48 = vsel %vm750_vm3, %v811_v34, %v820_v27  ;;  %v4428_v34 = vshrl.u32 %v4161_v21, 16 }
  0xca   : > { %v4386_v10 = vpop.f32.mrf.mxu2  ;;  %v4388_v53 = vpop.f32.mrf.mxu0 }
  0xcb   : > { %5573 = vst [vmem:[#allocation30_spill] sm:$0xff] %v4386_v10  ;;  %v4393_v29 = vpop.f32.mrf.mxu1  ;;  %v4397_v51 = vpop.f32.mrf.mxu3  ;;  %v1177_v10 = vor.u32 %v1176_v37, %v4400_v41 }
  0xcc   : > { %5575 = vst [vmem:[#allocation32_spill] sm:$0xff] %v4393_v29 }
  0xcd   : > { %5576 = vst [vmem:[#allocation33_spill] sm:$0xff] %v4397_v51  ;;  %v4416_v51 = vsel %vm1147_vm4, %v1173_v30, %v1177_v10  ;;  %v828_v30 = vrot.slane %v4327_v6, 7  ;;  %v4435_v10 = vshll.u32 %v4161_v21, 16 }
  0xd2   : > { %v4404_v40 = vpop.f32.mrf.mxu2  ;;  %v4406_v22 = vpop.f32.mrf.mxu0 }
  0xd3   : > { %5578 = vst [vmem:[#allocation35_spill] sm:$0xff] %v4404_v40  ;;  %v4408_v7 = vpop.f32.mrf.mxu1  ;;  %v4411_v50 = vpop.f32.mrf.mxu3 }
  0xd4   : > { %5579 = vst [vmem:[#allocation36_spill] sm:$0xff] %v4408_v7 }
  0xd5   : > { %5580 = vst [vmem:[#allocation37_spill] sm:$0xff] %v4411_v50  ;;  %3767 = vmatmul.msk.bf16.gmra.mxu0 %vm560_vm2, %v4082_v31  ;;  %v825_v31 = vrot.slane %v4318_v15, 6 }
  0xd6   : > { %3698 = vmatmul.msk.bf16.gmra.mxu1 %vm560_vm2, %v821_v48 }
  0xd7   : > { %3721 = vmatmul.msk.bf16.gmra.mxu2 %vm560_vm2, %v4307_v3  ;;  %3746 = vmatmul.msk.bf16.gmra.mxu3 %vm560_vm2, %v4416_v51  ;;  %v1179_v3 = vrot.slane %v4428_v34, 7  ;;  %v829_v52 = vor.u32 %v828_v30, %v825_v31 }
  0xd9   : > { %v830_v26 = vsel %vm750_vm3, %v820_v27, %v829_v52  ;;  %v4461_v27 = vshrl.u32 %v4041_v12, 16 }
  0xda   : > { %v4423_v11 = vpop.f32.mrf.mxu2  ;;  %v4425_v8 = vpop.f32.mrf.mxu0 }
  0xdb   : > { %5581 = vst [vmem:[#allocation38_spill] sm:$0xff] %v4423_v11  ;;  %v4430_v50 = vpop.f32.mrf.mxu1  ;;  %v1472_v48 = vpop.f32.mrf.mxu3  ;;  %v1180_v11 = vor.u32 %v1179_v3, %v4435_v10 }
  0xdc   : > { %5582 = vst [vmem:[#allocation39_spill] sm:$0xff] %v4430_v50 }
  0xdd   : > { %v4449_v6 = vsel %vm1147_vm4, %v1176_v37, %v1180_v11  ;;  %v837_v37 = vrot.slane %v4363_v9, 7  ;;  %v4468_v11 = vshll.u32 %v4041_v12, 16 }
  0xe2   : > { %v4439_v40 = vpop.f32.mrf.mxu2  ;;  %v4441_v35 = vpop.f32.mrf.mxu0 }
  0xe3   : > { %5583 = vst [vmem:[#allocation40_spill] sm:$0xff] %v4439_v40  ;;  %v4443_v5 = vpop.f32.mrf.mxu1  ;;  %v1474_v15 = vpop.f32.mrf.mxu3 }
  0xe4   : > { %5584 = vst [vmem:[#allocation41_spill] sm:$0xff] %v4443_v5 }
  0xe5   : > { %3768 = vmatmul.msk.bf16.gmra.mxu0 %vm560_vm2, %v4106_v43  ;;  %v834_v43 = vrot.slane %v4354_v58, 6 }
  0xe6   : > { %3699 = vmatmul.msk.bf16.gmra.mxu1 %vm560_vm2, %v830_v26 }
  0xe7   : > { %3722 = vmatmul.msk.bf16.gmra.mxu2 %vm560_vm2, %v4343_v54  ;;  %3747 = vmatmul.msk.bf16.gmra.mxu3 %vm560_vm2, %v4449_v6  ;;  %v1182_v54 = vrot.slane %v4461_v27, 7  ;;  %v838_v4 = vor.u32 %v837_v37, %v834_v43 }
  0xe9   : > { %v839_v18 = vsel %vm750_vm3, %v829_v52, %v838_v4  ;;  %v4487_v52 = vshrl.u32 %v4044_v13, 16 }
  0xea   : > { %v4456_v31 = vpop.f32.mrf.mxu2  ;;  %v4458_v30 = vpop.f32.mrf.mxu0 }
  0xeb   : > { %5585 = vst [vmem:[#allocation42_spill] sm:$0xff] %v4456_v31  ;;  %v4463_v40 = vpop.f32.mrf.mxu1  ;;  %v1477_v26 = vpop.f32.mrf.mxu3  ;;  %v1183_v31 = vor.u32 %v1182_v54, %v4468_v11 }
  0xec   : > { %5586 = vst [vmem:[#allocation43_spill] sm:$0xff] %v4463_v40  ;;  %v1185_v40 = vrot.slane %v4487_v52, 7 }
  0xed   : > { %v4478_v9 = vsel %vm1147_vm4, %v1179_v3, %v1183_v31  ;;  %v843_v3 = vrot.slane %v4391_v28, 6  ;;  %v846_v31 = vrot.slane %v4400_v41, 7 }
  0xef   : > { %v847_v5 = vor.u32 %v846_v31, %v843_v3 }
  0xf1   : > { %v848_v41 = vsel %vm750_vm3, %v838_v4, %v847_v5 }
  0xf2   : > { %v4472_v16 = vpop.f32.mrf.mxu2  ;;  %v1684_v61 = vpop.f32.mrf.mxu0 }
  0xf3   : > { %5587 = vst [vmem:[#allocation44_spill] sm:$0xff] %v4472_v16  ;;  %v1035_v59 = vpop.f32.mrf.mxu1  ;;  %v1479_v62 = vpop.f32.mrf.mxu3 }
  0xf4   : > { %v1036_v43 = vadd.f32 %v1035_v59, %v4263_v38 }
  0xf5   : > { %3769 = vmatmul.msk.bf16.gmra.mxu0 %vm560_vm2, %v4130_v55 }
  0xf6   : > { %3700 = vmatmul.msk.bf16.gmra.mxu1 %vm560_vm2, %v839_v18 }
  0xf7   : > { %3723 = vmatmul.msk.bf16.gmra.mxu2 %vm560_vm2, %v4379_v14  ;;  %3748 = vmatmul.msk.bf16.gmra.mxu3 %vm560_vm2, %v4478_v9  ;;  %v4492_v14 = vshll.u32 %v4044_v13, 16 }
  0xf9   : > { %v1186_v50 = vor.u32 %v1185_v40, %v4492_v14 }
  0xfa   : > { %v1293_v37 = vpop.f32.mrf.mxu2  ;;  %v1686_v58 = vpop.f32.mrf.mxu0 }
  0xfb   : > { %v1403_v16 = vadd.f32 %v1293_v37, %v1036_v43  ;;  %v1037_v55 = vpop.f32.mrf.mxu1  ;;  %v1482_v18 = vpop.f32.mrf.mxu3 }
  0xfc   : > { %v1038_v38 = vadd.f32 %v1037_v55, %v4279_v47  ;;  %v4514_v47 = vshrl.u32 %v4085_v32, 16 }
  0xfd   : > { %v1582_v46 = vadd.f32 %v1472_v48, %v1403_v16  ;;  %v4503_v48 = vsel %vm1147_vm4, %v1182_v54, %v1186_v50  ;;  %v852_v50 = vrot.slane %v4428_v34, 6 }
  0xfe   : > { %v1188_v55 = vrot.slane %v4514_v47, 7 }
  0xff   : > { %v4495_v59 = vadd.f32 %v1684_v61, %v1582_v46 }
 0x102   : > { %v1295_v43 = vpop.f32.mrf.mxu2  ;;  %v1689_v37 = vpop.f32.mrf.mxu0 }
 0x103   : > { %v1404_v7 = vadd.f32 %v1295_v43, %v1038_v38  ;;  %v1040_v28 = vpop.f32.mrf.mxu1  ;;  %v1484_v29 = vpop.f32.mrf.mxu3 }
 0x104   : > { %v1041_v4 = vadd.f32 %v1040_v28, %v4297_v63 }
 0x105   : > { %v1583_v16 = vadd.f32 %v1474_v15, %v1404_v7  ;;  %3770 = vmatmul.msk.bf16.gmra.mxu0 %vm560_vm2, %v4161_v21 }
 0x106   : > { %3701 = vmatmul.msk.bf16.gmra.mxu1 %vm560_vm2, %v848_v41  ;;  %v855_v41 = vrot.slane %v4435_v10, 7 }
 0x107   : > { %3724 = vmatmul.msk.bf16.gmra.mxu2 %vm560_vm2, %v4416_v51  ;;  %v4508_v61 = vadd.f32 %v1686_v58, %v1583_v16  ;;  %3749 = vmatmul.msk.bf16.gmra.mxu3 %vm560_vm2, %v4503_v48  ;;  %v4519_v58 = vshll.u32 %v4085_v32, 16 }
 0x108   : > { %v856_v3 = vor.u32 %v855_v41, %v852_v50  ;;  %v861_v50 = vrot.slane %v4461_v27, 6  ;;  %v864_v41 = vrot.slane %v4468_v11, 7 }
 0x109   : > { %5588 = vst [vmem:[#allocation45_spill] sm:$0xff] %v4508_v61  ;;  %v1189_v31 = vor.u32 %v1188_v55, %v4519_v58 }
 0x10a   : > { %v1298_v46 = vpop.f32.mrf.mxu2  ;;  %v1691_v7 = vpop.f32.mrf.mxu0 }
 0x10b   : > { %v1405_v21 = vadd.f32 %v1298_v46, %v1041_v4  ;;  %v1042_v15 = vpop.f32.mrf.mxu1  ;;  %v1487_v54 = vpop.f32.mrf.mxu3  ;;  %v857_v46 = vsel %vm750_vm3, %v847_v5, %v856_v3 }
 0x10c   : > { %v1043_v28 = vadd.f32 %v1042_v15, %v4315_v24  ;;  %v4541_v15 = vshrl.u32 %v4109_v44, 16 }
 0x10d   : > { %v1584_v51 = vadd.f32 %v1477_v26, %v1405_v21  ;;  %v4530_v21 = vsel %vm1147_vm4, %v1185_v40, %v1189_v31  ;;  %v865_v31 = vor.u32 %v864_v41, %v861_v50  ;;  %v870_v50 = vrot.slane %v4487_v52, 6 }
 0x10e   : > { %v873_v41 = vrot.slane %v4492_v14, 7 }
 0x10f   : > { %v4522_v63 = vadd.f32 %v1689_v37, %v1584_v51 }
 0x112   : > { %v1300_v38 = vpop.f32.mrf.mxu2  ;;  %v1694_v43 = vpop.f32.mrf.mxu0 }
 0x113   : > { %v1406_v16 = vadd.f32 %v1300_v38, %v1043_v28  ;;  %v1045_v4 = vpop.f32.mrf.mxu1  ;;  %v1489_v61 = vpop.f32.mrf.mxu3  ;;  %v1191_v28 = vrot.slane %v4541_v15, 7 }
 0x114   : > { %v1046_v5 = vadd.f32 %v1045_v4, %v4333_v42 }
 0x115   : > { %v1585_v26 = vadd.f32 %v1479_v62, %v1406_v16  ;;  %3771 = vmatmul.msk.bf16.gmra.mxu0 %vm560_vm2, %v4041_v12 }
 0x116   : > { %3702 = vmatmul.msk.bf16.gmra.mxu1 %vm560_vm2, %v857_v46 }
 0x117   : > { %3725 = vmatmul.msk.bf16.gmra.mxu2 %vm560_vm2, %v4449_v6  ;;  %v4535_v24 = vadd.f32 %v1691_v7, %v1585_v26  ;;  %3750 = vmatmul.msk.bf16.gmra.mxu3 %vm560_vm2, %v4530_v21  ;;  %v4546_v7 = vshll.u32 %v4109_v44, 16 }
 0x119   : > { %5589 = vst [vmem:[#allocation46_spill] sm:$0xff] %v4535_v24  ;;  %v1192_v16 = vor.u32 %v1191_v28, %v4546_v7 }
 0x11a   : > { %v1303_v37 = vpop.f32.mrf.mxu2  ;;  %v1696_v62 = vpop.f32.mrf.mxu0 }
 0x11b   : > { %v1407_v12 = vadd.f32 %v1303_v37, %v1046_v5  ;;  %v1047_v40 = vpop.f32.mrf.mxu1  ;;  %v1492_v51 = vpop.f32.mrf.mxu3  ;;  %v866_v37 = vsel %vm750_vm3, %v856_v3, %v865_v31 }
 0x11c   : > { %v1048_v38 = vadd.f32 %v1047_v40, %v4351_v60  ;;  %v4568_v40 = vshrl.u32 %v4133_v56, 16 }
 0x11d   : > { %v1586_v6 = vadd.f32 %v1482_v18, %v1407_v12  ;;  %v4557_v12 = vsel %vm1147_vm4, %v1188_v55, %v1192_v16  ;;  %v874_v16 = vor.u32 %v873_v41, %v870_v50  ;;  %v879_v50 = vrot.slane %v4514_v47, 6 }
 0x11e   : > { %v882_v41 = vrot.slane %v4519_v58, 7 }
 0x11f   : > { %v4549_v42 = vadd.f32 %v1694_v43, %v1586_v6 }
 0x122   : > { %v1305_v4 = vpop.f32.mrf.mxu2  ;;  %v1699_v46 = vpop.f32.mrf.mxu0 }
 0x123   : > { %v1408_v26 = vadd.f32 %v1305_v4, %v1048_v38  ;;  %v1050_v5 = vpop.f32.mrf.mxu1  ;;  %v1494_v24 = vpop.f32.mrf.mxu3  ;;  %v1194_v38 = vrot.slane %v4568_v40, 7 }
 0x124   : > { %v1051_v3 = vadd.f32 %v1050_v5, %v4369_v25 }
 0x125   : > { %v1587_v18 = vadd.f32 %v1484_v29, %v1408_v26  ;;  %3772 = vmatmul.msk.bf16.gmra.mxu0 %vm560_vm2, %v4044_v13 }
 0x126   : > { %3703 = vmatmul.msk.bf16.gmra.mxu1 %vm560_vm2, %v866_v37 }
 0x127   : > { %3726 = vmatmul.msk.bf16.gmra.mxu2 %vm560_vm2, %v4478_v9  ;;  %v4562_v60 = vadd.f32 %v1696_v62, %v1587_v18  ;;  %3751 = vmatmul.msk.bf16.gmra.mxu3 %vm560_vm2, %v4557_v12  ;;  %v4573_v62 = vshll.u32 %v4133_v56, 16 }
 0x129   : > { %5590 = vst [vmem:[#allocation47_spill] sm:$0xff] %v4562_v60  ;;  %v1195_v26 = vor.u32 %v1194_v38, %v4573_v62 }
 0x12a   : > { %v1308_v43 = vpop.f32.mrf.mxu2  ;;  %v1701_v29 = vpop.f32.mrf.mxu0 }
 0x12b   : > { %v1409_v13 = vadd.f32 %v1308_v43, %v1051_v3  ;;  %v1052_v55 = vpop.f32.mrf.mxu1  ;;  %v1497_v6 = vpop.f32.mrf.mxu3  ;;  %v875_v43 = vsel %vm750_vm3, %v865_v31, %v874_v16 }
 0x12c   : > { %v1053_v4 = vadd.f32 %v1052_v55, %v4388_v53  ;;  %v4595_v55 = vshrl.u32 %v4164_v23, 16 }
 0x12d   : > { %v1588_v9 = vadd.f32 %v1487_v54, %v1409_v13  ;;  %v4584_v13 = vsel %vm1147_vm4, %v1191_v28, %v1195_v26  ;;  %v883_v26 = vor.u32 %v882_v41, %v879_v50  ;;  %v888_v50 = vrot.slane %v4541_v15, 6 }
 0x12e   : > { %v891_v41 = vrot.slane %v4546_v7, 7 }
 0x12f   : > { %v4576_v25 = vadd.f32 %v1699_v46, %v1588_v9 }
 0x132   : > { %v1310_v5 = vpop.f32.mrf.mxu2  ;;  %v1704_v37 = vpop.f32.mrf.mxu0 }
 0x133   : > { %v1410_v18 = vadd.f32 %v1310_v5, %v1053_v4  ;;  %v1055_v3 = vpop.f32.mrf.mxu1  ;;  %v1499_v60 = vpop.f32.mrf.mxu3  ;;  %v1197_v4 = vrot.slane %v4595_v55, 7 }
 0x134   : > { %v1056_v31 = vadd.f32 %v1055_v3, %v4406_v22 }
 0x135   : > { %v1589_v54 = vadd.f32 %v1489_v61, %v1410_v18  ;;  %3773 = vmatmul.msk.bf16.gmra.mxu0 %vm560_vm2, %v4085_v32 }
 0x136   : > { %3704 = vmatmul.msk.bf16.gmra.mxu1 %vm560_vm2, %v875_v43 }
 0x137   : > { %3727 = vmatmul.msk.bf16.gmra.mxu2 %vm560_vm2, %v4503_v48  ;;  %v4589_v53 = vadd.f32 %v1701_v29, %v1589_v54  ;;  %3752 = vmatmul.msk.bf16.gmra.mxu3 %vm560_vm2, %v4584_v13  ;;  %v4600_v29 = vshll.u32 %v4164_v23, 16 }
 0x139   : > { %5591 = vst [vmem:[#allocation48_spill] sm:$0xff] %v4589_v53  ;;  %v1198_v18 = vor.u32 %v1197_v4, %v4600_v29 }
 0x13a   : > { %v1313_v46 = vpop.f32.mrf.mxu2  ;;  %v1706_v61 = vpop.f32.mrf.mxu0 }
 0x13b   : > { %v1411_v32 = vadd.f32 %v1313_v46, %v1056_v31  ;;  %v1057_v28 = vpop.f32.mrf.mxu1  ;;  %v1502_v9 = vpop.f32.mrf.mxu3  ;;  %v884_v46 = vsel %vm750_vm3, %v874_v16, %v883_v26 }
 0x13c   : > { %v1058_v5 = vadd.f32 %v1057_v28, %v4425_v8  ;;  %v4622_v28 = vshrl.u32 %v4052_v19, 16 }
 0x13d   : > { %v1590_v48 = vadd.f32 %v1492_v51, %v1411_v32  ;;  %v4611_v32 = vsel %vm1147_vm4, %v1194_v38, %v1198_v18  ;;  %v892_v18 = vor.u32 %v891_v41, %v888_v50  ;;  %v900_v50 = vrot.slane %v4573_v62, 7 }
 0x13f   : > { %v4603_v22 = vadd.f32 %v1704_v37, %v1590_v48 }
 0x142   : > { %v1315_v3 = vpop.f32.mrf.mxu2  ;;  %v1709_v43 = vpop.f32.mrf.mxu0 }
 0x143   : > { %v1412_v54 = vadd.f32 %v1315_v3, %v1058_v5  ;;  %v1060_v31 = vpop.f32.mrf.mxu1  ;;  %v1504_v53 = vpop.f32.mrf.mxu3  ;;  %v1200_v5 = vrot.slane %v4622_v28, 7 }
 0x144   : > { %v1061_v16 = vadd.f32 %v1060_v31, %v4441_v35 }
 0x145   : > { %v1591_v51 = vadd.f32 %v1494_v24, %v1412_v54  ;;  %3774 = vmatmul.msk.bf16.gmra.mxu0 %vm560_vm2, %v4109_v44 }
 0x146   : > { %3705 = vmatmul.msk.bf16.gmra.mxu1 %vm560_vm2, %v884_v46 }
 0x147   : > { %3728 = vmatmul.msk.bf16.gmra.mxu2 %vm560_vm2, %v4530_v21  ;;  %v4616_v8 = vadd.f32 %v1706_v61, %v1591_v51  ;;  %3753 = vmatmul.msk.bf16.gmra.mxu3 %vm560_vm2, %v4611_v32  ;;  %v4627_v61 = vshll.u32 %v4052_v19, 16 }
 0x149   : > { %5592 = vst [vmem:[#allocation49_spill] sm:$0xff] %v4616_v8  ;;  %v1201_v54 = vor.u32 %v1200_v5, %v4627_v61 }
 0x14a   : > { %v1318_v37 = vpop.f32.mrf.mxu2  ;;  %v1711_v24 = vpop.f32.mrf.mxu0 }
 0x14b   : > { %v1413_v44 = vadd.f32 %v1318_v37, %v1061_v16  ;;  %v1062_v38 = vpop.f32.mrf.mxu1  ;;  %v1507_v48 = vpop.f32.mrf.mxu3  ;;  %v893_v37 = vsel %vm750_vm3, %v883_v26, %v892_v18  ;;  %v4638_v19 = vsel %vm1147_vm4, %v1197_v4, %v1201_v54 }
 0x14c   : > { %v1063_v3 = vadd.f32 %v1062_v38, %v4458_v30  ;;  %v897_v38 = vrot.slane %v4568_v40, 6 }
 0x14d   : > { %v1592_v21 = vadd.f32 %v1497_v6, %v1413_v44  ;;  %v4649_v44 = vshrl.u32 %v4055_v20, 16 }
 0x14f   : > { %v4630_v35 = vadd.f32 %v1709_v43, %v1592_v21  ;;  %v1203_v21 = vrot.slane %v4649_v44, 7 }
 0x152   : > { %v1320_v31 = vpop.f32.mrf.mxu2  ;;  %v1714_v46 = vpop.f32.mrf.mxu0 }
 0x153   : > { %v1414_v51 = vadd.f32 %v1320_v31, %v1063_v3  ;;  %v1065_v16 = vpop.f32.mrf.mxu1  ;;  %v1509_v8 = vpop.f32.mrf.mxu3  ;;  %v901_v3 = vor.u32 %v900_v50, %v897_v38  ;;  %v909_v38 = vrot.slane %v4600_v29, 7  ;;  %v4681_v50 = vshll.u32 %v4088_v33, 16 }
 0x154   : > { %v1066_v26 = vadd.f32 %v1065_v16, %v4265_v39 }
 0x155   : > { %v1593_v6 = vadd.f32 %v1499_v60, %v1414_v51  ;;  %3775 = vmatmul.msk.bf16.gmra.mxu0 %vm560_vm2, %v4133_v56  ;;  %5594 = vst [vmem:[#allocation51_spill] sm:$0xff] %v4681_v50 }
 0x156   : > { %3706 = vmatmul.msk.bf16.gmra.mxu1 %vm560_vm2, %v893_v37 }
 0x157   : > { %3729 = vmatmul.msk.bf16.gmra.mxu2 %vm560_vm2, %v4557_v12  ;;  %v4643_v30 = vadd.f32 %v1711_v24, %v1593_v6  ;;  %3754 = vmatmul.msk.bf16.gmra.mxu3 %vm560_vm2, %v4638_v19  ;;  %v4654_v24 = vshll.u32 %v4055_v20, 16 }
 0x159   : > { %v1204_v31 = vor.u32 %v1203_v21, %v4654_v24 }
 0x15a   : > { %v1323_v43 = vpop.f32.mrf.mxu2  ;;  %v1716_v60 = vpop.f32.mrf.mxu0 }
 0x15b   : > { %v1415_v56 = vadd.f32 %v1323_v43, %v1066_v26  ;;  %v1067_v4 = vpop.f32.mrf.mxu1  ;;  %v1512_v41 = vpop.f32.mrf.mxu3  ;;  %v902_v26 = vsel %vm750_vm3, %v892_v18, %v901_v3  ;;  %v4665_v20 = vsel %vm1147_vm4, %v1200_v5, %v1204_v31 }
 0x15c   : > { %v1068_v54 = vadd.f32 %v1067_v4, %v4284_v49  ;;  %v906_v4 = vrot.slane %v4595_v55, 6 }
 0x15d   : > { %v1594_v12 = vadd.f32 %v1502_v9, %v1415_v56  ;;  %v4676_v56 = vshrl.u32 %v4088_v33, 16 }
 0x15f   : > { %v4657_v39 = vadd.f32 %v1714_v46, %v1594_v12  ;;  %5593 = vst [vmem:[#allocation50_spill] sm:$0xff] %v4676_v56  ;;  %v1206_v12 = vrot.slane %v4676_v56, 7 }
 0x162   : > { %v1325_v51 = vpop.f32.mrf.mxu2  ;;  %v1719_v16 = vpop.f32.mrf.mxu0 }
 0x163   : > { %v1416_v37 = vadd.f32 %v1325_v51, %v1068_v54  ;;  %v1070_v6 = vpop.f32.mrf.mxu1  ;;  %v1514_v43 = vpop.f32.mrf.mxu3  ;;  %v1207_v51 = vor.u32 %v1206_v12, %v4681_v50 }
 0x164   : > { %v1071_v18 = vadd.f32 %v1070_v6, %v4299_v0  ;;  %v910_v0 = vor.u32 %v909_v38, %v906_v4  ;;  %v915_v38 = vrot.slane %v4622_v28, 6 }
 0x165   : > { %v1595_v9 = vadd.f32 %v1504_v53, %v1416_v37  ;;  %3776 = vmatmul.msk.bf16.gmra.mxu0 %vm560_vm2, %v4164_v23  ;;  %v4692_v33 = vsel %vm1147_vm4, %v1203_v21, %v1207_v51 }
 0x166   : > { %3707 = vmatmul.msk.bf16.gmra.mxu1 %vm560_vm2, %v902_v26 }
 0x167   : > { %3730 = vmatmul.msk.bf16.gmra.mxu2 %vm560_vm2, %v4584_v13  ;;  %v4670_v49 = vadd.f32 %v1716_v60, %v1595_v9  ;;  %3755 = vmatmul.msk.bf16.gmra.mxu3 %vm560_vm2, %v4665_v20 }
 0x16a   : > { %v1328_v46 = vpop.f32.mrf.mxu2  ;;  %v1721_v53 = vpop.f32.mrf.mxu0 }
 0x16b   : > { %v1417_v23 = vadd.f32 %v1328_v46, %v1071_v18  ;;  %v1072_v5 = vpop.f32.mrf.mxu1  ;;  %v1517_v13 = vpop.f32.mrf.mxu3  ;;  %v911_v18 = vsel %vm750_vm3, %v901_v3, %v910_v0 }
 0x16c   : > { %v1073_v31 = vadd.f32 %v1072_v5, %v4320_v17  ;;  %v4703_v5 = vshrl.u32 %v4112_v45, 16 }
 0x16d   : > { %v1596_v60 = vadd.f32 %v1507_v48, %v1417_v23  ;;  %v3920_v23 = vld [vmem:[%s4028_s15 + $0x80] sm:$0xff] }
 0x16e   : > { %v1209_v51 = vrot.slane %v4703_v5, 7 }
 0x16f   : > { %v4684_v54 = vadd.f32 %v1719_v16, %v1596_v60  ;;  %v918_v60 = vrot.slane %v4627_v61, 7 }
 0x172   : > { %v1330_v37 = vpop.f32.mrf.mxu2  ;;  %v1724_v6 = vpop.f32.mrf.mxu0 }
 0x173   : > { %v1418_v26 = vadd.f32 %v1330_v37, %v1073_v31  ;;  %v1075_v9 = vpop.f32.mrf.mxu1  ;;  %v1519_v46 = vpop.f32.mrf.mxu3  ;;  %v4708_v31 = vshll.u32 %v4112_v45, 16 }
 0x174   : > { %v1076_v3 = vadd.f32 %v1075_v9, %v4335_v36  ;;  %v919_v36 = vor.u32 %v918_v60, %v915_v38  ;;  %v924_v60 = vrot.slane %v4649_v44, 6 }
 0x175   : > { %v1597_v48 = vadd.f32 %v1509_v8, %v1418_v26  ;;  %3777 = vmatmul.msk.bf16.gmra.mxu0 %vm560_vm2, %v3920_v23  ;;  %v1210_v9 = vor.u32 %v1209_v51, %v4708_v31 }
 0x176   : > { %3708 = vmatmul.msk.bf16.gmra.mxu1 %vm560_vm2, %v911_v18 }
 0x177   : > { %3731 = vmatmul.msk.bf16.gmra.mxu2 %vm560_vm2, %v4611_v32  ;;  %v4697_v17 = vadd.f32 %v1721_v53, %v1597_v48  ;;  %3756 = vmatmul.msk.bf16.gmra.mxu3 %vm560_vm2, %v4692_v33  ;;  %v4719_v45 = vsel %vm1147_vm4, %v1206_v12, %v1210_v9 }
 0x179   : > { %5595 = vst [vmem:[#allocation52_spill] sm:$0xff] %v4697_v17 }
 0x17a   : > { %v1333_v16 = vpop.f32.mrf.mxu2  ;;  %v1726_v8 = vpop.f32.mrf.mxu0 }
 0x17b   : > { %v1419_v4 = vadd.f32 %v1333_v16, %v1076_v3  ;;  %v1077_v21 = vpop.f32.mrf.mxu1  ;;  %v1522_v32 = vpop.f32.mrf.mxu3  ;;  %v920_v16 = vsel %vm750_vm3, %v910_v0, %v919_v36 }
 0x17c   : > { %v1078_v26 = vadd.f32 %v1077_v21, %v4356_v1  ;;  %v4730_v21 = vshrl.u32 %v4136_v57, 16 }
 0x17d   : > { %v1598_v53 = vadd.f32 %v1512_v41, %v1419_v4  ;;  %v3921_v4 = vld [vmem:[%s4028_s15 + $0x88] sm:$0xff] }
 0x17e   : > { %v1212_v9 = vrot.slane %v4730_v21, 7 }
 0x17f   : > { %v4711_v37 = vadd.f32 %v1724_v6, %v1598_v53  ;;  %v927_v53 = vrot.slane %v4654_v24, 7 }
 0x181   : > { %5596 = vst [vmem:[#allocation53_spill] sm:$0xff] %v4711_v37 }
 0x182   : > { %v1335_v18 = vpop.f32.mrf.mxu2  ;;  %v1729_v48 = vpop.f32.mrf.mxu0 }
 0x183   : > { %v1420_v23 = vadd.f32 %v1335_v18, %v1078_v26  ;;  %v1080_v3 = vpop.f32.mrf.mxu1  ;;  %v1524_v17 = vpop.f32.mrf.mxu3  ;;  %v4735_v26 = vshll.u32 %v4136_v57, 16 }
 0x184   : > { %v1081_v0 = vadd.f32 %v1080_v3, %v4371_v2  ;;  %v928_v2 = vor.u32 %v927_v53, %v924_v60  ;;  %v5602_v60 = vld [vmem:[#allocation36_spill] sm:$0xff] }
 0x185   : > { %v1599_v41 = vadd.f32 %v1514_v43, %v1420_v23  ;;  %3778 = vmatmul.msk.bf16.gmra.mxu0 %vm560_vm2, %v3921_v4  ;;  %5598 = vst [vmem:[#allocation55_spill] sm:$0xff] %v4735_v26  ;;  %v5600_v23 = vld [vmem:[#allocation32_spill] sm:$0xff] }
 0x186   : > { %3709 = vmatmul.msk.bf16.gmra.mxu1 %vm560_vm2, %v920_v16  ;;  %v1213_v16 = vor.u32 %v1212_v9, %v4735_v26 }
 0x187   : > { %3732 = vmatmul.msk.bf16.gmra.mxu2 %vm560_vm2, %v4638_v19  ;;  %v4724_v1 = vadd.f32 %v1726_v8, %v1599_v41  ;;  %3757 = vmatmul.msk.bf16.gmra.mxu3 %vm560_vm2, %v4719_v45 }
 0x189   : > { %5597 = vst [vmem:[#allocation54_spill] sm:$0xff] %v4724_v1  ;;  %v929_v1 = vsel %vm750_vm3, %v919_v36, %v928_v2  ;;  %v4758_v36 = vld [vmem:[%s4028_s15 + $0xa8] sm:$0xff] }
 0x18a   : > { %v1338_v6 = vpop.f32.mrf.mxu2  ;;  %v1731_v43 = vpop.f32.mrf.mxu0 }
 0x18b   : > { %v1421_v38 = vadd.f32 %v1338_v6, %v1081_v0  ;;  %v1082_v12 = vpop.f32.mrf.mxu1  ;;  %v1527_v19 = vpop.f32.mrf.mxu3 }
 0x18c   : > { %v1083_v3 = vadd.f32 %v1082_v12, %v5600_v23  ;;  %v4762_v23 = vshrl.u32 %v4758_v36, 16 }
 0x18d   : > { %v1600_v8 = vadd.f32 %v1517_v13, %v1421_v38  ;;  %v3922_v38 = vld [vmem:[%s4028_s15 + $0x90] sm:$0xff] }
 0x18e   : > { %5603 = vst [vmem:[#allocation36_spill] sm:$0xff] %v4762_v23 }
 0x18f   : > { %v4738_v18 = vadd.f32 %v1729_v48, %v1600_v8  ;;  %v4748_v48 = vsel %vm1147_vm4, %v1209_v51, %v1213_v16 }
 0x191   : > { %5599 = vst [vmem:[#allocation56_spill] sm:$0xff] %v4738_v18 }
 0x192   : > { %v1340_v41 = vpop.f32.mrf.mxu2  ;;  %v1734_v4 = vpop.f32.mrf.mxu0 }
 0x193   : > { %v1422_v0 = vadd.f32 %v1340_v41, %v1083_v3  ;;  %v1085_v6 = vpop.f32.mrf.mxu1  ;;  %v4743_v13 = vpop.f32.mrf.mxu3  ;;  %v1452_v41 = vrot.slane %v4762_v23, 7 }
 0x195   : > { %v1601_v57 = vadd.f32 %v1519_v46, %v1422_v0  ;;  %3779 = vmatmul.msk.bf16.gmra.mxu0 %vm560_vm2, %v3922_v38  ;;  %v1086_v46 = vadd.f32 %v1085_v6, %v5602_v60  ;;  %v4768_v0 = vshll.u32 %v4758_v36, 16  ;;  %v5606_v38 = vld [vmem:[#allocation39_spill] sm:$0xff] }
 0x196   : > { %3710 = vmatmul.msk.bf16.gmra.mxu1 %vm560_vm2, %v929_v1  ;;  %v933_v1 = vrot.slane %v4676_v56, 6 }
 0x197   : > { %3733 = vmatmul.msk.bf16.gmra.mxu2 %vm560_vm2, %v4665_v20  ;;  %v4753_v12 = vadd.f32 %v1731_v43, %v1601_v57  ;;  %3758 = vmatmul.msk.bf16.gmra.mxu3 %vm560_vm2, %v4748_v48  ;;  %v936_v20 = vrot.slane %v4681_v50, 7  ;;  %5604 = vst [vmem:[#allocation57_spill] sm:$0xff] %v4768_v0 }
 0x199   : > { %5601 = vst [vmem:[#allocation32_spill] sm:$0xff] %v4753_v12  ;;  %v937_v6 = vor.u32 %v936_v20, %v933_v1 }
 0x19a   : > { %v1343_v53 = vpop.f32.mrf.mxu2  ;;  %v1736_v8 = vpop.f32.mrf.mxu0 }
 0x19b   : > { %v1423_v51 = vadd.f32 %v1343_v53, %v1086_v46  ;;  %v1087_v3 = vpop.f32.mrf.mxu1  ;;  %v1532_v43 = vpop.f32.mrf.mxu3  ;;  %v1455_v46 = vor.u32 %v4768_v0, %v1452_v41  ;;  %v938_v50 = vsel %vm750_vm3, %v928_v2, %v937_v6 }
 0x19c   : > { %v1088_v60 = vadd.f32 %v1087_v3, %v5606_v38  ;;  %v5608_v3 = vld [vmem:[#allocation41_spill] sm:$0xff]  ;;  %v5610_v38 = vld [vmem:[#allocation43_spill] sm:$0xff] }
 0x19d   : > { %v1602_v16 = vadd.f32 %v1522_v32, %v1423_v51  ;;  %v3923_v51 = vld [vmem:[%s4028_s15 + $0x98] sm:$0xff]  ;;  %v1456_v23 = vsel %vm1147_vm4, %v1212_v9, %v1455_v46  ;;  %v945_v9 = vrot.slane %v4708_v31, 7 }
 0x19f   : > { %v4770_v57 = vadd.f32 %v1734_v4, %v1602_v16  ;;  %v942_v16 = vrot.slane %v4703_v5, 6 }
 0x1a1   : > { %5605 = vst [vmem:[#allocation58_spill] sm:$0xff] %v4770_v57 }
 0x1a2   : > { %v1345_v53 = vpop.f32.mrf.mxu2  ;;  %v1739_v12 = vpop.f32.mrf.mxu0 }
 0x1a3   : > { %v1424_v18 = vadd.f32 %v1345_v53, %v1088_v60  ;;  %v1090_v37 = vpop.f32.mrf.mxu1  ;;  %v1534_v56 = vpop.f32.mrf.mxu3 }
 0x1a4   : > { %v1091_v2 = vadd.f32 %v1090_v37, %v5608_v3  ;;  %v3925_v37 = vld [vmem:[%s4028_s15 + $0x10] sm:$0xff] }
 0x1a5   : > { %v1603_v32 = vadd.f32 %v1524_v17, %v1424_v18  ;;  %3780 = vmatmul.msk.bf16.gmra.mxu0 %vm560_vm2, %v3923_v51  ;;  %v2326_v53 = vrot.slane %v3925_v37, 1 }
 0x1a6   : > { %3711 = vmatmul.msk.bf16.gmra.mxu1 %vm560_vm2, %v938_v50 }
 0x1a7   : > { %3734 = vmatmul.msk.bf16.gmra.mxu2 %vm560_vm2, %v4692_v33  ;;  %v4781_v4 = vadd.f32 %v1736_v8, %v1603_v32  ;;  %3759 = vmatmul.msk.bf16.gmra.mxu3 %vm560_vm2, %v1456_v23  ;;  %v946_v33 = vor.u32 %v945_v9, %v942_v16  ;;  %v3924_v23 = vld [vmem:[%s4028_s15 + $0x8] sm:$0xff] }
 0x1a8   : > { %v2325_v46 = vrot.slane %v3924_v23, 1  ;;  %v954_v23 = vrot.slane %v4735_v26, 7 }
 0x1a9   : > { %5607 = vst [vmem:[#allocation39_spill] sm:$0xff] %v4781_v4 }
 0x1aa   : > { %v1348_v1 = vpop.f32.mrf.mxu2  ;;  %v1741_v17 = vpop.f32.mrf.mxu0 }
 0x1ab   : > { %v1425_v18 = vadd.f32 %v1348_v1, %v1091_v2  ;;  %v1092_v20 = vpop.f32.mrf.mxu1  ;;  %v4787_v50 = vpop.f32.mrf.mxu3  ;;  %v947_v1 = vsel %vm750_vm3, %v937_v6, %v946_v33  ;;  %v5612_v6 = vld [vmem:[#allocation12_spill] sm:$0xff] }
 0x1ac   : > { %v1093_v60 = vadd.f32 %v1092_v20, %v5610_v38 }
 0x1ad   : > { %v1604_v41 = vadd.f32 %v1527_v19, %v1425_v18  ;;  %v3926_v18 = vld [vmem:[%s4028_s15 + $0xa0] sm:$0xff] }
 0x1af   : > { %v4789_v8 = vadd.f32 %v1739_v12, %v1604_v41  ;;  %v2327_v12 = vsel %vm2324_vm5, %v2325_v46, %v2326_v53 }
 0x1b1   : > { %5609 = vst [vmem:[#allocation41_spill] sm:$0xff] %v4789_v8  ;;  %v3928_v8 = vld [vmem:[%s4028_s15 + $0x20] sm:$0xff] }
 0x1b2   : > { %v1350_v32 = vpop.f32.mrf.mxu2  ;;  %v1744_v51 = vpop.f32.mrf.mxu0  ;;  %v2330_v0 = vrot.slane %v3928_v8, 1  ;;  %v2975_v8 = vld [vmem:[%s4839_s9 + $0x8] sm:$0xff] }
 0x1b3   : > { %v1426_v3 = vadd.f32 %v1350_v32, %v1093_v60  ;;  %v1095_v2 = vpop.f32.mrf.mxu1  ;;  %v4795_v4 = vpop.f32.mrf.mxu3  ;;  %v951_v60 = vrot.slane %v4730_v21, 6 }
 0x1b4   : > { %v1096_v16 = vadd.f32 %v1095_v2, %v5612_v6 }
 0x1b5   : > { %v1605_v19 = vadd.f32 %v4743_v13, %v1426_v3  ;;  %3781 = vmatmul.msk.bf16.gmra.mxu0 %vm560_vm2, %v3926_v18  ;;  %v955_v32 = vor.u32 %v954_v23, %v951_v60 }
 0x1b6   : > { %3712 = vmatmul.msk.bf16.gmra.mxu1 %vm560_vm2, %v947_v1  ;;  %v3927_v1 = vld [vmem:[%s4028_s15 + $0x18] sm:$0xff] }
 0x1b7   : > { %3735 = vmatmul.msk.bf16.gmra.mxu2 %vm560_vm2, %v4719_v45  ;;  %v4804_v20 = vadd.f32 %v1741_v17, %v1605_v19  ;;  %3830 = vmatmul.msk.bf16.vlgmr.msra.gmra.mxu3 %vm560_vm2, %v2327_v12  ;;  %v5614_v17 = vld [vmem:[#allocation16_spill] sm:$0xff]  ;;  %v2328_v19 = vrot.slane %v3927_v1, 1 }
 0x1b9   : > { %5611 = vst [vmem:[#allocation43_spill] sm:$0xff] %v4804_v20 }
 0x1ba   : > { %v1353_v9 = vpop.f32.mrf.mxu2  ;;  %v1746_v41 = vpop.f32.mrf.mxu0 }
 0x1bb   : > { %v1427_v13 = vadd.f32 %v1353_v9, %v1096_v16  ;;  %v1097_v38 = vpop.f32.mrf.mxu1  ;;  %v4810_v46 = vpop.f32.mrf.mxu3  ;;  %v956_v16 = vsel %vm750_vm3, %v946_v33, %v955_v32  ;;  %v5616_v33 = vld [vmem:[#allocation18_spill] sm:$0xff] }
 0x1bc   : > { %v1098_v3 = vadd.f32 %v1097_v38, %v5614_v17  ;;  %v5619_v32 = vld [vmem:[#allocation6_spill] sm:$0xff]  ;;  %v5620_v17 = vld [vmem:[#allocation7_spill] sm:$0xff] }
 0x1bd   : > { %v1606_v37 = vadd.f32 %v1532_v43, %v1427_v13  ;;  %v2329_v43 = vsel %vm2324_vm5, %v2326_v53, %v2328_v19  ;;  %v2608_v53 = vrot.slane %v5619_v32, 1 }
 0x1bf   : > { %v4812_v45 = vadd.f32 %v1744_v51, %v1606_v37  ;;  %v5618_v37 = vld [vmem:[#allocation5_spill] sm:$0xff] }
 0x1c1   : > { %5613 = vst [vmem:[#allocation12_spill] sm:$0xff] %v4812_v45  ;;  %v5622_v45 = vld [vmem:[#allocation2_spill] sm:$0xff] }
 0x1c2   : > { %v1355_v2 = vpop.f32.mrf.mxu2  ;;  %v1749_v18 = vpop.f32.mrf.mxu0 }
 0x1c3   : > { %v1428_v12 = vadd.f32 %v1355_v2, %v1098_v3  ;;  %v1100_v6 = vpop.f32.mrf.mxu1  ;;  %v4817_v9 = vpop.f32.mrf.mxu3  ;;  %v2609_v3 = vrot.slane %v5620_v17, 2 }
 0x1c4   : > { %v1101_v13 = vadd.f32 %v1100_v6, %v5616_v33 }
 0x1c5   : > { %v1607_v20 = vadd.f32 %v1534_v56, %v1428_v12  ;;  %3782 = vmatmul.msk.bf16.gmra.mxu0 %vm560_vm2, %v4758_v36  ;;  %v5617_v56 = vld [vmem:[#allocation4_spill] sm:$0xff]  ;;  %v2606_v36 = vrot.slane %v5618_v37, 2  ;;  %v1843_v12 = vrot.slane %v5618_v37, 1  ;;  %v5624_v37 = vld [vmem:[#allocation22_spill] sm:$0xff] }
 0x1c6   : > { %3713 = vmatmul.msk.bf16.gmra.mxu1 %vm560_vm2, %v956_v16  ;;  %v2605_v23 = vrot.slane %v5617_v56, 1  ;;  %v3954_v16 = vmov 0  }
 0x1c7   : > { %3736 = vmatmul.msk.bf16.gmra.mxu2 %vm560_vm2, %v4748_v48  ;;  %v4826_v51 = vadd.f32 %v1746_v41, %v1607_v20  ;;  %3831 = vmatmul.msk.bf16.gmra.mxu3 %vm560_vm2, %v2329_v43  ;;  %v5621_v41 = vld [vmem:[#allocation3_spill] sm:$0xff]  ;;  %v2974_v43 = vld [vmem:[%s4839_s9] sm:$0xff] }
 0x1c8   : > { %v1841_v1 = vrot.slane %v5621_v41, 1  ;;  %3917 = vset.pattern.permute.xlu0 %v3954_v16  ;;  %3918 = vset.pattern.permute.xlu1 %v3954_v16  ;;  %v2607_v33 = vor.u32 %v2606_v36, %v2605_v23  ;;  %v1845_v41 = vor.u32 %v1843_v12, %v5617_v56 }
 0x1c9   : > { %5615 = vst [vmem:[#allocation16_spill] sm:$0xff] %v4826_v51  ;;  %v2610_v51 = vor.u32 %v2609_v3, %v2608_v53  ;;  %3020 = vperm.xlu0 %3917, %v2974_v43   ;;  %3919 = vset.pattern.permute.xlu2 %v3954_v16  ;;  %v5627_v16 = vld [vmem:[#allocation8_spill] sm:$0xff] }
 0x1ca   : > { %v1358_v38 = vpop.f32.mrf.mxu2  ;;  %v1751_v60 = vpop.f32.mrf.mxu0  ;;  %v2612_v43 = vrot.slane %v5627_v16, 1 }
 0x1cb   : > { %v1429_v48 = vadd.f32 %v1358_v38, %v1101_v13  ;;  %v1102_v20 = vpop.f32.mrf.mxu1  ;;  %v4842_v2 = vpop.f32.mrf.mxu3  ;;  %v1842_v13 = vor.u32 %v1841_v1, %v5622_v45  ;;  %v2611_v36 = vsel %vm2604_vm6, %v2607_v33, %v2610_v51  ;;  %v5628_v33 = vld [vmem:[#allocation9_spill] sm:$0xff] }
 0x1cd   : > { %v1608_v6 = vadd.f32 %v4787_v50, %v1429_v48  ;;  %v1846_v50 = vrot.slane %v5620_v17, 1  ;;  %v1103_v48 = vadd.f32 %v1102_v20, %v5624_v37  ;;  %v1844_v45 = vsel %vm1840_vm7, %v1842_v13, %v1843_v12  ;;  %v5626_v20 = vld [vmem:[#allocation24_spill] sm:$0xff] }
 0x1ce   : > { %v2331_v17 = vsel %vm2324_vm5, %v2328_v19, %v2330_v0  ;;  %v2613_v19 = vrot.slane %v5628_v33, 2 }
 0x1cf   : > { %v4848_v38 = vadd.f32 %v1749_v18, %v1608_v6  ;;  %v1847_v1 = vsel %vm1840_vm7, %v1845_v41, %v1846_v50 }
 0x1d1   : > { %5623 = vst [vmem:[#allocation18_spill] sm:$0xff] %v4848_v38  ;;  %3025 = vperm.xlu0 %3917, %v2975_v8   ;;  %v3929_v8 = vld [vmem:[%s4028_s15 + $0x28] sm:$0xff] }
 0x1d2   : > { %v1360_v57 = vpop.f32.mrf.mxu2  ;;  %v1754_v23 = vpop.f32.mrf.mxu0 }
 0x1d3   : > { %v1430_v53 = vadd.f32 %v1360_v57, %v1103_v48  ;;  %v1105_v3 = vpop.f32.mrf.mxu1  ;;  %v4856_v18 = vpop.f32.mrf.mxu3 }
 0x1d4   : > { %v1106_v12 = vadd.f32 %v1105_v3, %v5626_v20  ;;  %v1848_v3 = vor.u32 %v1846_v50, %v5619_v32  ;;  %v2332_v20 = vrot.slane %v3929_v8, 1  ;;  %v2977_v50 = vld [vmem:[%s4839_s9 + $0x18] sm:$0xff] }
 0x1d5   : > { %v1609_v56 = vadd.f32 %v4795_v4, %v1430_v53  ;;  %3853 = vmatmul.msk.bf16.vlgmr.msra.gmra.mxu0 %vm560_vm2, %v2611_v36  ;;  %v2976_v36 = vld [vmem:[%s4839_s9 + $0x10] sm:$0xff] }
 0x1d6   : > { %3784 = vmatmul.msk.bf16.vlgmr.msra.gmra.mxu1 %vm560_vm2, %v1844_v45  ;;  %3030 = vperm.xlu1 %3918, %v2976_v36   ;;  %v1849_v45 = vrot.slane %v5628_v33, 1  ;;  %v2333_v32 = vsel %vm2324_vm5, %v2330_v0, %v2332_v20 }
 0x1d7   : > { %3807 = vmatmul.msk.bf16.vlgmr.msra.gmra.mxu2 %vm560_vm2, %v1847_v1  ;;  %v4865_v57 = vadd.f32 %v1751_v60, %v1609_v56  ;;  %3832 = vmatmul.msk.bf16.gmra.mxu3 %vm560_vm2, %v2331_v17  ;;  %v2614_v60 = vor.u32 %v2613_v19, %v2612_v43  ;;  %v5630_v56 = vld [vmem:[#allocation28_spill] sm:$0xff] }
 0x1d8   : > { %v1851_v8 = vor.u32 %v1849_v45, %v5627_v16 }
 0x1d9   : > { %5625 = vst [vmem:[#allocation4_spill] sm:$0xff] %v4865_v57  ;;  %v2615_v57 = vsel %vm2604_vm6, %v2610_v51, %v2614_v60  ;;  %v5632_v51 = vld [vmem:[#allocation30_spill] sm:$0xff] }
 0x1da   : > { %v1363_v6 = vpop.f32.mrf.mxu2  ;;  %v1756_v4 = vpop.f32.mrf.mxu0 }
 0x1db   : > { %v1431_v13 = vadd.f32 %v1363_v6, %v1106_v12  ;;  %v1107_v41 = vpop.f32.mrf.mxu1  ;;  %v4871_v37 = vpop.f32.mrf.mxu3 }
 0x1dc   : > { %v1108_v17 = vadd.f32 %v1107_v41, %v5630_v56 }
 0x1dd   : > { %v1610_v48 = vadd.f32 %v4810_v46, %v1431_v13 }
 0x1de   : > { %3035 = vperm.xlu1 %3918, %v2977_v50  }
 0x1df   : > { %v4875_v53 = vadd.f32 %v1754_v23, %v1610_v48  ;;  %v1850_v23 = vsel %vm1840_vm7, %v1848_v3, %v1849_v45 }
 0x1e1   : > { %5629 = vst [vmem:[#allocation5_spill] sm:$0xff] %v4875_v53 }
 0x1e2   : > { %v1365_v12 = vpop.f32.mrf.mxu2  ;;  %v1759_v6 = vpop.f32.mrf.mxu0 }
 0x1e3   : > { %v1432_v38 = vadd.f32 %v1365_v12, %v1108_v17  ;;  %v1110_v46 = vpop.f32.mrf.mxu1  ;;  %v4882_v13 = vpop.f32.mrf.mxu3 }
 0x1e4   : > { %v1111_v19 = vadd.f32 %v1110_v46, %v5632_v51  ;;  %v5635_v46 = vld [vmem:[#allocation35_spill] sm:$0xff] }
 0x1e5   : > { %v1611_v43 = vadd.f32 %v4817_v9, %v1432_v38  ;;  %3854 = vmatmul.msk.bf16.gmra.mxu0 %vm560_vm2, %v2615_v57  ;;  %v5633_v9 = vld [vmem:[#allocation10_spill] sm:$0xff]  ;;  %v5634_v57 = vld [vmem:[#allocation11_spill] sm:$0xff] }
 0x1e6   : > { %3785 = vmatmul.msk.bf16.gmra.mxu1 %vm560_vm2, %v1847_v1  ;;  %v2616_v38 = vrot.slane %v5633_v9, 1  ;;  %v2617_v36 = vrot.slane %v5634_v57, 2  ;;  %v1852_v12 = vrot.slane %v5634_v57, 1 }
 0x1e7   : > { %3808 = vmatmul.msk.bf16.gmra.mxu2 %vm560_vm2, %v1850_v23  ;;  %v4891_v33 = vadd.f32 %v1756_v4, %v1611_v43  ;;  %3833 = vmatmul.msk.bf16.gmra.mxu3 %vm560_vm2, %v2333_v32  ;;  %v3930_v32 = vld [vmem:[%s4028_s15 + $0x30] sm:$0xff] }
 0x1e8   : > { %v2618_v17 = vor.u32 %v2617_v36, %v2616_v38  ;;  %v2334_v50 = vrot.slane %v3930_v32, 1 }
 0x1e9   : > { %5631 = vst [vmem:[#allocation6_spill] sm:$0xff] %v4891_v33 }
 0x1ea   : > { %v1368_v41 = vpop.f32.mrf.mxu2  ;;  %v1761_v48 = vpop.f32.mrf.mxu0  ;;  %v2335_v16 = vsel %vm2324_vm5, %v2332_v20, %v2334_v50 }
 0x1eb   : > { %v1433_v0 = vadd.f32 %v1368_v41, %v1111_v19  ;;  %v1112_v3 = vpop.f32.mrf.mxu1  ;;  %v4897_v56 = vpop.f32.mrf.mxu3  ;;  %v2619_v19 = vsel %vm2604_vm6, %v2614_v60, %v2618_v17  ;;  %v5637_v60 = vld [vmem:[#allocation38_spill] sm:$0xff] }
 0x1ec   : > { %v1113_v43 = vadd.f32 %v1112_v3, %v5635_v46  ;;  %v5639_v3 = vld [vmem:[#allocation15_spill] sm:$0xff] }
 0x1ed   : > { %v1612_v1 = vadd.f32 %v4842_v2, %v1433_v0  ;;  %v1853_v2 = vsel %vm1840_vm7, %v1851_v8, %v1852_v12  ;;  %v5638_v0 = vld [vmem:[#allocation13_spill] sm:$0xff] }
 0x1ef   : > { %v4900_v4 = vadd.f32 %v1759_v6, %v1612_v1  ;;  %v2621_v1 = vrot.slane %v5639_v3, 2 }
 0x1f2   : > { %v1370_v51 = vpop.f32.mrf.mxu2  ;;  %v1764_v33 = vpop.f32.mrf.mxu0 }
 0x1f3   : > { %v1434_v41 = vadd.f32 %v1370_v51, %v1113_v43  ;;  %v1115_v53 = vpop.f32.mrf.mxu1  ;;  %v4907_v26 = vpop.f32.mrf.mxu3  ;;  %v2980_v43 = vld [vmem:[%s4839_s9 + $0x30] sm:$0xff]  ;;  %v1855_v51 = vrot.slane %v5639_v3, 1  ;;  %v2981_v3 = vld [vmem:[%s4839_s9 + $0x38] sm:$0xff] }
 0x1f4   : > { %v1116_v38 = vadd.f32 %v1115_v53, %v5637_v60  ;;  %3050 = vperm.xlu0 %3917, %v2980_v43   ;;  %v1854_v53 = vor.u32 %v1852_v12, %v5633_v9  ;;  %v2978_v12 = vld [vmem:[%s4839_s9 + $0x20] sm:$0xff]  ;;  %3055 = vperm.xlu1 %3918, %v2981_v3  }
 0x1f5   : > { %v1613_v6 = vadd.f32 %v4856_v18, %v1434_v41  ;;  %3855 = vmatmul.msk.bf16.gmra.mxu0 %vm560_vm2, %v2619_v19  ;;  %v2620_v18 = vrot.slane %v5638_v0, 1  ;;  %v5641_v19 = vld [vmem:[#allocation40_spill] sm:$0xff]  ;;  %3040 = vperm.xlu2 %3919, %v2978_v12  }
 0x1f6   : > { %3786 = vmatmul.msk.bf16.gmra.mxu1 %vm560_vm2, %v1850_v23  ;;  %v5647_v12 = vld [vmem:[#allocation44_spill] sm:$0xff] }
 0x1f7   : > { %3809 = vmatmul.msk.bf16.gmra.mxu2 %vm560_vm2, %v1853_v2  ;;  %v4915_v45 = vadd.f32 %v1761_v48, %v1613_v6  ;;  %3834 = vmatmul.msk.bf16.gmra.mxu3 %vm560_vm2, %v2335_v16  ;;  %v2622_v48 = vor.u32 %v2621_v1, %v2620_v18  ;;  %v3931_v6 = vld [vmem:[%s4028_s15 + $0x38] sm:$0xff] }
 0x1f8   : > { %v2336_v16 = vrot.slane %v3931_v6, 1 }
 0x1f9   : > { %5636 = vst [vmem:[#allocation7_spill] sm:$0xff] %v4915_v45 }
 0x1fa   : > { %v1373_v57 = vpop.f32.mrf.mxu2  ;;  %v1766_v36 = vpop.f32.mrf.mxu0  ;;  %v2337_v9 = vsel %vm2324_vm5, %v2334_v50, %v2336_v16 }
 0x1fb   : > { %v1435_v8 = vadd.f32 %v1373_v57, %v1116_v38  ;;  %v1117_v46 = vpop.f32.mrf.mxu1  ;;  %v4921_v20 = vpop.f32.mrf.mxu3  ;;  %v2623_v57 = vsel %vm2604_vm6, %v2618_v17, %v2622_v48 }
 0x1fc   : > { %v1118_v41 = vadd.f32 %v1117_v46, %v5641_v19  ;;  %v5643_v46 = vld [vmem:[#allocation42_spill] sm:$0xff]  ;;  %v5645_v19 = vld [vmem:[#allocation21_spill] sm:$0xff] }
 0x1fd   : > { %v1614_v23 = vadd.f32 %v4871_v37, %v1435_v8 }
 0x1ff   : > { %v4925_v32 = vadd.f32 %v1764_v33, %v1614_v23  ;;  %v1856_v33 = vsel %vm1840_vm7, %v1854_v53, %v1855_v51  ;;  %v5644_v53 = vld [vmem:[#allocation19_spill] sm:$0xff] }
 0x200   : > { %v2624_v50 = vrot.slane %v5644_v53, 1 }
 0x201   : > { %5640 = vst [vmem:[#allocation3_spill] sm:$0xff] %v4925_v32 }
 0x202   : > { %v1375_v60 = vpop.f32.mrf.mxu2  ;;  %v1769_v38 = vpop.f32.mrf.mxu0 }
 0x203   : > { %v1436_v37 = vadd.f32 %v1375_v60, %v1118_v41  ;;  %v1120_v8 = vpop.f32.mrf.mxu1  ;;  %v4932_v18 = vpop.f32.mrf.mxu3  ;;  %v2625_v41 = vrot.slane %v5645_v19, 2 }
 0x204   : > { %v1121_v23 = vadd.f32 %v1120_v8, %v5643_v46  ;;  %v1857_v8 = vor.u32 %v1855_v51, %v5638_v0  ;;  %v3932_v46 = vld [vmem:[%s4028_s15 + $0x40] sm:$0xff]  ;;  %v2983_v51 = vld [vmem:[%s4839_s9 + $0x48] sm:$0xff] }
 0x205   : > { %v1615_v1 = vadd.f32 %v4882_v13, %v1436_v37  ;;  %3856 = vmatmul.msk.bf16.gmra.mxu0 %vm560_vm2, %v2623_v57  ;;  %v2979_v37 = vld [vmem:[%s4839_s9 + $0x28] sm:$0xff]  ;;  %3065 = vperm.xlu0 %3917, %v2983_v51  }
 0x206   : > { %3787 = vmatmul.msk.bf16.gmra.mxu1 %vm560_vm2, %v1853_v2  ;;  %3045 = vperm.xlu2 %3919, %v2979_v37   ;;  %v3933_v51 = vld [vmem:[%s4028_s15 + $0x48] sm:$0xff] }
 0x207   : > { %3810 = vmatmul.msk.bf16.gmra.mxu2 %vm560_vm2, %v1856_v33  ;;  %v4942_v17 = vadd.f32 %v1766_v36, %v1615_v1  ;;  %3835 = vmatmul.msk.bf16.gmra.mxu3 %vm560_vm2, %v2337_v9  ;;  %v2626_v36 = vor.u32 %v2625_v41, %v2624_v50  ;;  %v1858_v9 = vrot.slane %v5645_v19, 1  ;;  %v5649_v19 = vld [vmem:[#allocation14_spill] sm:$0xff] }
 0x209   : > { %5642 = vst [vmem:[#allocation2_spill] sm:$0xff] %v4942_v17  ;;  %v2338_v17 = vrot.slane %v3932_v46, 1  ;;  %v2627_v32 = vsel %vm2604_vm6, %v2622_v48, %v2626_v36 }
 0x20a   : > { %v1378_v13 = vpop.f32.mrf.mxu2  ;;  %v1771_v43 = vpop.f32.mrf.mxu0 }
 0x20b   : > { %v1437_v6 = vadd.f32 %v1378_v13, %v1121_v23  ;;  %v1122_v60 = vpop.f32.mrf.mxu1  ;;  %v4948_v2 = vpop.f32.mrf.mxu3  ;;  %v2339_v0 = vsel %vm2324_vm5, %v2336_v16, %v2338_v17 }
 0x20c   : > { %v1123_v3 = vadd.f32 %v1122_v60, %v5647_v12 }
 0x20d   : > { %v1616_v57 = vadd.f32 %v4897_v56, %v1437_v6 }
 0x20f   : > { %v4952_v1 = vadd.f32 %v1769_v38, %v1616_v57  ;;  %v1859_v38 = vsel %vm1840_vm7, %v1857_v8, %v1858_v9  ;;  %v5651_v57 = vld [vmem:[#allocation27_spill] sm:$0xff] }
 0x210   : > { %v2629_v16 = vrot.slane %v5651_v57, 2 }
 0x211   : > { %5646 = vst [vmem:[#allocation22_spill] sm:$0xff] %v4952_v1 }
 0x212   : > { %v1380_v23 = vpop.f32.mrf.mxu2  ;;  %v1774_v13 = vpop.f32.mrf.mxu0 }
 0x213   : > { %v1438_v45 = vadd.f32 %v1380_v23, %v1123_v3  ;;  %v1125_v56 = vpop.f32.mrf.mxu1  ;;  %v4959_v6 = vpop.f32.mrf.mxu3  ;;  %v2984_v3 = vld [vmem:[%s4839_s9 + $0x50] sm:$0xff]  ;;  %v1860_v23 = vor.u32 %v1858_v9, %v5644_v53  ;;  %v2982_v9 = vld [vmem:[%s4839_s9 + $0x40] sm:$0xff] }
 0x214   : > { %v1126_v41 = vadd.f32 %v1125_v56, %v5649_v19  ;;  %3070 = vperm.xlu1 %3918, %v2984_v3   ;;  %v1861_v56 = vrot.slane %v5651_v57, 1  ;;  %v2340_v19 = vrot.slane %v3933_v51, 1  ;;  %3060 = vperm.xlu2 %3919, %v2982_v9   ;;  %v5655_v57 = vld [vmem:[#allocation20_spill] sm:$0xff] }
 0x215   : > { %v1617_v50 = vadd.f32 %v4907_v26, %v1438_v45  ;;  %3857 = vmatmul.msk.bf16.gmra.mxu0 %vm560_vm2, %v2627_v32  ;;  %v5650_v45 = vld [vmem:[#allocation25_spill] sm:$0xff]  ;;  %v3934_v9 = vld [vmem:[%s4028_s15 + $0x50] sm:$0xff] }
 0x216   : > { %3788 = vmatmul.msk.bf16.gmra.mxu1 %vm560_vm2, %v1856_v33  ;;  %v2628_v32 = vrot.slane %v5650_v45, 1  ;;  %v2341_v53 = vsel %vm2324_vm5, %v2338_v17, %v2340_v19 }
 0x217   : > { %3811 = vmatmul.msk.bf16.gmra.mxu2 %vm560_vm2, %v1859_v38  ;;  %v4968_v48 = vadd.f32 %v1771_v43, %v1617_v50  ;;  %3836 = vmatmul.msk.bf16.gmra.mxu3 %vm560_vm2, %v2339_v0  ;;  %v5653_v50 = vld [vmem:[#allocation17_spill] sm:$0xff] }
 0x218   : > { %v2630_v43 = vor.u32 %v2629_v16, %v2628_v32 }
 0x219   : > { %5648 = vst [vmem:[#allocation24_spill] sm:$0xff] %v4968_v48 }
 0x21a   : > { %v1383_v60 = vpop.f32.mrf.mxu2  ;;  %v1776_v26 = vpop.f32.mrf.mxu0  ;;  %v2631_v48 = vsel %vm2604_vm6, %v2626_v36, %v2630_v43 }
 0x21b   : > { %v1439_v37 = vadd.f32 %v1383_v60, %v1126_v41  ;;  %v1127_v8 = vpop.f32.mrf.mxu1  ;;  %v4974_v12 = vpop.f32.mrf.mxu3 }
 0x21c   : > { %v1128_v0 = vadd.f32 %v1127_v8, %v5653_v50 }
 0x21d   : > { %v1618_v33 = vadd.f32 %v4921_v20, %v1439_v37 }
 0x21f   : > { %v4978_v46 = vadd.f32 %v1774_v13, %v1618_v33  ;;  %v1862_v13 = vsel %vm1840_vm7, %v1860_v23, %v1861_v56  ;;  %v5657_v33 = vld [vmem:[#allocation34_spill] sm:$0xff] }
 0x220   : > { %v2633_v17 = vrot.slane %v5657_v33, 2 }
 0x221   : > { %5652 = vst [vmem:[#allocation8_spill] sm:$0xff] %v4978_v46 }
 0x222   : > { %v1385_v41 = vpop.f32.mrf.mxu2  ;;  %v1779_v60 = vpop.f32.mrf.mxu0 }
 0x223   : > { %v1440_v1 = vadd.f32 %v1385_v41, %v1128_v0  ;;  %v1130_v20 = vpop.f32.mrf.mxu1  ;;  %v4985_v37 = vpop.f32.mrf.mxu3  ;;  %v2986_v0 = vld [vmem:[%s4839_s9 + $0x60] sm:$0xff]  ;;  %v1863_v41 = vor.u32 %v1861_v56, %v5650_v45  ;;  %v2987_v56 = vld [vmem:[%s4839_s9 + $0x68] sm:$0xff] }
 0x224   : > { %v1131_v16 = vadd.f32 %v1130_v20, %v5655_v57  ;;  %3080 = vperm.xlu0 %3917, %v2986_v0   ;;  %v1864_v20 = vrot.slane %v5657_v33, 1  ;;  %v2342_v57 = vrot.slane %v3934_v9, 1  ;;  %3085 = vperm.xlu1 %3918, %v2987_v56   ;;  %v5659_v33 = vld [vmem:[#allocation26_spill] sm:$0xff]  ;;  %v1867_v9 = vrot.slane %v4435_v10, 1 }
 0x225   : > { %v1619_v32 = vadd.f32 %v4932_v18, %v1440_v1  ;;  %3858 = vmatmul.msk.bf16.gmra.mxu0 %vm560_vm2, %v2631_v48  ;;  %v5656_v1 = vld [vmem:[#allocation31_spill] sm:$0xff] }
 0x226   : > { %3789 = vmatmul.msk.bf16.gmra.mxu1 %vm560_vm2, %v1859_v38  ;;  %v2632_v48 = vrot.slane %v5656_v1, 1  ;;  %v2343_v45 = vsel %vm2324_vm5, %v2340_v19, %v2342_v57  ;;  %v2637_v19 = vrot.slane %v4435_v10, 2 }
 0x227   : > { %3812 = vmatmul.msk.bf16.gmra.mxu2 %vm560_vm2, %v1862_v13  ;;  %v4994_v36 = vadd.f32 %v1776_v26, %v1619_v32  ;;  %3837 = vmatmul.msk.bf16.gmra.mxu3 %vm560_vm2, %v2341_v53  ;;  %v5658_v32 = vld [vmem:[#allocation23_spill] sm:$0xff] }
 0x228   : > { %v2634_v26 = vor.u32 %v2633_v17, %v2632_v48 }
 0x229   : > { %5654 = vst [vmem:[#allocation9_spill] sm:$0xff] %v4994_v36 }
 0x22a   : > { %v1388_v8 = vpop.f32.mrf.mxu2  ;;  %v1781_v18 = vpop.f32.mrf.mxu0  ;;  %v2635_v36 = vsel %vm2604_vm6, %v2630_v43, %v2634_v26 }
 0x22b   : > { %v1441_v3 = vadd.f32 %v1388_v8, %v1131_v16  ;;  %v1132_v23 = vpop.f32.mrf.mxu1  ;;  %v5000_v50 = vpop.f32.mrf.mxu3 }
 0x22c   : > { %v1133_v53 = vadd.f32 %v1132_v23, %v5658_v32 }
 0x22d   : > { %v1620_v38 = vadd.f32 %v4948_v2, %v1441_v3 }
 0x22f   : > { %v5004_v51 = vadd.f32 %v1779_v60, %v1620_v38  ;;  %v1865_v60 = vsel %vm1840_vm7, %v1863_v41, %v1864_v20  ;;  %v2985_v41 = vld [vmem:[%s4839_s9 + $0x58] sm:$0xff] }
 0x230   : > { %3075 = vperm.xlu2 %3919, %v2985_v41  }
 0x232   : > { %v1390_v16 = vpop.f32.mrf.mxu2  ;;  %v1784_v8 = vpop.f32.mrf.mxu0 }
 0x233   : > { %v1442_v46 = vadd.f32 %v1390_v16, %v1133_v53  ;;  %v1135_v2 = vpop.f32.mrf.mxu1  ;;  %v5011_v3 = vpop.f32.mrf.mxu3  ;;  %v1866_v53 = vor.u32 %v1864_v20, %v5656_v1  ;;  %v5660_v16 = vld [vmem:[#allocation29_spill] sm:$0xff] }
 0x234   : > { %v1136_v17 = vadd.f32 %v1135_v2, %v5659_v33  ;;  %v2989_v1 = vld [vmem:[%s4839_s9 + $0x78] sm:$0xff] }
 0x235   : > { %v1621_v48 = vadd.f32 %v4959_v6, %v1442_v46  ;;  %3859 = vmatmul.msk.bf16.gmra.mxu0 %vm560_vm2, %v2635_v36  ;;  %v2636_v46 = vrot.slane %v4428_v34, 1  ;;  %3095 = vperm.xlu0 %3917, %v2989_v1   ;;  %v5661_v20 = vld [vmem:[#allocation33_spill] sm:$0xff] }
 0x236   : > { %3790 = vmatmul.msk.bf16.gmra.mxu1 %vm560_vm2, %v1862_v13 }
 0x237   : > { %3813 = vmatmul.msk.bf16.gmra.mxu2 %vm560_vm2, %v1865_v60  ;;  %v5020_v43 = vadd.f32 %v1781_v18, %v1621_v48  ;;  %3838 = vmatmul.msk.bf16.gmra.mxu3 %vm560_vm2, %v2343_v45  ;;  %v2638_v18 = vor.u32 %v2637_v19, %v2636_v46  ;;  %v3935_v48 = vld [vmem:[%s4028_s15 + $0x58] sm:$0xff] }
 0x238   : > { %v2344_v45 = vrot.slane %v3935_v48, 1 }
 0x23a   : > { %v1393_v23 = vpop.f32.mrf.mxu2  ;;  %v1786_v6 = vpop.f32.mrf.mxu0  ;;  %v2345_v10 = vsel %vm2324_vm5, %v2342_v57, %v2344_v45  ;;  %v2641_v57 = vrot.slane %v4468_v11, 2 }
 0x23b   : > { %v1443_v36 = vadd.f32 %v1393_v23, %v1136_v17  ;;  %v1137_v38 = vpop.f32.mrf.mxu1  ;;  %v5026_v0 = vpop.f32.mrf.mxu3  ;;  %v2639_v17 = vsel %vm2604_vm6, %v2634_v26, %v2638_v18 }
 0x23c   : > { %v1138_v2 = vadd.f32 %v1137_v38, %v5660_v16 }
 0x23d   : > { %v1622_v13 = vadd.f32 %v4974_v12, %v1443_v36 }
 0x23f   : > { %v5030_v32 = vadd.f32 %v1784_v8, %v1622_v13  ;;  %v1868_v8 = vsel %vm1840_vm7, %v1866_v53, %v1867_v9  ;;  %v2640_v13 = vrot.slane %v4461_v27, 1 }
 0x242   : > { %v1395_v56 = vpop.f32.mrf.mxu2  ;;  %v1789_v33 = vpop.f32.mrf.mxu0 }
 0x243   : > { %v1444_v23 = vadd.f32 %v1395_v56, %v1138_v2  ;;  %v1140_v12 = vpop.f32.mrf.mxu1  ;;  %v5037_v36 = vpop.f32.mrf.mxu3  ;;  %v2990_v2 = vld [vmem:[%s4839_s9 + $0x80] sm:$0xff]  ;;  %v1869_v56 = vor.u32 %v1867_v9, %v4428_v34 }
 0x244   : > { %v1141_v19 = vadd.f32 %v1140_v12, %v5661_v20  ;;  %3100 = vperm.xlu1 %3918, %v2990_v2  }
 0x245   : > { %v1623_v46 = vadd.f32 %v4985_v37, %v1444_v23  ;;  %3860 = vmatmul.msk.bf16.gmra.mxu0 %vm560_vm2, %v2639_v17  ;;  %v1870_v17 = vrot.slane %v4468_v11, 1  ;;  %v5662_v23 = vld [vmem:[#allocation37_spill] sm:$0xff]  ;;  %v2988_v11 = vld [vmem:[%s4839_s9 + $0x70] sm:$0xff] }
 0x246   : > { %3791 = vmatmul.msk.bf16.gmra.mxu1 %vm560_vm2, %v1865_v60  ;;  %3090 = vperm.xlu2 %3919, %v2988_v11  }
 0x247   : > { %3814 = vmatmul.msk.bf16.gmra.mxu2 %vm560_vm2, %v1868_v8  ;;  %v5046_v26 = vadd.f32 %v1786_v6, %v1623_v46  ;;  %3839 = vmatmul.msk.bf16.gmra.mxu3 %vm560_vm2, %v2345_v10  ;;  %v2642_v6 = vor.u32 %v2641_v57, %v2640_v13  ;;  %v3936_v46 = vld [vmem:[%s4028_s15 + $0x60] sm:$0xff] }
 0x248   : > { %v2346_v10 = vrot.slane %v3936_v46, 1  ;;  %v1872_v46 = vor.u32 %v1870_v17, %v4461_v27 }
 0x24a   : > { %v1398_v38 = vpop.f32.mrf.mxu2  ;;  %v1791_v37 = vpop.f32.mrf.mxu0  ;;  %v2347_v34 = vsel %vm2324_vm5, %v2344_v45, %v2346_v10  ;;  %v2645_v45 = vrot.slane %v4492_v14, 2 }
 0x24b   : > { %v1445_v41 = vadd.f32 %v1398_v38, %v1141_v19  ;;  %v1142_v53 = vpop.f32.mrf.mxu1  ;;  %v5052_v16 = vpop.f32.mrf.mxu3  ;;  %v2643_v19 = vsel %vm2604_vm6, %v2638_v18, %v2642_v6 }
 0x24c   : > { %v1143_v12 = vadd.f32 %v1142_v53, %v5662_v23  ;;  %v2644_v53 = vrot.slane %v4487_v52, 1 }
 0x24d   : > { %v1624_v60 = vadd.f32 %v5000_v50, %v1445_v41 }
 0x24f   : > { %v5056_v48 = vadd.f32 %v1789_v33, %v1624_v60  ;;  %v1871_v33 = vsel %vm1840_vm7, %v1869_v56, %v1870_v17  ;;  %v3021_v56 = vpop.permute.xlu0 %3020  ;;  %v2993_v17 = vld [vmem:[%s4839_s9 + $0x98] sm:$0xff] }
 0x250   : > { %3115 = vperm.xlu1 %3918, %v2993_v17   ;;  %v1876_v17 = vrot.slane %v4519_v58, 1 }
 0x252   : > { %v1400_v1 = vpop.f32.mrf.mxu2  ;;  %v2776_v20 = vpop.f32.mrf.mxu0 }
 0x253   : > { %v1446_v38 = vadd.f32 %v1400_v1, %v1143_v12  ;;  %v1989_v50 = vpop.f32.mrf.mxu1  ;;  %v5063_v41 = vpop.f32.mrf.mxu3  ;;  %v1873_v1 = vrot.slane %v4492_v14, 1 }
 0x254   : > { %v2099_v9 = vadd.f32 %v1989_v50, %v4495_v59  ;;  %v2646_v59 = vor.u32 %v2645_v45, %v2644_v53 }
 0x255   : > { %v1625_v13 = vadd.f32 %v5011_v3, %v1446_v38  ;;  %3861 = vmatmul.msk.bf16.gmra.mxu0 %vm560_vm2, %v2643_v19  ;;  %v5663_v19 = vld [vmem:[#allocation45_spill] sm:$0xff] }
 0x256   : > { %3792 = vmatmul.msk.bf16.gmra.mxu1 %vm560_vm2, %v1868_v8  ;;  %v2647_v11 = vsel %vm2604_vm6, %v2642_v6, %v2646_v59 }
 0x257   : > { %3815 = vmatmul.msk.bf16.gmra.mxu2 %vm560_vm2, %v1871_v33  ;;  %v5072_v18 = vadd.f32 %v1791_v37, %v1625_v13  ;;  %3840 = vmatmul.msk.bf16.gmra.mxu3 %vm560_vm2, %v2347_v34  ;;  %v2992_v37 = vld [vmem:[%s4839_s9 + $0x90] sm:$0xff]  ;;  %v3026_v45 = vpop.permute.xlu0 %3025 }
 0x258   : > { %3110 = vperm.xlu0 %3917, %v2992_v37  }
 0x25a   : > { %v2168_v57 = vpop.f32.mrf.mxu2  ;;  %v2778_v3 = vpop.f32.mrf.mxu0 }
 0x25b   : > { %v2278_v60 = vadd.f32 %v2168_v57, %v2099_v9  ;;  %v1991_v2 = vpop.f32.mrf.mxu1  ;;  %v5078_v8 = vpop.f32.mrf.mxu3 }
 0x25c   : > { %v2100_v38 = vadd.f32 %v1991_v2, %v5663_v19 }
 0x25d   : > { %v2558_v23 = vadd.f32 %v5026_v0, %v2278_v60  ;;  %v3937_v0 = vld [vmem:[%s4028_s15 + $0x68] sm:$0xff] }
 0x25e   : > { %v2348_v50 = vrot.slane %v3937_v0, 1 }
 0x25f   : > { %v2886_v12 = vadd.f32 %v2776_v20, %v2558_v23  ;;  %v1874_v20 = vsel %vm1840_vm7, %v1872_v46, %v1873_v1  ;;  %v2649_v46 = vrot.slane %v4519_v58, 2 }
 0x260   : > { %v2349_v14 = vsel %vm2324_vm5, %v2346_v10, %v2348_v50  ;;  %v2648_v10 = vrot.slane %v4514_v47, 1 }
 0x261   : > { %2930 = vst [vmem:[%s5087_s12] sm:$0xff] %v2886_v12  ;;  %v3238_v60 = vmul.f32 %v3021_v56, %v2886_v12 }
 0x262   : > { %v2170_v13 = vpop.f32.mrf.mxu2  ;;  %v2781_v34 = vpop.f32.mrf.mxu0 }
 0x263   : > { %v2279_v9 = vadd.f32 %v2170_v13, %v2100_v38  ;;  %v1994_v57 = vpop.f32.mrf.mxu1  ;;  %v5095_v53 = vpop.f32.mrf.mxu3 }
 0x264   : > { %v2101_v2 = vadd.f32 %v1994_v57, %v4522_v63  ;;  %v3031_v13 = vpop.permute.xlu1 %3030  ;;  %v2650_v57 = vor.u32 %v2649_v46, %v2648_v10 }
 0x265   : > { %v2559_v27 = vadd.f32 %v5037_v36, %v2279_v9  ;;  %3862 = vmatmul.msk.bf16.gmra.mxu0 %vm560_vm2, %v2647_v11  ;;  %v2991_v9 = vld [vmem:[%s4839_s9 + $0x88] sm:$0xff] }
 0x266   : > { %3793 = vmatmul.msk.bf16.gmra.mxu1 %vm560_vm2, %v1871_v33  ;;  %v3331_v33 = vmul.f32 %v3238_v60, %v2886_v12  ;;  %3105 = vperm.xlu2 %3919, %v2991_v9   ;;  %v5664_v12 = vld [vmem:[#allocation46_spill] sm:$0xff]  ;;  %v2652_v9 = vrot.slane %v4541_v15, 1 }
 0x267   : > { %3816 = vmatmul.msk.bf16.gmra.mxu2 %vm560_vm2, %v1874_v20  ;;  %v2887_v6 = vadd.f32 %v2778_v3, %v2559_v27  ;;  %3841 = vmatmul.msk.bf16.gmra.mxu3 %vm560_vm2, %v2349_v14  ;;  %v1875_v14 = vor.u32 %v1873_v1, %v4487_v52 }
 0x269   : > { %2931 = vst [vmem:[%s5087_s12 + $0x8] sm:$0xff] %v2887_v6  ;;  %v3239_v36 = vmul.f32 %v3026_v45, %v2887_v6  ;;  %v1877_v58 = vsel %vm1840_vm7, %v1875_v14, %v1876_v17 }
 0x26a   : > { %v2173_v23 = vpop.f32.mrf.mxu2  ;;  %v2783_v37 = vpop.f32.mrf.mxu0 }
 0x26b   : > { %v3282_v19 = vadd.f32 %v3239_v36, %v3238_v60  ;;  %v3332_v56 = vmul.f32 %v3239_v36, %v2887_v6  ;;  %v2280_v38 = vadd.f32 %v2173_v23, %v2101_v2  ;;  %v1996_v3 = vpop.f32.mrf.mxu1  ;;  %v5109_v0 = vpop.f32.mrf.mxu3  ;;  %v5118_v6 = vld [vmem:[%s4028_s15 + $0x70] sm:$0xff] }
 0x26c   : > { %v2102_v45 = vadd.f32 %v1996_v3, %v5664_v12  ;;  %v2350_v2 = vrot.slane %v5118_v6, 1  ;;  %v2995_v3 = vld [vmem:[%s4839_s9 + $0xa8] sm:$0xff]  ;;  %v2996_v6 = vld [vmem:[%s4839_s9 + $0xb0] sm:$0xff] }
 0x26d   : > { %v3375_v63 = vadd.f32 %v3332_v56, %v3331_v33  ;;  %v2560_v11 = vadd.f32 %v5052_v16, %v2280_v38  ;;  %v2651_v16 = vsel %vm2604_vm6, %v2646_v59, %v2650_v57  ;;  %v3036_v59 = vpop.permute.xlu1 %3035  ;;  %3125 = vperm.xlu0 %3917, %v2995_v3   ;;  %3130 = vperm.xlu1 %3918, %v2996_v6  }
 0x26e   : > { %v2351_v38 = vsel %vm2324_vm5, %v2348_v50, %v2350_v2  ;;  %v2653_v50 = vrot.slane %v4546_v7, 2 }
 0x26f   : > { %v2888_v27 = vadd.f32 %v2781_v34, %v2560_v11 }
 0x271   : > { %2932 = vst [vmem:[%s5087_s12 + $0x10] sm:$0xff] %v2888_v27  ;;  %v3240_v60 = vmul.f32 %v3031_v13, %v2888_v27 }
 0x272   : > { %v2175_v36 = vpop.f32.mrf.mxu2  ;;  %v2786_v23 = vpop.f32.mrf.mxu0 }
 0x273   : > { %v3283_v10 = vadd.f32 %v3282_v19, %v3240_v60  ;;  %v3333_v46 = vmul.f32 %v3240_v60, %v2888_v27  ;;  %v2281_v34 = vadd.f32 %v2175_v36, %v2102_v45  ;;  %v1999_v52 = vpop.f32.mrf.mxu1  ;;  %v5122_v1 = vpop.f32.mrf.mxu3  ;;  %v5140_v36 = vor.u32 %v2653_v50, %v2652_v9  ;;  %v2994_v50 = vld [vmem:[%s4839_s9 + $0xa0] sm:$0xff] }
 0x274   : > { %v2103_v13 = vadd.f32 %v1999_v52, %v4549_v42  ;;  %v3041_v45 = vpop.permute.xlu2 %3040  ;;  %3120 = vperm.xlu2 %3919, %v2994_v50  }
 0x275   : > { %v3376_v33 = vadd.f32 %v3375_v63, %v3333_v46  ;;  %v2561_v56 = vadd.f32 %v5063_v41, %v2281_v34  ;;  %3863 = vmatmul.msk.bf16.gmra.mxu0 %vm560_vm2, %v2651_v16  ;;  %v1878_v46 = vor.u32 %v1876_v17, %v4514_v47  ;;  %v5665_v34 = vld [vmem:[#allocation47_spill] sm:$0xff] }
 0x276   : > { %3794 = vmatmul.msk.bf16.gmra.mxu1 %vm560_vm2, %v1874_v20 }
 0x277   : > { %3817 = vmatmul.msk.bf16.gmra.mxu2 %vm560_vm2, %v1877_v58  ;;  %v2889_v19 = vadd.f32 %v2783_v37, %v2561_v56  ;;  %3842 = vmatmul.msk.bf16.gmra.mxu3 %vm560_vm2, %v2351_v38  ;;  %v5147_v38 = vld [vmem:[%s4028_s15 + $0x78] sm:$0xff] }
 0x279   : > { %2933 = vst [vmem:[%s5087_s12 + $0x18] sm:$0xff] %v2889_v19  ;;  %v3241_v63 = vmul.f32 %v3036_v59, %v2889_v19 }
 0x27a   : > { %v2178_v41 = vpop.f32.mrf.mxu2  ;;  %v2788_v11 = vpop.f32.mrf.mxu0 }
 0x27b   : > { %v3284_v20 = vadd.f32 %v3283_v10, %v3241_v63  ;;  %v3334_v27 = vmul.f32 %v3241_v63, %v2889_v19  ;;  %v2282_v14 = vadd.f32 %v2178_v41, %v2103_v13  ;;  %v2001_v12 = vpop.f32.mrf.mxu1  ;;  %v5136_v37 = vpop.f32.mrf.mxu3  ;;  %v1879_v10 = vrot.slane %v4546_v7, 1  ;;  %v2998_v13 = vld [vmem:[%s4839_s9 + $0xc0] sm:$0xff] }
 0x27c   : > { %v2104_v52 = vadd.f32 %v2001_v12, %v5665_v34  ;;  %3140 = vperm.xlu0 %3917, %v2998_v13   ;;  %v3001_v34 = vld [vmem:[%s4839_s9 + $0xd8] sm:$0xff] }
 0x27d   : > { %v3377_v60 = vadd.f32 %v3376_v33, %v3334_v27  ;;  %v2562_v42 = vadd.f32 %v5078_v8, %v2282_v14  ;;  %v2352_v33 = vrot.slane %v5147_v38, 1  ;;  %v1880_v63 = vsel %vm1840_vm7, %v1878_v46, %v1879_v10  ;;  %v3046_v27 = vpop.permute.xlu2 %3045 }
 0x27f   : > { %v2890_v16 = vadd.f32 %v2786_v23, %v2562_v42  ;;  %v2655_v23 = vsel %vm2604_vm6, %v2650_v57, %v5140_v36  ;;  %v2353_v57 = vsel %vm2324_vm5, %v2350_v2, %v2352_v33 }
 0x281   : > { %2934 = vst [vmem:[%s5087_s12 + $0x20] sm:$0xff] %v2890_v16  ;;  %v3242_v56 = vmul.f32 %v3041_v45, %v2890_v16 }
 0x282   : > { %v2180_v8 = vpop.f32.mrf.mxu2  ;;  %v2791_v3 = vpop.f32.mrf.mxu0 }
 0x283   : > { %v3285_v59 = vadd.f32 %v3284_v20, %v3242_v56  ;;  %v3335_v19 = vmul.f32 %v3242_v56, %v2890_v16  ;;  %v2283_v47 = vadd.f32 %v2180_v8, %v2104_v52  ;;  %v2004_v17 = vpop.f32.mrf.mxu1  ;;  %v5152_v7 = vpop.f32.mrf.mxu3  ;;  %v2999_v20 = vld [vmem:[%s4839_s9 + $0xc8] sm:$0xff]  ;;  %v3002_v56 = vld [vmem:[%s4839_s9 + $0xe0] sm:$0xff] }
 0x284   : > { %3145 = vperm.xlu1 %3918, %v2999_v20   ;;  %3155 = vperm.xlu0 %3917, %v3001_v34   ;;  %v3051_v8 = vpop.permute.xlu0 %3050 }
 0x285   : > { %v3378_v41 = vadd.f32 %v3377_v60, %v3335_v19  ;;  %v2563_v9 = vadd.f32 %v5095_v53, %v2283_v47  ;;  %3864 = vmatmul.msk.bf16.gmra.mxu0 %vm560_vm2, %v2655_v23  ;;  %v2105_v53 = vadd.f32 %v2004_v17, %v4576_v25  ;;  %v2656_v60 = vrot.slane %v4568_v40, 1  ;;  %v5666_v17 = vld [vmem:[#allocation48_spill] sm:$0xff] }
 0x286   : > { %3795 = vmatmul.msk.bf16.gmra.mxu1 %vm560_vm2, %v1877_v58  ;;  %v2657_v58 = vrot.slane %v4573_v62, 2  ;;  %v1882_v47 = vrot.slane %v4573_v62, 1 }
 0x287   : > { %3818 = vmatmul.msk.bf16.gmra.mxu2 %vm560_vm2, %v1880_v63  ;;  %v2891_v14 = vadd.f32 %v2788_v11, %v2563_v9  ;;  %3843 = vmatmul.msk.bf16.gmra.mxu3 %vm560_vm2, %v2353_v57  ;;  %v5182_v57 = vld [vmem:[%s4028_s15 + $0x80] sm:$0xff] }
 0x288   : > { %v5175_v23 = vor.u32 %v2657_v58, %v2656_v60  ;;  %v3005_v60 = vld [vmem:[%s4839_s9 + $0xf8] sm:$0xff]  ;;  %v3056_v58 = vpop.permute.xlu1 %3055 }
 0x289   : > { %2935 = vst [vmem:[%s5087_s12 + $0x28] sm:$0xff] %v2891_v14  ;;  %v3243_v12 = vmul.f32 %v3046_v27, %v2891_v14 }
 0x28a   : > { %v2183_v45 = vpop.f32.mrf.mxu2  ;;  %v2793_v2 = vpop.f32.mrf.mxu0 }
 0x28b   : > { %v3286_v42 = vadd.f32 %v3285_v59, %v3243_v12  ;;  %v3336_v6 = vmul.f32 %v3243_v12, %v2891_v14  ;;  %v2284_v16 = vadd.f32 %v2183_v45, %v2105_v53  ;;  %v2006_v46 = vpop.f32.mrf.mxu1  ;;  %v5170_v11 = vpop.f32.mrf.mxu3  ;;  %v1881_v59 = vor.u32 %v1879_v10, %v4541_v15  ;;  %v3004_v14 = vld [vmem:[%s4839_s9 + $0xf0] sm:$0xff] }
 0x28c   : > { %3160 = vperm.xlu1 %3918, %v3002_v56   ;;  %v2106_v13 = vadd.f32 %v2006_v46, %v5666_v17  ;;  %3170 = vperm.xlu0 %3917, %v3004_v14   ;;  %v3007_v56 = vld [vmem:[%s4839_s9 + $0x108] sm:$0xff]  ;;  %v3061_v17 = vpop.permute.xlu2 %3060 }
 0x28d   : > { %v3379_v25 = vadd.f32 %v3378_v41, %v3336_v6  ;;  %v2564_v52 = vadd.f32 %v5109_v0, %v2284_v16  ;;  %v2354_v41 = vrot.slane %v5182_v57, 1  ;;  %v1883_v53 = vsel %vm1840_vm7, %v1881_v59, %v1882_v47  ;;  %v3008_v59 = vld [vmem:[%s4839_s9 + $0x110] sm:$0xff] }
 0x28f   : > { %v2892_v19 = vadd.f32 %v2791_v3, %v2564_v52  ;;  %v2659_v3 = vsel %vm2604_vm6, %v5140_v36, %v5175_v23  ;;  %v2355_v36 = vsel %vm2324_vm5, %v2352_v33, %v2354_v41  ;;  %v2660_v33 = vrot.slane %v4595_v55, 1 }
 0x291   : > { %2936 = vst [vmem:[%s5087_s12 + $0x30] sm:$0xff] %v2892_v19  ;;  %v3244_v9 = vmul.f32 %v3051_v8, %v2892_v19 }
 0x292   : > { %v2185_v0 = vpop.f32.mrf.mxu2  ;;  %v2796_v50 = vpop.f32.mrf.mxu0 }
 0x293   : > { %v3287_v20 = vadd.f32 %v3286_v42, %v3244_v9  ;;  %v3337_v27 = vmul.f32 %v3244_v9, %v2892_v19  ;;  %v2285_v15 = vadd.f32 %v2185_v0, %v2106_v13  ;;  %v2009_v10 = vpop.f32.mrf.mxu1  ;;  %v5188_v62 = vpop.f32.mrf.mxu3  ;;  %v2997_v19 = vld [vmem:[%s4839_s9 + $0xb8] sm:$0xff]  ;;  %v1884_v0 = vor.u32 %v1882_v47, %v4568_v40 }
 0x294   : > { %3175 = vperm.xlu1 %3918, %v3005_v60   ;;  %3185 = vperm.xlu0 %3917, %v3007_v56   ;;  %v3010_v60 = vld [vmem:[%s4839_s9 + $0x120] sm:$0xff] }
 0x295   : > { %v3380_v12 = vadd.f32 %v3379_v25, %v3337_v27  ;;  %v2565_v45 = vadd.f32 %v5122_v1, %v2285_v15  ;;  %3865 = vmatmul.msk.bf16.gmra.mxu0 %vm560_vm2, %v2659_v3  ;;  %v2107_v1 = vadd.f32 %v2009_v10, %v4603_v22  ;;  %3135 = vperm.xlu2 %3919, %v2997_v19   ;;  %v1885_v3 = vrot.slane %v4600_v29, 1  ;;  %v5220_v10 = vld [vmem:[%s4028_s15 + $0x88] sm:$0xff] }
 0x296   : > { %3796 = vmatmul.msk.bf16.gmra.mxu1 %vm560_vm2, %v1880_v63  ;;  %v2661_v63 = vrot.slane %v4600_v29, 2 }
 0x297   : > { %3819 = vmatmul.msk.bf16.gmra.mxu2 %vm560_vm2, %v1883_v53  ;;  %v2893_v42 = vadd.f32 %v2793_v2, %v2565_v45  ;;  %3844 = vmatmul.msk.bf16.gmra.mxu3 %vm560_vm2, %v2355_v36 }
 0x298   : > { %v5213_v13 = vor.u32 %v2661_v63, %v2660_v33 }
 0x299   : > { %2937 = vst [vmem:[%s5087_s12 + $0x38] sm:$0xff] %v2893_v42  ;;  %v3245_v6 = vmul.f32 %v3056_v58, %v2893_v42  ;;  %v1886_v58 = vsel %vm1840_vm7, %v1884_v0, %v1885_v3 }
 0x29a   : > { %v2188_v38 = vpop.f32.mrf.mxu2  ;;  %v2798_v16 = vpop.f32.mrf.mxu0 }
 0x29b   : > { %v3288_v46 = vadd.f32 %v3287_v20, %v3245_v6  ;;  %v3338_v34 = vmul.f32 %v3245_v6, %v2893_v42  ;;  %v2286_v25 = vadd.f32 %v2188_v38, %v2107_v1  ;;  %v2011_v2 = vpop.f32.mrf.mxu1  ;;  %v5207_v52 = vpop.f32.mrf.mxu3  ;;  %v5667_v20 = vld [vmem:[#allocation49_spill] sm:$0xff]  ;;  %v3011_v6 = vld [vmem:[%s4839_s9 + $0x128] sm:$0xff] }
 0x29c   : > { %3190 = vperm.xlu1 %3918, %v3008_v59   ;;  %v2108_v27 = vadd.f32 %v2011_v2, %v5667_v20  ;;  %3200 = vperm.xlu0 %3917, %v3010_v60   ;;  %v3066_v38 = vpop.permute.xlu0 %3065  ;;  %v3014_v59 = vld [vmem:[%s4839_s9 + $0x140] sm:$0xff]  ;;  %v1887_v20 = vor.u32 %v1885_v3, %v4595_v55 }
 0x29d   : > { %v3381_v22 = vadd.f32 %v3380_v12, %v3338_v34  ;;  %v2566_v8 = vadd.f32 %v5136_v37, %v2286_v25  ;;  %v2356_v37 = vrot.slane %v5220_v10, 1  ;;  %v2668_v10 = vrot.slane %v4649_v44, 1 }
 0x29f   : > { %v2894_v9 = vadd.f32 %v2796_v50, %v2566_v8  ;;  %v2663_v50 = vsel %vm2604_vm6, %v5175_v23, %v5213_v13  ;;  %v2357_v23 = vsel %vm2324_vm5, %v2354_v41, %v2356_v37  ;;  %v2664_v41 = vrot.slane %v4622_v28, 1 }
 0x2a1   : > { %2938 = vst [vmem:[%s5087_s12 + $0x40] sm:$0xff] %v2894_v9  ;;  %v3246_v15 = vmul.f32 %v3061_v17, %v2894_v9  ;;  %v3071_v17 = vpop.permute.xlu1 %3070 }
 0x2a2   : > { %v2190_v14 = vpop.f32.mrf.mxu2  ;;  %v2801_v12 = vpop.f32.mrf.mxu0 }
 0x2a3   : > { %v3289_v45 = vadd.f32 %v3288_v46, %v3246_v15  ;;  %v3339_v36 = vmul.f32 %v3246_v15, %v2894_v9  ;;  %v2287_v40 = vadd.f32 %v2190_v14, %v2108_v27  ;;  %v2014_v47 = vpop.f32.mrf.mxu1  ;;  %v5226_v29 = vpop.f32.mrf.mxu3  ;;  %v3000_v46 = vld [vmem:[%s4839_s9 + $0xd0] sm:$0xff]  ;;  %v1888_v27 = vrot.slane %v4627_v61, 1 }
 0x2a4   : > { %3205 = vperm.xlu1 %3918, %v3011_v6   ;;  %3150 = vperm.xlu2 %3919, %v3000_v46   ;;  %v3017_v6 = vld [vmem:[%s4839_s9 + $0x158] sm:$0xff] }
 0x2a5   : > { %v3382_v42 = vadd.f32 %v3381_v22, %v3339_v36  ;;  %v2567_v1 = vadd.f32 %v5152_v7, %v2287_v40  ;;  %3866 = vmatmul.msk.bf16.gmra.mxu0 %vm560_vm2, %v2663_v50  ;;  %v2109_v7 = vadd.f32 %v2014_v47, %v4630_v35  ;;  %v3013_v35 = vld [vmem:[%s4839_s9 + $0x138] sm:$0xff]  ;;  %v5258_v50 = vld [vmem:[%s4028_s15 + $0x90] sm:$0xff] }
 0x2a6   : > { %3797 = vmatmul.msk.bf16.gmra.mxu1 %vm560_vm2, %v1883_v53  ;;  %v2665_v53 = vrot.slane %v4627_v61, 2  ;;  %3215 = vperm.xlu0 %3917, %v3013_v35  }
 0x2a7   : > { %3820 = vmatmul.msk.bf16.gmra.mxu2 %vm560_vm2, %v1886_v58  ;;  %v2895_v33 = vadd.f32 %v2798_v16, %v2567_v1  ;;  %3845 = vmatmul.msk.bf16.gmra.mxu3 %vm560_vm2, %v2357_v23 }
 0x2a8   : > { %v5251_v9 = vor.u32 %v2665_v53, %v2664_v41 }
 0x2a9   : > { %2939 = vst [vmem:[%s5087_s12 + $0x48] sm:$0xff] %v2895_v33  ;;  %v3247_v63 = vmul.f32 %v3066_v38, %v2895_v33  ;;  %v3076_v38 = vpop.permute.xlu2 %3075 }
 0x2aa   : > { %v2193_v57 = vpop.f32.mrf.mxu2  ;;  %v2803_v34 = vpop.f32.mrf.mxu0 }
 0x2ab   : > { %v3290_v25 = vadd.f32 %v3289_v45, %v3247_v63  ;;  %v3340_v16 = vmul.f32 %v3247_v63, %v2895_v33  ;;  %v2288_v2 = vadd.f32 %v2193_v57, %v2109_v7  ;;  %v2016_v56 = vpop.f32.mrf.mxu1  ;;  %v5246_v22 = vpop.f32.mrf.mxu3  ;;  %v2358_v45 = vrot.slane %v5258_v50, 1  ;;  %v3006_v63 = vld [vmem:[%s4839_s9 + $0x100] sm:$0xff] }
 0x2ac   : > { %3220 = vperm.xlu1 %3918, %v3014_v59   ;;  %v2110_v15 = vadd.f32 %v2016_v56, %v4643_v30  ;;  %v3016_v30 = vld [vmem:[%s4839_s9 + $0x150] sm:$0xff] }
 0x2ad   : > { %v3383_v8 = vadd.f32 %v3382_v42, %v3340_v16  ;;  %v2568_v19 = vadd.f32 %v5170_v11, %v2288_v2  ;;  %v3003_v11 = vld [vmem:[%s4839_s9 + $0xe8] sm:$0xff]  ;;  %v1889_v42 = vsel %vm1840_vm7, %v1887_v20, %v1888_v27  ;;  %v3081_v2 = vpop.permute.xlu0 %3080 }
 0x2ae   : > { %3165 = vperm.xlu2 %3919, %v3003_v11   ;;  %3230 = vperm.xlu0 %3917, %v3016_v30  }
 0x2af   : > { %v2896_v0 = vadd.f32 %v2801_v12, %v2568_v19  ;;  %v2667_v12 = vsel %vm2604_vm6, %v5213_v13, %v5251_v9  ;;  %v2359_v13 = vsel %vm2324_vm5, %v2356_v37, %v2358_v45  ;;  %v2669_v37 = vrot.slane %v4654_v24, 2 }
 0x2b0   : > { %v1891_v19 = vrot.slane %v4654_v24, 1 }
 0x2b1   : > { %2940 = vst [vmem:[%s5087_s12 + $0x50] sm:$0xff] %v2896_v0  ;;  %v3248_v14 = vmul.f32 %v3071_v17, %v2896_v0  ;;  %v2670_v56 = vor.u32 %v2669_v37, %v2668_v10 }
 0x2b2   : > { %v2195_v36 = vpop.f32.mrf.mxu2  ;;  %v2806_v40 = vpop.f32.mrf.mxu0  ;;  %v1893_v37 = vor.u32 %v1891_v19, %v4649_v44 }
 0x2b3   : > { %v3291_v55 = vadd.f32 %v3290_v25, %v3248_v14  ;;  %v3341_v61 = vmul.f32 %v3248_v14, %v2896_v0  ;;  %v2289_v3 = vadd.f32 %v2195_v36, %v2110_v15  ;;  %v2019_v47 = vpop.f32.mrf.mxu1  ;;  %v5265_v60 = vpop.f32.mrf.mxu3  ;;  %v5293_v0 = vld [vmem:[%s4028_s15 + $0x98] sm:$0xff] }
 0x2b4   : > { %3235 = vperm.xlu1 %3918, %v3017_v6   ;;  %v2360_v20 = vrot.slane %v5293_v0, 1  ;;  %v3009_v15 = vld [vmem:[%s4839_s9 + $0x118] sm:$0xff]  ;;  %v5669_v6 = vld [vmem:[#allocation51_spill] sm:$0xff] }
 0x2b5   : > { %v3384_v1 = vadd.f32 %v3383_v8, %v3341_v61  ;;  %v2569_v23 = vadd.f32 %v5188_v62, %v2289_v3  ;;  %3867 = vmatmul.msk.bf16.gmra.mxu0 %vm560_vm2, %v2667_v12  ;;  %v2111_v62 = vadd.f32 %v2019_v47, %v4657_v39  ;;  %v1890_v8 = vor.u32 %v1888_v27, %v4622_v28  ;;  %v3086_v61 = vpop.permute.xlu1 %3085 }
 0x2b6   : > { %3798 = vmatmul.msk.bf16.gmra.mxu1 %vm560_vm2, %v1886_v58  ;;  %3180 = vperm.xlu2 %3919, %v3006_v63  }
 0x2b7   : > { %3821 = vmatmul.msk.bf16.gmra.mxu2 %vm560_vm2, %v1889_v42  ;;  %v2897_v33 = vadd.f32 %v2803_v34, %v2569_v23  ;;  %3846 = vmatmul.msk.bf16.gmra.mxu3 %vm560_vm2, %v2359_v13  ;;  %v5668_v13 = vld [vmem:[#allocation50_spill] sm:$0xff] }
 0x2b8   : > { %v2672_v50 = vrot.slane %v5668_v13, 1 }
 0x2b9   : > { %2941 = vst [vmem:[%s5087_s12 + $0x58] sm:$0xff] %v2897_v33  ;;  %v3249_v7 = vmul.f32 %v3076_v38, %v2897_v33 }
 0x2ba   : > { %v2198_v46 = vpop.f32.mrf.mxu2  ;;  %v2808_v57 = vpop.f32.mrf.mxu0 }
 0x2bb   : > { %v3292_v58 = vadd.f32 %v3291_v55, %v3249_v7  ;;  %v3342_v41 = vmul.f32 %v3249_v7, %v2897_v33  ;;  %v2290_v34 = vadd.f32 %v2198_v46, %v2111_v62  ;;  %v2021_v53 = vpop.f32.mrf.mxu1  ;;  %v5285_v25 = vpop.f32.mrf.mxu3 }
 0x2bc   : > { %v2112_v59 = vadd.f32 %v2021_v53, %v4670_v49  ;;  %v1892_v49 = vsel %vm1840_vm7, %v1890_v8, %v1891_v19  ;;  %v3091_v46 = vpop.permute.xlu2 %3090 }
 0x2bd   : > { %v3385_v39 = vadd.f32 %v3384_v1, %v3342_v41  ;;  %v2570_v16 = vadd.f32 %v5207_v52, %v2290_v34  ;;  %v2671_v52 = vsel %vm2604_vm6, %v5251_v9, %v2670_v56  ;;  %v2361_v9 = vsel %vm2324_vm5, %v2358_v45, %v2360_v20  ;;  %v3012_v1 = vld [vmem:[%s4839_s9 + $0x130] sm:$0xff] }
 0x2be   : > { %3195 = vperm.xlu2 %3919, %v3009_v15   ;;  %v2673_v45 = vrot.slane %v5669_v6, 2  ;;  %v5670_v41 = vld [vmem:[#allocation52_spill] sm:$0xff] }
 0x2bf   : > { %v2898_v35 = vadd.f32 %v2806_v40, %v2570_v16 }
 0x2c1   : > { %2942 = vst [vmem:[%s5087_s12 + $0x60] sm:$0xff] %v2898_v35  ;;  %v3250_v17 = vmul.f32 %v3081_v2, %v2898_v35  ;;  %v3015_v2 = vld [vmem:[%s4839_s9 + $0x148] sm:$0xff] }
 0x2c2   : > { %v2200_v14 = vpop.f32.mrf.mxu2  ;;  %v2811_v11 = vpop.f32.mrf.mxu0 }
 0x2c3   : > { %v3293_v36 = vadd.f32 %v3292_v58, %v3250_v17  ;;  %v3343_v28 = vmul.f32 %v3250_v17, %v2898_v35  ;;  %v2291_v27 = vadd.f32 %v2200_v14, %v2112_v59  ;;  %v2024_v24 = vpop.f32.mrf.mxu1  ;;  %v5299_v40 = vpop.f32.mrf.mxu3  ;;  %v1894_v58 = vrot.slane %v5669_v6, 1 }
 0x2c4   : > { %v2113_v47 = vadd.f32 %v2024_v24, %v4684_v54 }
 0x2c5   : > { %v3386_v12 = vadd.f32 %v3385_v39, %v3343_v28  ;;  %v2571_v55 = vadd.f32 %v5226_v29, %v2291_v27  ;;  %3868 = vmatmul.msk.bf16.gmra.mxu0 %vm560_vm2, %v2671_v52  ;;  %v3944_v39 = vld [vmem:[%s4028_s15 + $0xa0] sm:$0xff]  ;;  %v1895_v19 = vsel %vm1840_vm7, %v1893_v37, %v1894_v58  ;;  %v5671_v28 = vld [vmem:[#allocation53_spill] sm:$0xff]  ;;  %v1896_v6 = vor.u32 %v1894_v58, %v5668_v13 }
 0x2c6   : > { %3799 = vmatmul.msk.bf16.gmra.mxu1 %vm560_vm2, %v1889_v42  ;;  %3210 = vperm.xlu2 %3919, %v3012_v1   ;;  %v2362_v16 = vrot.slane %v3944_v39, 1 }
 0x2c7   : > { %3822 = vmatmul.msk.bf16.gmra.mxu2 %vm560_vm2, %v1892_v49  ;;  %v2899_v3 = vadd.f32 %v2808_v57, %v2571_v55  ;;  %3847 = vmatmul.msk.bf16.gmra.mxu3 %vm560_vm2, %v2361_v9  ;;  %v2674_v57 = vor.u32 %v2673_v45, %v2672_v50  ;;  %v2677_v9 = vrot.slane %v4708_v31, 2  ;;  %v1897_v45 = vrot.slane %v4708_v31, 1 }
 0x2c8   : > { %v2363_v52 = vsel %vm2324_vm5, %v2360_v20, %v2362_v16 }
 0x2c9   : > { %2943 = vst [vmem:[%s5087_s12 + $0x68] sm:$0xff] %v2899_v3  ;;  %v3251_v30 = vmul.f32 %v3086_v61, %v2899_v3  ;;  %v2675_v59 = vsel %vm2604_vm6, %v2670_v56, %v2674_v57  ;;  %v3096_v56 = vpop.permute.xlu0 %3095  ;;  %v1898_v13 = vsel %vm1840_vm7, %v1896_v6, %v1897_v45 }
 0x2ca   : > { %v2203_v29 = vpop.f32.mrf.mxu2  ;;  %v2813_v23 = vpop.f32.mrf.mxu0 }
 0x2cb   : > { %v3294_v42 = vadd.f32 %v3293_v36, %v3251_v30  ;;  %v3344_v38 = vmul.f32 %v3251_v30, %v2899_v3  ;;  %v2292_v33 = vadd.f32 %v2203_v29, %v2113_v47  ;;  %v2026_v62 = vpop.f32.mrf.mxu1  ;;  %v5315_v7 = vpop.f32.mrf.mxu3 }
 0x2cc   : > { %v2114_v34 = vadd.f32 %v2026_v62, %v5670_v41  ;;  %v3101_v29 = vpop.permute.xlu1 %3100  ;;  %v3945_v62 = vld [vmem:[%s4028_s15 + $0xa8] sm:$0xff] }
 0x2cd   : > { %v3387_v54 = vadd.f32 %v3386_v12, %v3344_v38  ;;  %v2572_v63 = vadd.f32 %v5246_v22, %v2292_v33 }
 0x2ce   : > { %3225 = vperm.xlu2 %3919, %v3015_v2  }
 0x2cf   : > { %v2900_v10 = vadd.f32 %v2811_v11, %v2572_v63 }
 0x2d1   : > { %2944 = vst [vmem:[%s5087_s12 + $0x70] sm:$0xff] %v2900_v10  ;;  %v3252_v53 = vmul.f32 %v3091_v46, %v2900_v10 }
 0x2d2   : > { %v2205_v35 = vpop.f32.mrf.mxu2  ;;  %v2816_v8 = vpop.f32.mrf.mxu0 }
 0x2d3   : > { %v3295_v22 = vadd.f32 %v3294_v42, %v3252_v53  ;;  %v3345_v17 = vmul.f32 %v3252_v53, %v2900_v10  ;;  %v2293_v0 = vadd.f32 %v2205_v35, %v2114_v34  ;;  %v2029_v15 = vpop.f32.mrf.mxu1  ;;  %v5325_v44 = vpop.f32.mrf.mxu3  ;;  %v5672_v42 = vld [vmem:[#allocation54_spill] sm:$0xff]  ;;  %v5673_v35 = vld [vmem:[#allocation56_spill] sm:$0xff] }
 0x2d4   : > { %v2115_v27 = vadd.f32 %v2029_v15, %v5671_v28  ;;  %v5371_v28 = vld [vmem:[%s5365_s14] sm:$0xff] }
 0x2d5   : > { %v3388_v14 = vadd.f32 %v3387_v54, %v3345_v17  ;;  %v2573_v11 = vadd.f32 %v5265_v60, %v2293_v0  ;;  %3869 = vmatmul.msk.bf16.gmra.mxu0 %vm560_vm2, %v2675_v59  ;;  %v2676_v60 = vrot.slane %v4703_v5, 1  ;;  %v2364_v54 = vrot.slane %v3945_v62, 1  ;;  %v5674_v0 = vld [vmem:[#allocation55_spill] sm:$0xff]  ;;  %v3116_v62 = vpop.permute.xlu1 %3115 }
 0x2d6   : > { %3800 = vmatmul.msk.bf16.gmra.mxu1 %vm560_vm2, %v1892_v49  ;;  %v2681_v15 = vrot.slane %v5674_v0, 2 }
 0x2d7   : > { %3823 = vmatmul.msk.bf16.gmra.mxu2 %vm560_vm2, %v1895_v19  ;;  %v2901_v36 = vadd.f32 %v2813_v23, %v2573_v11  ;;  %3848 = vmatmul.msk.bf16.gmra.mxu3 %vm560_vm2, %v2363_v52  ;;  %v2678_v23 = vor.u32 %v2677_v9, %v2676_v60  ;;  %v2365_v39 = vsel %vm2324_vm5, %v2362_v16, %v2364_v54  ;;  %v1900_v60 = vrot.slane %v5674_v0, 1  ;;  %v5675_v9 = vld [vmem:[#allocation32_spill] sm:$0xff] }
 0x2d9   : > { %2945 = vst [vmem:[%s5087_s12 + $0x78] sm:$0xff] %v2901_v36  ;;  %v3253_v24 = vmul.f32 %v3096_v56, %v2901_v36  ;;  %v2679_v10 = vsel %vm2604_vm6, %v2674_v57, %v2678_v23  ;;  %v3106_v57 = vpop.permute.xlu2 %3105 }
 0x2da   : > { %v2208_v12 = vpop.f32.mrf.mxu2  ;;  %v2818_v55 = vpop.f32.mrf.mxu0 }
 0x2db   : > { %v3296_v20 = vadd.f32 %v3295_v22, %v3253_v24  ;;  %v3346_v49 = vmul.f32 %v3253_v24, %v2901_v36  ;;  %v2294_v61 = vadd.f32 %v2208_v12, %v2115_v27  ;;  %v2031_v3 = vpop.f32.mrf.mxu1  ;;  %v5338_v47 = vpop.f32.mrf.mxu3 }
 0x2dc   : > { %v2116_v38 = vadd.f32 %v2031_v3, %v5672_v42  ;;  %v3111_v27 = vpop.permute.xlu0 %3110 }
 0x2dd   : > { %v3389_v30 = vadd.f32 %v3388_v14, %v3346_v49  ;;  %v2574_v1 = vadd.f32 %v5285_v25, %v2294_v61  ;;  %v2366_v61 = vrot.slane %v5371_v28, 1 }
 0x2df   : > { %v2902_v50 = vadd.f32 %v2816_v8, %v2574_v1 }
 0x2e1   : > { %2946 = vst [vmem:[%s5087_s12 + $0x80] sm:$0xff] %v2902_v50  ;;  %v3254_v33 = vmul.f32 %v3101_v29, %v2902_v50 }
 0x2e2   : > { %v2210_v63 = vpop.f32.mrf.mxu2  ;;  %v2821_v46 = vpop.f32.mrf.mxu0 }
 0x2e3   : > { %v3297_v37 = vadd.f32 %v3296_v20, %v3254_v33  ;;  %v3347_v25 = vmul.f32 %v3254_v33, %v2902_v50  ;;  %v2295_v41 = vadd.f32 %v2210_v63, %v2116_v38  ;;  %v2034_v34 = vpop.f32.mrf.mxu1  ;;  %v5347_v53 = vpop.f32.mrf.mxu3  ;;  %v2367_v33 = vsel %vm2324_vm5, %v2364_v54, %v2366_v61  ;;  %v5676_v63 = vld [vmem:[#allocation58_spill] sm:$0xff] }
 0x2e4   : > { %v2117_v8 = vadd.f32 %v2034_v34, %v5673_v35  ;;  %v5678_v34 = vld [vmem:[#allocation57_spill] sm:$0xff] }
 0x2e5   : > { %v3390_v31 = vadd.f32 %v3389_v30, %v3347_v25  ;;  %v2575_v58 = vadd.f32 %v5299_v40, %v2295_v41  ;;  %3870 = vmatmul.msk.bf16.gmra.mxu0 %vm560_vm2, %v2679_v10  ;;  %v2680_v40 = vrot.slane %v4730_v21, 1  ;;  %v2685_v54 = vrot.slane %v5678_v34, 2 }
 0x2e6   : > { %3801 = vmatmul.msk.bf16.gmra.mxu1 %vm560_vm2, %v1895_v19  ;;  %v1903_v0 = vrot.slane %v5678_v34, 1  ;;  %v5681_v34 = vld [vmem:[#allocation43_spill] sm:$0xff] }
 0x2e7   : > { %3824 = vmatmul.msk.bf16.gmra.mxu2 %vm560_vm2, %v1898_v13  ;;  %v2903_v2 = vadd.f32 %v2818_v55, %v2575_v58  ;;  %3849 = vmatmul.msk.bf16.gmra.mxu3 %vm560_vm2, %v2365_v39  ;;  %v2682_v24 = vor.u32 %v2681_v15, %v2680_v40  ;;  %v1899_v55 = vor.u32 %v1897_v45, %v4703_v5  ;;  %v5679_v15 = vld [vmem:[#allocation39_spill] sm:$0xff] }
 0x2e8   : > { %v1902_v40 = vor.u32 %v1900_v60, %v4730_v21 }
 0x2e9   : > { %2947 = vst [vmem:[%s5087_s12 + $0x88] sm:$0xff] %v2903_v2  ;;  %v3255_v59 = vmul.f32 %v3106_v57, %v2903_v2  ;;  %v2683_v1 = vsel %vm2604_vm6, %v2678_v23, %v2682_v24  ;;  %v1901_v5 = vsel %vm1840_vm7, %v1899_v55, %v1900_v60 }
 0x2ea   : > { %v2213_v22 = vpop.f32.mrf.mxu2  ;;  %v2823_v17 = vpop.f32.mrf.mxu0  ;;  %v1904_v21 = vsel %vm1840_vm7, %v1902_v40, %v1903_v0 }
 0x2eb   : > { %v3298_v16 = vadd.f32 %v3297_v37, %v3255_v59  ;;  %v3348_v19 = vmul.f32 %v3255_v59, %v2903_v2  ;;  %v2296_v14 = vadd.f32 %v2213_v22, %v2117_v8  ;;  %v2036_v11 = vpop.f32.mrf.mxu1  ;;  %v5367_v52 = vpop.f32.mrf.mxu3  ;;  %v5396_v8 = vld [vmem:[%s5365_s14 + $0x8] sm:$0xff] }
 0x2ec   : > { %v2118_v20 = vadd.f32 %v2036_v11, %v5675_v9  ;;  %v3121_v59 = vpop.permute.xlu2 %3120 }
 0x2ed   : > { %v3391_v56 = vadd.f32 %v3390_v31, %v3348_v19  ;;  %v2576_v36 = vadd.f32 %v5315_v7, %v2296_v14  ;;  %v2368_v14 = vrot.slane %v5396_v8, 1 }
 0x2ef   : > { %v2904_v12 = vadd.f32 %v2821_v46, %v2576_v36 }
 0x2f1   : > { %2948 = vst [vmem:[%s5087_s12 + $0x90] sm:$0xff] %v2904_v12  ;;  %v3256_v49 = vmul.f32 %v3111_v27, %v2904_v12 }
 0x2f2   : > { %v2215_v3 = vpop.f32.mrf.mxu2  ;;  %v2826_v30 = vpop.f32.mrf.mxu0 }
 0x2f3   : > { %v3299_v7 = vadd.f32 %v3298_v16, %v3256_v49  ;;  %v3349_v29 = vmul.f32 %v3256_v49, %v2904_v12  ;;  %v2297_v50 = vadd.f32 %v2215_v3, %v2118_v20  ;;  %v2039_v6 = vpop.f32.mrf.mxu1  ;;  %v5379_v42 = vpop.f32.mrf.mxu3  ;;  %v2369_v49 = vsel %vm2324_vm5, %v2366_v61, %v2368_v14  ;;  %v5682_v14 = vld [vmem:[#allocation12_spill] sm:$0xff] }
 0x2f4   : > { %v2119_v46 = vadd.f32 %v2039_v6, %v5676_v63  ;;  %v3126_v3 = vpop.permute.xlu0 %3125 }
 0x2f5   : > { %v3392_v45 = vadd.f32 %v3391_v56, %v3349_v29  ;;  %v2577_v38 = vadd.f32 %v5325_v44, %v2297_v50  ;;  %3871 = vmatmul.msk.bf16.gmra.mxu0 %vm560_vm2, %v2683_v1  ;;  %v5677_v44 = vld [vmem:[#allocation36_spill] sm:$0xff] }
 0x2f6   : > { %3802 = vmatmul.msk.bf16.gmra.mxu1 %vm560_vm2, %v1898_v13  ;;  %v2684_v41 = vrot.slane %v5677_v44, 1 }
 0x2f7   : > { %3825 = vmatmul.msk.bf16.gmra.mxu2 %vm560_vm2, %v1901_v5  ;;  %v2905_v23 = vadd.f32 %v2823_v17, %v2577_v38  ;;  %3850 = vmatmul.msk.bf16.gmra.mxu3 %vm560_vm2, %v2367_v33 }
 0x2f8   : > { %v2686_v22 = vor.u32 %v2685_v54, %v2684_v41 }
 0x2f9   : > { %2949 = vst [vmem:[%s5087_s12 + $0x98] sm:$0xff] %v2905_v23  ;;  %v3257_v10 = vmul.f32 %v3116_v62, %v2905_v23 }
 0x2fa   : > { %v2218_v37 = vpop.f32.mrf.mxu2  ;;  %v2828_v25 = vpop.f32.mrf.mxu0  ;;  %v2687_v36 = vsel %vm2604_vm6, %v2682_v24, %v2686_v22  ;;  %v1907_v24 = vshll.u32 %v5371_v28, 16 }
 0x2fb   : > { %v3300_v31 = vadd.f32 %v3299_v7, %v3257_v10  ;;  %v3350_v13 = vmul.f32 %v3257_v10, %v2905_v23  ;;  %v2298_v58 = vadd.f32 %v2218_v37, %v2119_v46  ;;  %v2041_v39 = vpop.f32.mrf.mxu1  ;;  %v5392_v57 = vpop.f32.mrf.mxu3  ;;  %v5680_v7 = vld [vmem:[#allocation41_spill] sm:$0xff] }
 0x2fc   : > { %v2120_v16 = vadd.f32 %v2041_v39, %v5679_v15  ;;  %v3131_v46 = vpop.permute.xlu1 %3130  ;;  %v1909_v41 = vrot.slane %v1907_v24, 1 }
 0x2fd   : > { %v3393_v2 = vadd.f32 %v3392_v45, %v3350_v13  ;;  %v2578_v35 = vadd.f32 %v5338_v47, %v2298_v58  ;;  %v2689_v45 = vrot.slane %v1907_v24, 2 }
 0x2ff   : > { %v2906_v17 = vadd.f32 %v2826_v30, %v2578_v35  ;;  %v2145_v30 = vshrl.u32 %v5371_v28, 16 }
 0x301   : > { %2950 = vst [vmem:[%s5087_s12 + $0xa0] sm:$0xff] %v2906_v17  ;;  %v3258_v19 = vmul.f32 %v3121_v59, %v2906_v17  ;;  %v2688_v61 = vrot.slane %v2145_v30, 1 }
 0x302   : > { %v2220_v11 = vpop.f32.mrf.mxu2  ;;  %v2831_v56 = vpop.f32.mrf.mxu0 }
 0x303   : > { %v3301_v47 = vadd.f32 %v3300_v31, %v3258_v19  ;;  %v3351_v27 = vmul.f32 %v3258_v19, %v2906_v17  ;;  %v2299_v12 = vadd.f32 %v2220_v11, %v2120_v16  ;;  %v2044_v55 = vpop.f32.mrf.mxu1  ;;  %v5404_v9 = vpop.f32.mrf.mxu3  ;;  %v2690_v10 = vor.u32 %v2689_v45, %v2688_v61 }
 0x304   : > { %v2121_v29 = vadd.f32 %v2044_v55, %v5680_v7  ;;  %v2149_v16 = vshll.u32 %v5396_v8, 16  ;;  %v2147_v7 = vor.u32 %v2145_v30, %v1909_v41 }
 0x305   : > { %v3394_v60 = vadd.f32 %v3393_v2, %v3351_v27  ;;  %v2579_v20 = vadd.f32 %v5347_v53, %v2299_v12  ;;  %3872 = vmatmul.msk.bf16.gmra.mxu0 %vm560_vm2, %v2687_v36  ;;  %v2691_v39 = vsel %vm2604_vm6, %v2686_v22, %v2690_v10  ;;  %v2692_v22 = vshrl.u32 %v5396_v8, 16 }
 0x306   : > { %3803 = vmatmul.msk.bf16.gmra.mxu1 %vm560_vm2, %v1901_v5  ;;  %v2695_v27 = vrot.slane %v2149_v16, 2 }
 0x307   : > { %v2907_v1 = vadd.f32 %v2828_v25, %v2579_v20  ;;  %3826 = vmatmul.msk.bf16.gmra.mxu2 %vm560_vm2, %v1904_v21  ;;  %3851 = vmatmul.msk.bf16.gmra.mxu3 %vm560_vm2, %v2369_v49  ;;  %v1905_v25 = vor.u32 %v1903_v0, %v5677_v44  ;;  %v3136_v0 = vpop.permute.xlu2 %3135 }
 0x309   : > { %2951 = vst [vmem:[%s5087_s12 + $0xa8] sm:$0xff] %v2907_v1  ;;  %v3259_v53 = vmul.f32 %v3126_v3, %v2907_v1  ;;  %v1910_v40 = vsel %vm1840_vm7, %v1905_v25, %v1909_v41  ;;  %v3146_v25 = vpop.permute.xlu1 %3145  ;;  %v5684_v41 = vld [vmem:[#allocation18_spill] sm:$0xff] }
 0x30a   : > { %v2223_v50 = vpop.f32.mrf.mxu2  ;;  %v2833_v6 = vpop.f32.mrf.mxu0 }
 0x30b   : > { %v3302_v5 = vadd.f32 %v3301_v47, %v3259_v53  ;;  %v3352_v38 = vmul.f32 %v3259_v53, %v2907_v1  ;;  %v2300_v33 = vadd.f32 %v2223_v50, %v2121_v29  ;;  %v2046_v62 = vpop.f32.mrf.mxu1  ;;  %v5417_v23 = vpop.f32.mrf.mxu3  ;;  %v2151_v29 = vrot.slane %v2149_v16, 1  ;;  %v5683_v50 = vld [vmem:[#allocation16_spill] sm:$0xff] }
 0x30c   : > { %v2122_v54 = vadd.f32 %v2046_v62, %v5681_v34  ;;  %v3141_v1 = vpop.permute.xlu0 %3140 }
 0x30d   : > { %v3395_v28 = vadd.f32 %v3394_v60, %v3352_v38  ;;  %v2580_v63 = vadd.f32 %v5367_v52, %v2300_v33 }
 0x30f   : > { %v2908_v37 = vadd.f32 %v2831_v56, %v2580_v63 }
 0x311   : > { %2952 = vst [vmem:[%s5087_s12 + $0xb0] sm:$0xff] %v2908_v37  ;;  %v3260_v31 = vmul.f32 %v3131_v46, %v2908_v37 }
 0x312   : > { %v2225_v13 = vpop.f32.mrf.mxu2  ;;  %v2836_v58 = vpop.f32.mrf.mxu0 }
 0x313   : > { %v3303_v2 = vadd.f32 %v3302_v5, %v3260_v31  ;;  %v3353_v35 = vmul.f32 %v3260_v31, %v2908_v37  ;;  %v2301_v59 = vadd.f32 %v2225_v13, %v2122_v54  ;;  %v2049_v17 = vpop.f32.mrf.mxu1  ;;  %v5424_v52 = vpop.f32.mrf.mxu3 }
 0x314   : > { %v2123_v11 = vadd.f32 %v2049_v17, %v5682_v14  ;;  %v3151_v17 = vpop.permute.xlu2 %3150 }
 0x315   : > { %v3396_v15 = vadd.f32 %v3395_v28, %v3353_v35  ;;  %v2581_v44 = vadd.f32 %v5379_v42, %v2301_v59  ;;  %3873 = vmatmul.msk.bf16.gmra.mxu0 %vm560_vm2, %v2691_v39  ;;  %v2694_v42 = vrot.slane %v2692_v22, 1  ;;  %v2152_v28 = vsel %vm1840_vm7, %v2147_v7, %v2151_v29 }
 0x316   : > { %3804 = vmatmul.msk.bf16.gmra.mxu1 %vm560_vm2, %v1904_v21 }
 0x317   : > { %v2909_v19 = vadd.f32 %v2833_v6, %v2581_v44  ;;  %3827 = vmatmul.msk.bf16.gmra.mxu2 %vm560_vm2, %v1910_v40  ;;  %v2696_v3 = vor.u32 %v2695_v27, %v2694_v42 }
 0x319   : > { %2953 = vst [vmem:[%s5087_s12 + $0xb8] sm:$0xff] %v2909_v19  ;;  %v3261_v56 = vmul.f32 %v3136_v0, %v2909_v19  ;;  %v2697_v5 = vsel %vm2604_vm6, %v2690_v10, %v2696_v3 }
 0x31a   : > { %v2228_v36 = vpop.f32.mrf.mxu2  ;;  %v2838_v47 = vpop.f32.mrf.mxu0 }
 0x31b   : > { %v3304_v12 = vadd.f32 %v3303_v2, %v3261_v56  ;;  %v3354_v55 = vmul.f32 %v3261_v56, %v2909_v19  ;;  %v2302_v21 = vadd.f32 %v2228_v36, %v2123_v11  ;;  %v2051_v60 = vpop.f32.mrf.mxu1  ;;  %v5436_v8 = vpop.f32.mrf.mxu3 }
 0x31c   : > { %v2124_v6 = vadd.f32 %v2051_v60, %v5683_v50 }
 0x31d   : > { %v3397_v20 = vadd.f32 %v3396_v15, %v3354_v55  ;;  %v2582_v49 = vadd.f32 %v5392_v57, %v2302_v21  ;;  %v5685_v15 = vld [vmem:[#allocation4_spill] sm:$0xff] }
 0x31f   : > { %v2910_v24 = vadd.f32 %v2836_v58, %v2582_v49 }
 0x321   : > { %2954 = vst [vmem:[%s5087_s12 + $0xc0] sm:$0xff] %v2910_v24  ;;  %v3262_v53 = vmul.f32 %v3141_v1, %v2910_v24 }
 0x322   : > { %v2230_v61 = vpop.f32.mrf.mxu2  ;;  %v2841_v45 = vpop.f32.mrf.mxu0 }
 0x323   : > { %v3305_v38 = vadd.f32 %v3304_v12, %v3262_v53  ;;  %v3355_v33 = vmul.f32 %v3262_v53, %v2910_v24  ;;  %v2303_v62 = vadd.f32 %v2230_v61, %v2124_v6  ;;  %v2054_v57 = vpop.f32.mrf.mxu1  ;;  %v2520_v37 = vpop.f32.mrf.mxu3  ;;  %v5686_v12 = vld [vmem:[#allocation5_spill] sm:$0xff]  ;;  %v5687_v6 = vld [vmem:[#allocation6_spill] sm:$0xff] }
 0x324   : > { %v2125_v34 = vadd.f32 %v2054_v57, %v5684_v41 }
 0x325   : > { %v3398_v63 = vadd.f32 %v3397_v20, %v3355_v33  ;;  %v2583_v46 = vadd.f32 %v5404_v9, %v2303_v62  ;;  %3874 = vmatmul.msk.bf16.gmra.mxu0 %vm560_vm2, %v2697_v5 }
 0x326   : > { %3805 = vmatmul.msk.bf16.gmra.mxu1 %vm560_vm2, %v1910_v40 }
 0x327   : > { %v2911_v30 = vadd.f32 %v2838_v47, %v2583_v46  ;;  %3828 = vmatmul.msk.bf16.gmra.mxu2 %vm560_vm2, %v2152_v28 }
 0x329   : > { %2955 = vst [vmem:[%s5087_s12 + $0xc8] sm:$0xff] %v2911_v30  ;;  %v3263_v10 = vmul.f32 %v3146_v25, %v2911_v30  ;;  %v3166_v25 = vpop.permute.xlu2 %3165 }
 0x32a   : > { %v2233_v54 = vpop.f32.mrf.mxu2  ;;  %v2843_v31 = vpop.f32.mrf.mxu0 }
 0x32b   : > { %v3306_v13 = vadd.f32 %v3305_v38, %v3263_v10  ;;  %v3356_v58 = vmul.f32 %v3263_v10, %v2911_v30  ;;  %v2304_v39 = vadd.f32 %v2233_v54, %v2125_v34  ;;  %v2056_v9 = vpop.f32.mrf.mxu1  ;;  %v2523_v0 = vpop.f32.mrf.mxu3 }
 0x32c   : > { %v2126_v44 = vadd.f32 %v2056_v9, %v5685_v15 }
 0x32d   : > { %v3399_v2 = vadd.f32 %v3398_v63, %v3356_v58  ;;  %v2584_v35 = vadd.f32 %v5417_v23, %v2304_v39  ;;  %v3156_v23 = vpop.permute.xlu0 %3155 }
 0x32f   : > { %v2912_v59 = vadd.f32 %v2841_v45, %v2584_v35 }
 0x331   : > { %2956 = vst [vmem:[%s5087_s12 + $0xd0] sm:$0xff] %v2912_v59  ;;  %v3264_v40 = vmul.f32 %v3151_v17, %v2912_v59  ;;  %v5688_v17 = vld [vmem:[#allocation7_spill] sm:$0xff] }
 0x332   : > { %v2235_v16 = vpop.f32.mrf.mxu2  ;;  %v2846_v22 = vpop.f32.mrf.mxu0 }
 0x333   : > { %v3307_v19 = vadd.f32 %v3306_v13, %v3264_v40  ;;  %v3357_v14 = vmul.f32 %v3264_v40, %v2912_v59  ;;  %v2305_v11 = vadd.f32 %v2235_v16, %v2126_v44  ;;  %v2059_v56 = vpop.f32.mrf.mxu1  ;;  %v2525_v1 = vpop.f32.mrf.mxu3 }
 0x334   : > { %v2127_v55 = vadd.f32 %v2059_v56, %v5686_v12 }
 0x335   : > { %v3400_v36 = vadd.f32 %v3399_v2, %v3357_v14  ;;  %v2585_v47 = vadd.f32 %v5424_v52, %v2305_v11  ;;  %v3161_v52 = vpop.permute.xlu1 %3160 }
 0x337   : > { %v2913_v42 = vadd.f32 %v2843_v31, %v2585_v47  ;;  %v5689_v47 = vld [vmem:[#allocation3_spill] sm:$0xff] }
 0x339   : > { %2957 = vst [vmem:[%s5087_s12 + $0xd8] sm:$0xff] %v2913_v42  ;;  %v3265_v27 = vmul.f32 %v3156_v23, %v2913_v42 }
 0x33a   : > { %v2238_v21 = vpop.f32.mrf.mxu2  ;;  %v2848_v60 = vpop.f32.mrf.mxu0 }
 0x33b   : > { %v3308_v20 = vadd.f32 %v3307_v19, %v3265_v27  ;;  %v3358_v49 = vmul.f32 %v3265_v27, %v2913_v42  ;;  %v2306_v3 = vadd.f32 %v2238_v21, %v2127_v55  ;;  %v2061_v24 = vpop.f32.mrf.mxu1  ;;  %v2528_v46 = vpop.f32.mrf.mxu3 }
 0x33c   : > { %v2128_v61 = vadd.f32 %v2061_v24, %v5687_v6 }
 0x33d   : > { %v3401_v7 = vadd.f32 %v3400_v36, %v3358_v49  ;;  %v2586_v29 = vadd.f32 %v5436_v8, %v2306_v3  ;;  %v3176_v36 = vpop.permute.xlu1 %3175 }
 0x33f   : > { %v2914_v53 = vadd.f32 %v2846_v22, %v2586_v29  ;;  %v5690_v29 = vld [vmem:[#allocation2_spill] sm:$0xff] }
 0x341   : > { %2958 = vst [vmem:[%s5087_s12 + $0xe0] sm:$0xff] %v2914_v53  ;;  %v3266_v50 = vmul.f32 %v3161_v52, %v2914_v53 }
 0x342   : > { %v2240_v45 = vpop.f32.mrf.mxu2  ;;  %v2851_v5 = vpop.f32.mrf.mxu0 }
 0x343   : > { %v3309_v38 = vadd.f32 %v3308_v20, %v3266_v50  ;;  %v3359_v33 = vmul.f32 %v3266_v50, %v2914_v53  ;;  %v2307_v62 = vadd.f32 %v2240_v45, %v2128_v61  ;;  %v2064_v57 = vpop.f32.mrf.mxu1  ;;  %v2530_v35 = vpop.f32.mrf.mxu3 }
 0x344   : > { %v2129_v10 = vadd.f32 %v2064_v57, %v4900_v4 }
 0x345   : > { %v3402_v28 = vadd.f32 %v3401_v7, %v3359_v33  ;;  %v2587_v63 = vadd.f32 %v2520_v37, %v2307_v62  ;;  %v3171_v37 = vpop.permute.xlu0 %3170  ;;  %v3181_v7 = vpop.permute.xlu2 %3180 }
 0x347   : > { %v2915_v30 = vadd.f32 %v2848_v60, %v2587_v63 }
 0x349   : > { %2959 = vst [vmem:[%s5087_s12 + $0xe8] sm:$0xff] %v2915_v30  ;;  %v3267_v8 = vmul.f32 %v3166_v25, %v2915_v30 }
 0x34a   : > { %v2243_v41 = vpop.f32.mrf.mxu2  ;;  %v2853_v34 = vpop.f32.mrf.mxu0 }
 0x34b   : > { %v3310_v54 = vadd.f32 %v3309_v38, %v3267_v8  ;;  %v3360_v31 = vmul.f32 %v3267_v8, %v2915_v30  ;;  %v2308_v13 = vadd.f32 %v2243_v41, %v2129_v10  ;;  %v2066_v58 = vpop.f32.mrf.mxu1  ;;  %v2533_v23 = vpop.f32.mrf.mxu3 }
 0x34c   : > { %v2130_v40 = vadd.f32 %v2066_v58, %v5688_v17 }
 0x34d   : > { %v3403_v39 = vadd.f32 %v3402_v28, %v3360_v31  ;;  %v2588_v9 = vadd.f32 %v2523_v0, %v2308_v13  ;;  %v3186_v28 = vpop.permute.xlu0 %3185 }
 0x34f   : > { %v2916_v2 = vadd.f32 %v2851_v5, %v2588_v9  ;;  %v3191_v9 = vpop.permute.xlu1 %3190 }
 0x351   : > { %2960 = vst [vmem:[%s5087_s12 + $0xf0] sm:$0xff] %v2916_v2  ;;  %v3268_v59 = vmul.f32 %v3171_v37, %v2916_v2 }
 0x352   : > { %v2245_v15 = vpop.f32.mrf.mxu2  ;;  %v2856_v44 = vpop.f32.mrf.mxu0 }
 0x353   : > { %v3311_v16 = vadd.f32 %v3310_v54, %v3268_v59  ;;  %v3361_v4 = vmul.f32 %v3268_v59, %v2916_v2  ;;  %v2309_v22 = vadd.f32 %v2245_v15, %v2130_v40  ;;  %v2069_v19 = vpop.f32.mrf.mxu1  ;;  %v2535_v38 = vpop.f32.mrf.mxu3 }
 0x354   : > { %v2131_v42 = vadd.f32 %v2069_v19, %v5689_v47 }
 0x355   : > { %v3404_v14 = vadd.f32 %v3403_v39, %v3361_v4  ;;  %v2589_v11 = vadd.f32 %v2525_v1, %v2309_v22 }
 0x357   : > { %v2917_v56 = vadd.f32 %v2853_v34, %v2589_v11 }
 0x359   : > { %2961 = vst [vmem:[%s5087_s12 + $0xf8] sm:$0xff] %v2917_v56  ;;  %v3269_v0 = vmul.f32 %v3176_v36, %v2917_v56  ;;  %v5693_v36 = vld [vmem:[#allocation8_spill] sm:$0xff] }
 0x35a   : > { %v2248_v27 = vpop.f32.mrf.mxu2  ;;  %v2858_v12 = vpop.f32.mrf.mxu0 }
 0x35b   : > { %v3312_v55 = vadd.f32 %v3311_v16, %v3269_v0  ;;  %v3362_v21 = vmul.f32 %v3269_v0, %v2917_v56  ;;  %v2310_v60 = vadd.f32 %v2248_v27, %v2131_v42  ;;  %v2071_v20 = vpop.f32.mrf.mxu1  ;;  %v2538_v58 = vpop.f32.mrf.mxu3 }
 0x35c   : > { %v2132_v53 = vadd.f32 %v2071_v20, %v5690_v29 }
 0x35d   : > { %v3405_v49 = vadd.f32 %v3404_v14, %v3362_v21  ;;  %v2590_v3 = vadd.f32 %v2528_v46, %v2310_v60  ;;  %v5691_v46 = vld [vmem:[#allocation22_spill] sm:$0xff]  ;;  %v3196_v14 = vpop.permute.xlu2 %3195 }
 0x35f   : > { %v2918_v24 = vadd.f32 %v2856_v44, %v2590_v3 }
 0x361   : > { %2962 = vst [vmem:[%s5087_s12 + $0x100] sm:$0xff] %v2918_v24  ;;  %v3270_v1 = vmul.f32 %v3181_v7, %v2918_v24 }
 0x362   : > { %v2250_v52 = vpop.f32.mrf.mxu2  ;;  %v2861_v50 = vpop.f32.mrf.mxu0 }
 0x363   : > { %v3313_v6 = vadd.f32 %v3312_v55, %v3270_v1  ;;  %v3363_v61 = vmul.f32 %v3270_v1, %v2918_v24  ;;  %v2311_v45 = vadd.f32 %v2250_v52, %v2132_v53  ;;  %v2074_v5 = vpop.f32.mrf.mxu1  ;;  %v2540_v11 = vpop.f32.mrf.mxu3  ;;  %v5694_v24 = vld [vmem:[#allocation9_spill] sm:$0xff] }
 0x364   : > { %v2133_v30 = vadd.f32 %v2074_v5, %v5691_v46 }
 0x365   : > { %v3406_v33 = vadd.f32 %v3405_v49, %v3363_v61  ;;  %v2591_v62 = vadd.f32 %v2530_v35, %v2311_v45  ;;  %v5692_v35 = vld [vmem:[#allocation24_spill] sm:$0xff]  ;;  %v3201_v49 = vpop.permute.xlu0 %3200 }
 0x367   : > { %v2919_v57 = vadd.f32 %v2858_v12, %v2591_v62 }
 0x369   : > { %2963 = vst [vmem:[%s5087_s12 + $0x108] sm:$0xff] %v2919_v57  ;;  %v3271_v63 = vmul.f32 %v3186_v28, %v2919_v57 }
 0x36a   : > { %v2253_v25 = vpop.f32.mrf.mxu2  ;;  %v2863_v8 = vpop.f32.mrf.mxu0 }
 0x36b   : > { %v3314_v10 = vadd.f32 %v3313_v6, %v3271_v63  ;;  %v3364_v41 = vmul.f32 %v3271_v63, %v2919_v57  ;;  %v2312_v34 = vadd.f32 %v2253_v25, %v2133_v30  ;;  %v2076_v54 = vpop.f32.mrf.mxu1  ;;  %v2543_v29 = vpop.f32.mrf.mxu3 }
 0x36c   : > { %v2134_v37 = vadd.f32 %v2076_v54, %v5692_v35 }
 0x36d   : > { %v3407_v31 = vadd.f32 %v3406_v33, %v3364_v41  ;;  %v2592_v13 = vadd.f32 %v2533_v23, %v2312_v34  ;;  %v3206_v33 = vpop.permute.xlu1 %3205 }
 0x36f   : > { %v2920_v39 = vadd.f32 %v2861_v50, %v2592_v13 }
 0x371   : > { %2964 = vst [vmem:[%s5087_s12 + $0x110] sm:$0xff] %v2920_v39  ;;  %v3272_v2 = vmul.f32 %v3191_v9, %v2920_v39 }
 0x372   : > { %v2255_v59 = vpop.f32.mrf.mxu2  ;;  %v2866_v17 = vpop.f32.mrf.mxu0 }
 0x373   : > { %v3315_v40 = vadd.f32 %v3314_v10, %v3272_v2  ;;  %v3365_v15 = vmul.f32 %v3272_v2, %v2920_v39  ;;  %v2313_v44 = vadd.f32 %v2255_v59, %v2134_v37  ;;  %v2079_v16 = vpop.f32.mrf.mxu1 }
 0x374   : > { %v2135_v0 = vadd.f32 %v2079_v16, %v5693_v36 }
 0x375   : > { %v3408_v4 = vadd.f32 %v3407_v31, %v3365_v15  ;;  %v2593_v22 = vadd.f32 %v2535_v38, %v2313_v44  ;;  %v3211_v31 = vpop.permute.xlu2 %3210  ;;  %v3216_v15 = vpop.permute.xlu0 %3215 }
 0x377   : > { %v2921_v19 = vadd.f32 %v2863_v8, %v2593_v22  ;;  %v2545_v8 = vpop.f32.mrf.mxu3 }
 0x379   : > { %2965 = vst [vmem:[%s5087_s12 + $0x118] sm:$0xff] %v2921_v19  ;;  %v3273_v56 = vmul.f32 %v3196_v14, %v2921_v19 }
 0x37a   : > { %v2258_v47 = vpop.f32.mrf.mxu2  ;;  %v2868_v42 = vpop.f32.mrf.mxu0 }
 0x37b   : > { %v3316_v23 = vadd.f32 %v3315_v40, %v3273_v56  ;;  %v3366_v27 = vmul.f32 %v3273_v56, %v2921_v19  ;;  %v2314_v12 = vadd.f32 %v2258_v47, %v2135_v0  ;;  %v2081_v55 = vpop.f32.mrf.mxu1  ;;  %v3221_v47 = vpop.permute.xlu1 %3220 }
 0x37c   : > { %v2136_v7 = vadd.f32 %v2081_v55, %v5694_v24 }
 0x37d   : > { %v3409_v21 = vadd.f32 %v3408_v4, %v3366_v27  ;;  %v2594_v60 = vadd.f32 %v2538_v58, %v2314_v12 }
 0x37f   : > { %v2922_v20 = vadd.f32 %v2866_v17, %v2594_v60  ;;  %v2548_v17 = vpop.f32.mrf.mxu3 }
 0x381   : > { %2966 = vst [vmem:[%s5087_s12 + $0x120] sm:$0xff] %v2922_v20  ;;  %v3274_v3 = vmul.f32 %v3201_v49, %v2922_v20 }
 0x382   : > { %v2260_v1 = vpop.f32.mrf.mxu2  ;;  %v2871_v61 = vpop.f32.mrf.mxu0 }
 0x383   : > { %v3317_v53 = vadd.f32 %v3316_v23, %v3274_v3  ;;  %v3367_v52 = vmul.f32 %v3274_v3, %v2922_v20  ;;  %v2315_v50 = vadd.f32 %v2260_v1, %v2136_v7  ;;  %v2084_v6 = vpop.f32.mrf.mxu1  ;;  %v3226_v7 = vpop.permute.xlu2 %3225 }
 0x384   : > { %v2137_v57 = vadd.f32 %v2084_v6, %v5004_v51 }
 0x385   : > { %v3410_v45 = vadd.f32 %v3409_v21, %v3367_v52  ;;  %v2595_v5 = vadd.f32 %v2540_v11, %v2315_v50 }
 0x387   : > { %v2923_v38 = vadd.f32 %v2868_v42, %v2595_v5  ;;  %v2550_v42 = vpop.f32.mrf.mxu3 }
 0x389   : > { %2967 = vst [vmem:[%s5087_s12 + $0x128] sm:$0xff] %v2923_v38  ;;  %v3275_v62 = vmul.f32 %v3206_v33, %v2923_v38 }
 0x38a   : > { %v2263_v28 = vpop.f32.mrf.mxu2  ;;  %v2873_v34 = vpop.f32.mrf.mxu0 }
 0x38b   : > { %v3318_v63 = vadd.f32 %v3317_v53, %v3275_v62  ;;  %v3368_v46 = vmul.f32 %v3275_v62, %v2923_v38  ;;  %v2316_v30 = vadd.f32 %v2263_v28, %v2137_v57  ;;  %v2086_v25 = vpop.f32.mrf.mxu1  ;;  %v3231_v62 = vpop.permute.xlu0 %3230 }
 0x38c   : > { %v2138_v58 = vadd.f32 %v2086_v25, %v5020_v43 }
 0x38d   : > { %v3411_v10 = vadd.f32 %v3410_v45, %v3368_v46  ;;  %v2596_v41 = vadd.f32 %v2543_v29, %v2316_v30 }
 0x38f   : > { %v2924_v54 = vadd.f32 %v2871_v61, %v2596_v41  ;;  %v2553_v53 = vpop.f32.mrf.mxu3 }
 0x391   : > { %2968 = vst [vmem:[%s5087_s12 + $0x130] sm:$0xff] %v2924_v54  ;;  %v3276_v13 = vmul.f32 %v3211_v31, %v2924_v54 }
 0x392   : > { %v2265_v39 = vpop.f32.mrf.mxu2  ;;  %v2876_v44 = vpop.f32.mrf.mxu0 }
 0x393   : > { %v3319_v9 = vadd.f32 %v3318_v63, %v3276_v13  ;;  %v3369_v2 = vmul.f32 %v3276_v13, %v2924_v54  ;;  %v2317_v51 = vadd.f32 %v2265_v39, %v2138_v58  ;;  %v2089_v35 = vpop.f32.mrf.mxu1  ;;  %v3236_v54 = vpop.permute.xlu1 %3235 }
 0x394   : > { %v2139_v4 = vadd.f32 %v2089_v35, %v5030_v32 }
 0x395   : > { %v3412_v37 = vadd.f32 %v3411_v10, %v3369_v2  ;;  %v2597_v59 = vadd.f32 %v2545_v8, %v2317_v51 }
 0x397   : > { %v2925_v40 = vadd.f32 %v2873_v34, %v2597_v59  ;;  %v2555_v25 = vpop.f32.mrf.mxu3 }
 0x399   : > { %2969 = vst [vmem:[%s5087_s12 + $0x138] sm:$0xff] %v2925_v40  ;;  %v3277_v16 = vmul.f32 %v3216_v15, %v2925_v40 }
 0x39a   : > { %v2268_v22 = vpop.f32.mrf.mxu2  ;;  %v2878_v12 = vpop.f32.mrf.mxu0 }
 0x39b   : > { %v3320_v19 = vadd.f32 %v3319_v9, %v3277_v16  ;;  %v3370_v14 = vmul.f32 %v3277_v16, %v2925_v40  ;;  %v2318_v43 = vadd.f32 %v2268_v22, %v2139_v4  ;;  %v2091_v11 = vpop.f32.mrf.mxu1 }
 0x39c   : > { %v2140_v27 = vadd.f32 %v2091_v11, %v5046_v26 }
 0x39d   : > { %v3413_v56 = vadd.f32 %v3412_v37, %v3370_v14  ;;  %v2598_v36 = vadd.f32 %v2548_v17, %v2318_v43 }
 0x39f   : > { %v2926_v0 = vadd.f32 %v2876_v44, %v2598_v36 }
 0x3a1   : > { %2970 = vst [vmem:[%s5087_s12 + $0x140] sm:$0xff] %v2926_v0  ;;  %v3278_v23 = vmul.f32 %v3221_v47, %v2926_v0 }
 0x3a2   : > { %v2270_v55 = vpop.f32.mrf.mxu2  ;;  %v2881_v61 = vpop.f32.mrf.mxu0 }
 0x3a3   : > { %v3321_v21 = vadd.f32 %v3320_v19, %v3278_v23  ;;  %v3371_v60 = vmul.f32 %v3278_v23, %v2926_v0  ;;  %v2319_v32 = vadd.f32 %v2270_v55, %v2140_v27  ;;  %v2094_v20 = vpop.f32.mrf.mxu1 }
 0x3a4   : > { %v2141_v29 = vadd.f32 %v2094_v20, %v5056_v48 }
 0x3a5   : > { %v3414_v49 = vadd.f32 %v3413_v56, %v3371_v60  ;;  %v2599_v3 = vadd.f32 %v2550_v42, %v2319_v32 }
 0x3a7   : > { %v2927_v24 = vadd.f32 %v2878_v12, %v2599_v3 }
 0x3a9   : > { %2971 = vst [vmem:[%s5087_s12 + $0x148] sm:$0xff] %v2927_v24  ;;  %v3279_v1 = vmul.f32 %v3226_v7, %v2927_v24 }
 0x3aa   : > { %v2273_v52 = vpop.f32.mrf.mxu2  ;;  %v2883_v41 = vpop.f32.mrf.mxu0 }
 0x3ab   : > { %v3322_v50 = vadd.f32 %v3321_v21, %v3279_v1  ;;  %v3372_v6 = vmul.f32 %v3279_v1, %v2927_v24  ;;  %v2320_v26 = vadd.f32 %v2273_v52, %v2141_v29  ;;  %v2096_v38 = vpop.f32.mrf.mxu1 }
 0x3ac   : > { %v2142_v28 = vadd.f32 %v2096_v38, %v5072_v18 }
 0x3ad   : > { %v3415_v45 = vadd.f32 %v3414_v49, %v3372_v6  ;;  %v2600_v5 = vadd.f32 %v2553_v53, %v2320_v26 }
 0x3af   : > { %v2928_v33 = vadd.f32 %v2881_v61, %v2600_v5 }
 0x3b1   : > { %2972 = vst [vmem:[%s5087_s12 + $0x150] sm:$0xff] %v2928_v33  ;;  %v3280_v57 = vmul.f32 %v3231_v62, %v2928_v33 }
 0x3b2   : > { %v2275_v63 = vpop.f32.mrf.mxu2 }
 0x3b3   : > { %v3323_v46 = vadd.f32 %v3322_v50, %v3280_v57  ;;  %v3373_v30 = vmul.f32 %v3280_v57, %v2928_v33  ;;  %v2321_v48 = vadd.f32 %v2275_v63, %v2142_v28 }
 0x3b5   : > { %v3416_v8 = vadd.f32 %v3415_v45, %v3373_v30  ;;  %v2601_v10 = vadd.f32 %v2555_v25, %v2321_v48 }
 0x3b7   : > { %v2929_v34 = vadd.f32 %v2883_v41, %v2601_v10 }
 0x3b9   : > { %2973 = vst [vmem:[%s5087_s12 + $0x158] sm:$0xff] %v2929_v34  ;;  %v3281_v31 = vmul.f32 %v3236_v54, %v2929_v34 }
 0x3bb   : > { %v3324_v13 = vadd.f32 %v3323_v46, %v3281_v31  ;;  %v3374_v58 = vmul.f32 %v3281_v31, %v2929_v34 }
 0x3bd   : > { %v3325_v39 = vrot.slane %v3324_v13, 4  ;;  %v3417_v9 = vadd.f32 %v3416_v8, %v3374_v58 }
 0x3bf   : > { %v3326_v2 = vadd.f32 %v3325_v39, %v3324_v13  ;;  %v3418_v51 = vrot.slane %v3417_v9, 4 }
 0x3c1   : > { %v3327_v18 = vrot.slane %v3326_v2, 2  ;;  %v3419_v35 = vadd.f32 %v3418_v51, %v3417_v9 }
 0x3c3   : > { %v3328_v37 = vadd.f32 %v3327_v18, %v3326_v2  ;;  %v3420_v59 = vrot.slane %v3419_v35, 2 }
 0x3c5   : > { %v3329_v17 = vrot.slane %v3328_v37, 1  ;;  %v3421_v40 = vadd.f32 %v3420_v59, %v3419_v35 }
 0x3c7   : > { %v3422_v15 = vrot.slane %v3421_v40, 1  ;;  %v3330_v44 = vadd.f32 %v3329_v17, %v3328_v37 }
 0x3c9   : > { %v3423_v16 = vadd.f32 %v3422_v15, %v3421_v40 }
 0x3cb   : > { %v3425_v4 = vsel %vm514_vm1, %v3330_v44, %v3423_v16 }
 0x3cc   : > { %v3427_v22 = vsel %vm3426_vm8, %v3425_v4, 0.0 }
 0x3cd   : > { %3428 = vst [vmem:[%s327_s17] sm:$0xff] %v3427_v22 }
 0x3ce PF: > { %s17_s21 = sadd.s32 1, %s3952_s21  }
 0x3cf   : > { %p14_p5 = scmp.ge.s32.totalorder %s17_s21, 4  }
 0x3d1   :  { %16 = sbr.rel (!%p14_p5) target bundleno = 1 (0x1), region = 99 }

</bundles_post_ra>
